<compile_context>
chip_gen: v6e
topology: v6e:2x2x1
jax: 0.10.0
libtpu: 0.0.40
codegen_flags: <defaults>
</compile_context>

<pallas_src>
import functools
import math
import numpy as np
import jax
import jax.numpy as jnp
from jax.experimental import pallas as pl
from jax.experimental.pallas import tpu as pltpu

BN_EPS = 1e-5
LANE = 128
SUB = 16              # bf16 sublane tile
HX = 16               # x-window halo rows per side (>= total receptive field 11)
E1 = 8                # conv1-output halo rows needed per side (pad2 + pad3)
E2 = 3                # conv2-output halo rows needed per side (pad3)
K1, K2, K3 = 7, 11, 7
PAD1, PAD2, PAD3 = 3, 5, 3


def _round_up(n, m):
    return ((n + m - 1) // m) * m


def bottleneck_kernel(x_ref, w1_ref, w2_ref, w3_ref, b1_ref, b2_ref, b3_ref,
                      out_ref, s_ref, *, L, TL):
    # x_ref : (TL + 2*HX, Cin_p) bf16 window; row i <-> global row t*TL - HX + i
    # w*_ref: (K*C, Cout)        bf16 fused conv weights (BN scale folded in)
    # b*_ref: (1, Cout)          f32 folded BatchNorm bias
    # out_ref: (TL, Cout_p)      f32
    # s_ref : (TL + 2*E1, P_p)   bf16 activation scratch (conv1 then conv2 out)
    t = pl.program_id(1)
    Cin = x_ref.shape[1]
    P = s_ref.shape[1]

    def conv(src_ref, w_ref, K, C, row0, M):
        # K per-tap accumulating MXU matmuls (bf16 x bf16 -> f32 accumulate);
        # no (M, K*C) im2col slab is ever materialised.
        acc = None
        for k in range(K):
            part = jnp.dot(src_ref[row0 + k:row0 + k + M, :],
                           w_ref[k * C:(k + 1) * C, :],
                           preferred_element_type=jnp.float32)
            acc = part if acc is None else acc + part
        return acc

    def mask_valid(h, first_rel):
        # Zero rows whose global position lies outside [0, L): reproduces the
        # zero padding the reference applies between convs and makes the halo
        # recompute at tile / sequence boundaries exact.  Runs unconditionally
        # every step (megacore-safe).
        M = h.shape[0]
        g = t * TL + first_rel + jax.lax.broadcasted_iota(jnp.int32, (M, 1), 0)
        return jnp.where(jnp.logical_and(g >= 0, g < L), h, 0.0)

    # ---- conv1 (k=7, pad=3) + bn1 + relu over relative rows [-E1, TL+E1) ----
    M1 = TL + 2 * E1
    h1 = conv(x_ref, w1_ref, K1, Cin, HX - E1 - PAD1, M1) + b1_ref[...]
    h1 = mask_valid(jnp.maximum(h1, 0.0), -E1)
    s_ref[...] = h1.astype(s_ref.dtype)              # row i <-> relative row i - E1

    # ---- conv2 (k=11, pad=5) + bn2 + relu over relative rows [-E2, TL+E2) ----
    M2 = TL + 2 * E2
    h2 = conv(s_ref, w2_ref, K2, P, E1 - E2 - PAD2, M2) + b2_ref[...]
    h2 = mask_valid(jnp.maximum(h2, 0.0), -E2)
    # TODO(synk): nn.Dropout(0.2) treated as identity (eval-mode semantics).
    # h2 is fully materialised before this store, so reusing s_ref is safe.
    s_ref[0:M2, :] = h2.astype(s_ref.dtype)          # row i <-> relative row i - E2

    # ---- conv3 (k=7, pad=3) + bn3 + residual add + relu over rows [0, TL) ----
    h3 = conv(s_ref, w3_ref, K3, P, E2 - PAD3, TL) + b3_ref[...]
    residual = x_ref[HX:HX + TL, :].astype(jnp.float32)
    out_ref[...] = jnp.maximum(h3 + residual, 0.0)


def fold_bn(gamma, beta, mean, var):
    scale = gamma / jnp.sqrt(var + BN_EPS)
    bias = beta - mean * scale
    return scale.astype(jnp.float32), bias.reshape(1, -1).astype(jnp.float32)


def bottleneck_forward(x_ncl, params, *, tl=512):
    """x_ncl: (B, inplanes, L) f32; stride=1, downsample=None, eval-mode BN/dropout.

    tl: target L-tile (rows per grid step == the matmul M dim).  512 fills the
        256-row MXU on v6e/v7x; prefer ~256 on v5e to stay well inside its
        16 MiB scoped-VMEM default.
    """
    B, Cin, L = x_ncl.shape
    P = params["w1"].shape[0]
    Cout = params["w3"].shape[0]
    assert Cout == Cin, "residual add requires inplanes == planes * expansion"
    assert params["w1"].shape[2] == K1 and params["w2"].shape[2] == K2
    assert params["w3"].shape[2] == K3

    Cin_p = _round_up(Cin, LANE)
    P_p = _round_up(P, LANE)
    Cout_p = _round_up(Cout, LANE)

    TL = min(_round_up(tl, SUB), _round_up(L, SUB))
    NT = _round_up(L, TL) // TL
    L_pad = NT * TL
    TW = TL + 2 * HX

    s1, b1 = fold_bn(*params["bn1"])
    s2, b2 = fold_bn(*params["bn2"])
    s3, b3 = fold_bn(*params["bn3"])

    def fuse_w(w, scale, cin_p, cout_p):
        # (Cout, Cin, K) -> tap-major (K*Cin_p, Cout_p): BN scale folded along
        # Cout, channels zero-padded to full 128 lanes, bf16 for the MXU.
        cout, cin, K = w.shape
        wt = jnp.transpose(w, (2, 1, 0)).astype(jnp.float32) * scale.reshape(1, 1, cout)
        wt = jnp.pad(wt, ((0, 0), (0, cin_p - cin), (0, cout_p - cout)))
        return wt.reshape(K * cin_p, cout_p).astype(jnp.bfloat16)

    def pad_bias(b, cp):
        return jnp.pad(b, ((0, 0), (0, cp - b.shape[1])))

    w1f = fuse_w(params["w1"], s1, Cin_p, P_p)       # (7*Cin_p,  P_p)
    w2f = fuse_w(params["w2"], s2, P_p, P_p)         # (11*P_p,   P_p)
    w3f = fuse_w(params["w3"], s3, P_p, Cout_p)      # (7*P_p,    Cout_p)
    b1p, b2p, b3p = pad_bias(b1, P_p), pad_bias(b2, P_p), pad_bias(b3, Cout_p)

    # NCL -> NLC, channel pad to 128 lanes, bf16 (halves x HBM/DMA bytes), and
    # zero halo/tail rows so every tile window is in-bounds.
    # TODO(synk): keep activations in NLC bf16 between blocks to drop both
    # transposes entirely (needs cooperation from the surrounding model).
    x_nlc = jnp.transpose(x_ncl, (0, 2, 1))
    x_pad = jnp.pad(x_nlc, ((0, 0), (HX, HX + L_pad - L), (0, Cin_p - Cin)))
    x_pad = x_pad.astype(jnp.bfloat16)               # (B, L_pad + 2*HX, Cin_p)

    if NT == 1:
        x_win = x_pad[:, None, :, :]                 # (B, 1, TW, Cin_p)
    else:
        idx = np.arange(NT)[:, None] * TL + np.arange(TW)[None, :]
        x_win = x_pad[:, idx, :]                     # (B, NT, TW, Cin_p) overlapping windows

    kernel = functools.partial(bottleneck_kernel, L=L, TL=TL)

    # VMEM budget for this tile: double-buffered x window + output block,
    # weights (x2 covers the double-buffered fallback), activation scratch,
    # f32 accumulators, plus headroom for Mosaic temporaries.
    est = (2 * TW * Cin_p * 2 + 2 * TL * Cout_p * 4
           + (TL + 2 * E1) * P_p * 2
           + 2 * int(w1f.size + w2f.size + w3f.size) * 2
           + 2 * (TL + 2 * E1) * max(P_p, Cout_p) * 4
           + (8 << 20))
    vmem_limit = int(min(max(est, 16 << 20), 64 << 20))

    def build_call(single_buffer_weights):
        def w_spec(shape):
            if single_buffer_weights:
                # Constant operands: fetched once, one VMEM buffer (saves MiBs
                # under v7x's 64 MiB ceiling).
                return pl.BlockSpec(shape, lambda b, t: (0, 0),
                                    pipeline_mode=pl.Buffered(1))
            return pl.BlockSpec(shape, lambda b, t: (0, 0))

        return pl.pallas_call(
            kernel,
            out_shape=jax.ShapeDtypeStruct((B, L_pad, Cout_p), jnp.float32),
            grid=(B, NT),
            in_specs=[
                pl.BlockSpec((None, None, TW, Cin_p), lambda b, t: (b, t, 0, 0)),
                w_spec((K1 * Cin_p, P_p)),
                w_spec((K2 * P_p, P_p)),
                w_spec((K3 * P_p, Cout_p)),
                pl.BlockSpec((1, P_p), lambda b, t: (0, 0)),
                pl.BlockSpec((1, P_p), lambda b, t: (0, 0)),
                pl.BlockSpec((1, Cout_p), lambda b, t: (0, 0)),
            ],
            out_specs=pl.BlockSpec((None, TL, Cout_p), lambda b, t: (b, t, 0)),
            scratch_shapes=[pltpu.VMEM((TL + 2 * E1, P_p), jnp.bfloat16)],
            compiler_params=pltpu.CompilerParams(
                dimension_semantics=("parallel", "parallel"),
                vmem_limit_bytes=vmem_limit),
        )

    args = (x_win, w1f, w2f, w3f, b1p, b2p, b3p)
    try:
        out = build_call(True)(*args)
    except Exception:
        # Installed Pallas without per-operand buffer counts: default buffering.
        out = build_call(False)(*args)

    out = out[:, :L, :Cout]                          # drop L/lane padding
    return jnp.transpose(out, (0, 2, 1))             # back to NCL


# ------------------------- pure-JAX reference -------------------------
def reference_forward(x_ncl, params):
    def conv1d(x, w, pad):
        return jax.lax.conv_general_dilated(
            x, w, window_strides=(1,), padding=[(pad, pad)],
            dimension_numbers=("NCH", "OIH", "NCH"),
            precision=jax.lax.Precision.HIGHEST)

    def bn(x, g, b, m, v):
        return ((x - m[None, :, None]) / jnp.sqrt(v[None, :, None] + BN_EPS)
                * g[None, :, None] + b[None, :, None])

    out = jax.nn.relu(bn(conv1d(x_ncl, params["w1"], 3), *params["bn1"]))
    out = jax.nn.relu(bn(conv1d(out, params["w2"], 5), *params["bn2"]))
    out = bn(conv1d(out, params["w3"], 3), *params["bn3"])
    return jax.nn.relu(out + x_ncl)


def init_params(key, inplanes, planes):
    ks = jax.random.split(key, 16)

    def conv_w(k, cout, cin, ksz):
        bound = 1.0 / math.sqrt(cin * ksz)
        return jax.random.uniform(k, (cout, cin, ksz), jnp.float32, -bound, bound)

    def bn_p(k, c):
        k0, k1, k2, k3 = jax.random.split(k, 4)
        gamma = jax.random.uniform(k0, (c,), jnp.float32, 0.5, 1.5)
        beta = 0.1 * jax.random.normal(k1, (c,), jnp.float32)
        mean = 0.1 * jax.random.normal(k2, (c,), jnp.float32)
        var = jax.random.uniform(k3, (c,), jnp.float32, 0.5, 1.5)
        return (gamma, beta, mean, var)

    return {
        "w1": conv_w(ks[0], planes, inplanes, 7),
        "w2": conv_w(ks[1], planes, planes, 11),
        "w3": conv_w(ks[2], planes * 4, planes, 7),
        "bn1": bn_p(ks[3], planes),
        "bn2": bn_p(ks[4], planes),
        "bn3": bn_p(ks[5], planes * 4),
    }


if __name__ == "__main__":
    key = jax.random.PRNGKey(0)
    k_x, k_p = jax.random.split(key)

    B, planes, L = 2, 4, 16
    inplanes = planes * 4        # residual add requires inplanes == planes*expansion
    x = jax.random.normal(k_x, (B, inplanes, L), jnp.float32)
    params = init_params(k_p, inplanes, planes)

    out = jax.block_until_ready(bottleneck_forward(x, params))
    ref = jax.block_until_ready(reference_forward(x, params))

    # bf16 MXU path (weights, activations, bf16 residual) vs. the f32-HIGHEST
    # reference gives ~1e-3..1e-2 deviations; structural/indexing bugs would be
    # orders of magnitude above this tolerance.
    np.testing.assert_allclose(np.asarray(out), np.asarray(ref), rtol=3e-2, atol=3e-2)

    print("KERNEL_OK")
</pallas_src>

<mosaic_0001>
module attributes {stable_mosaic.version = 11 : i64} {
  func.func @bottleneck_kernel(%arg0: i32, %arg1: i32, %arg2: memref<1x1x48x128xbf16, #tpu.memory_space<vmem>>, %arg3: memref<896x128xbf16, #tpu.memory_space<vmem>>, %arg4: memref<1408x128xbf16, #tpu.memory_space<vmem>>, %arg5: memref<896x128xbf16, #tpu.memory_space<vmem>>, %arg6: memref<1x128xf32, #tpu.memory_space<vmem>>, %arg7: memref<1x128xf32, #tpu.memory_space<vmem>>, %arg8: memref<1x128xf32, #tpu.memory_space<vmem>>, %arg9: memref<1x16x128xf32, #tpu.memory_space<vmem>>, %arg10: memref<32x128xbf16, #tpu.memory_space<vmem>>) attributes {dimension_semantics = [#tpu.dimension_semantics<parallel>, #tpu.dimension_semantics<parallel>], iteration_bounds = array<i64: 2, 1>, scalar_prefetch = 0 : i64, scratch_operands = 1 : i64, tpu.core_type = #tpu.core_type<tc>, window_params = [{transform_indices = @transform_0, window_bounds = array<i64: 1, 1, 48, 128>}, {pipeline_mode = #tpu.pipeline_mode<synchronous>, transform_indices = @transform_1, window_bounds = array<i64: 896, 128>}, {pipeline_mode = #tpu.pipeline_mode<synchronous>, transform_indices = @transform_2, window_bounds = array<i64: 1408, 128>}, {pipeline_mode = #tpu.pipeline_mode<synchronous>, transform_indices = @transform_3, window_bounds = array<i64: 896, 128>}, {pipeline_mode = #tpu.pipeline_mode<synchronous>, transform_indices = @transform_4, window_bounds = array<i64: 1, 128>}, {pipeline_mode = #tpu.pipeline_mode<synchronous>, transform_indices = @transform_5, window_bounds = array<i64: 1, 128>}, {pipeline_mode = #tpu.pipeline_mode<synchronous>, transform_indices = @transform_6, window_bounds = array<i64: 1, 128>}, {transform_indices = @transform_7, window_bounds = array<i64: 1, 16, 128>}]} {
    %c0 = arith.constant 0 : index
    %c0_0 = arith.constant 0 : index
    %c5 = arith.constant 5 : index
    %c0_1 = arith.constant 0 : index
    %0 = vector.load %arg2[%c0, %c0_0, %c5, %c0_1] : memref<1x1x48x128xbf16, #tpu.memory_space<vmem>>, vector<1x1x32x128xbf16>
    %1 = vector.shape_cast %0 : vector<1x1x32x128xbf16> to vector<32x128xbf16>
    %c0_2 = arith.constant 0 : index
    %c0_3 = arith.constant 0 : index
    %2 = vector.load %arg3[%c0_2, %c0_3] : memref<896x128xbf16, #tpu.memory_space<vmem>>, vector<128x128xbf16>
    %cst = arith.constant dense<0.000000e+00> : vector<32x128xf32>
    %3 = tpu.matmul %1, %2, %cst {dimension_numbers = #tpu.dot_dimension_numbers<[1], [0], [0], [1], [0, 0, 1, 1], [], []>} : vector<32x128xbf16>, vector<128x128xbf16>, vector<32x128xf32> -> vector<32x128xf32>
    %c0_4 = arith.constant 0 : index
    %c0_5 = arith.constant 0 : index
    %c6 = arith.constant 6 : index
    %c0_6 = arith.constant 0 : index
    %4 = vector.load %arg2[%c0_4, %c0_5, %c6, %c0_6] : memref<1x1x48x128xbf16, #tpu.memory_space<vmem>>, vector<1x1x32x128xbf16>
    %5 = vector.shape_cast %4 : vector<1x1x32x128xbf16> to vector<32x128xbf16>
    %c128 = arith.constant 128 : index
    %c0_7 = arith.constant 0 : index
    %6 = vector.load %arg3[%c128, %c0_7] : memref<896x128xbf16, #tpu.memory_space<vmem>>, vector<128x128xbf16>
    %cst_8 = arith.constant dense<0.000000e+00> : vector<32x128xf32>
    %7 = tpu.matmul %5, %6, %cst_8 {dimension_numbers = #tpu.dot_dimension_numbers<[1], [0], [0], [1], [0, 0, 1, 1], [], []>} : vector<32x128xbf16>, vector<128x128xbf16>, vector<32x128xf32> -> vector<32x128xf32>
    %8 = arith.addf %3, %7 : vector<32x128xf32>
    %c0_9 = arith.constant 0 : index
    %c0_10 = arith.constant 0 : index
    %c7 = arith.constant 7 : index
    %c0_11 = arith.constant 0 : index
    %9 = vector.load %arg2[%c0_9, %c0_10, %c7, %c0_11] : memref<1x1x48x128xbf16, #tpu.memory_space<vmem>>, vector<1x1x32x128xbf16>
    %10 = vector.shape_cast %9 : vector<1x1x32x128xbf16> to vector<32x128xbf16>
    %c256 = arith.constant 256 : index
    %c0_12 = arith.constant 0 : index
    %11 = vector.load %arg3[%c256, %c0_12] : memref<896x128xbf16, #tpu.memory_space<vmem>>, vector<128x128xbf16>
    %cst_13 = arith.constant dense<0.000000e+00> : vector<32x128xf32>
    %12 = tpu.matmul %10, %11, %cst_13 {dimension_numbers = #tpu.dot_dimension_numbers<[1], [0], [0], [1], [0, 0, 1, 1], [], []>} : vector<32x128xbf16>, vector<128x128xbf16>, vector<32x128xf32> -> vector<32x128xf32>
    %13 = arith.addf %8, %12 : vector<32x128xf32>
    %c0_14 = arith.constant 0 : index
    %c0_15 = arith.constant 0 : index
    %c8 = arith.constant 8 : index
    %c0_16 = arith.constant 0 : index
    %14 = vector.load %arg2[%c0_14, %c0_15, %c8, %c0_16] : memref<1x1x48x128xbf16, #tpu.memory_space<vmem>>, vector<1x1x32x128xbf16>
    %15 = vector.shape_cast %14 : vector<1x1x32x128xbf16> to vector<32x128xbf16>
    %c384 = arith.constant 384 : index
    %c0_17 = arith.constant 0 : index
    %16 = vector.load %arg3[%c384, %c0_17] : memref<896x128xbf16, #tpu.memory_space<vmem>>, vector<128x128xbf16>
    %cst_18 = arith.constant dense<0.000000e+00> : vector<32x128xf32>
    %17 = tpu.matmul %15, %16, %cst_18 {dimension_numbers = #tpu.dot_dimension_numbers<[1], [0], [0], [1], [0, 0, 1, 1], [], []>} : vector<32x128xbf16>, vector<128x128xbf16>, vector<32x128xf32> -> vector<32x128xf32>
    %18 = arith.addf %13, %17 : vector<32x128xf32>
    %c0_19 = arith.constant 0 : index
    %c0_20 = arith.constant 0 : index
    %c9 = arith.constant 9 : index
    %c0_21 = arith.constant 0 : index
    %19 = vector.load %arg2[%c0_19, %c0_20, %c9, %c0_21] : memref<1x1x48x128xbf16, #tpu.memory_space<vmem>>, vector<1x1x32x128xbf16>
    %20 = vector.shape_cast %19 : vector<1x1x32x128xbf16> to vector<32x128xbf16>
    %c512 = arith.constant 512 : index
    %c0_22 = arith.constant 0 : index
    %21 = vector.load %arg3[%c512, %c0_22] : memref<896x128xbf16, #tpu.memory_space<vmem>>, vector<128x128xbf16>
    %cst_23 = arith.constant dense<0.000000e+00> : vector<32x128xf32>
    %22 = tpu.matmul %20, %21, %cst_23 {dimension_numbers = #tpu.dot_dimension_numbers<[1], [0], [0], [1], [0, 0, 1, 1], [], []>} : vector<32x128xbf16>, vector<128x128xbf16>, vector<32x128xf32> -> vector<32x128xf32>
    %23 = arith.addf %18, %22 : vector<32x128xf32>
    %c0_24 = arith.constant 0 : index
    %c0_25 = arith.constant 0 : index
    %c10 = arith.constant 10 : index
    %c0_26 = arith.constant 0 : index
    %24 = vector.load %arg2[%c0_24, %c0_25, %c10, %c0_26] : memref<1x1x48x128xbf16, #tpu.memory_space<vmem>>, vector<1x1x32x128xbf16>
    %25 = vector.shape_cast %24 : vector<1x1x32x128xbf16> to vector<32x128xbf16>
    %c640 = arith.constant 640 : index
    %c0_27 = arith.constant 0 : index
    %26 = vector.load %arg3[%c640, %c0_27] : memref<896x128xbf16, #tpu.memory_space<vmem>>, vector<128x128xbf16>
    %cst_28 = arith.constant dense<0.000000e+00> : vector<32x128xf32>
    %27 = tpu.matmul %25, %26, %cst_28 {dimension_numbers = #tpu.dot_dimension_numbers<[1], [0], [0], [1], [0, 0, 1, 1], [], []>} : vector<32x128xbf16>, vector<128x128xbf16>, vector<32x128xf32> -> vector<32x128xf32>
    %28 = arith.addf %23, %27 : vector<32x128xf32>
    %c0_29 = arith.constant 0 : index
    %c0_30 = arith.constant 0 : index
    %c11 = arith.constant 11 : index
    %c0_31 = arith.constant 0 : index
    %29 = vector.load %arg2[%c0_29, %c0_30, %c11, %c0_31] : memref<1x1x48x128xbf16, #tpu.memory_space<vmem>>, vector<1x1x32x128xbf16>
    %30 = vector.shape_cast %29 : vector<1x1x32x128xbf16> to vector<32x128xbf16>
    %c768 = arith.constant 768 : index
    %c0_32 = arith.constant 0 : index
    %31 = vector.load %arg3[%c768, %c0_32] : memref<896x128xbf16, #tpu.memory_space<vmem>>, vector<128x128xbf16>
    %cst_33 = arith.constant dense<0.000000e+00> : vector<32x128xf32>
    %32 = tpu.matmul %30, %31, %cst_33 {dimension_numbers = #tpu.dot_dimension_numbers<[1], [0], [0], [1], [0, 0, 1, 1], [], []>} : vector<32x128xbf16>, vector<128x128xbf16>, vector<32x128xf32> -> vector<32x128xf32>
    %33 = arith.addf %28, %32 : vector<32x128xf32>
    %c0_34 = arith.constant 0 : index
    %c0_35 = arith.constant 0 : index
    %34 = vector.load %arg6[%c0_34, %c0_35] : memref<1x128xf32, #tpu.memory_space<vmem>>, vector<1x128xf32>
    %35 = vector.broadcast %34 : vector<1x128xf32> to vector<32x128xf32>
    %36 = arith.addf %33, %35 : vector<32x128xf32>
    %cst_36 = arith.constant 0.000000e+00 : f32
    %37 = vector.broadcast %cst_36 : f32 to vector<32x128xf32>
    %38 = arith.maximumf %36, %37 : vector<32x128xf32>
    %c16_i32 = arith.constant 16 : i32
    %39 = arith.muli %arg1, %c16_i32 : i32
    %c-8_i32 = arith.constant -8 : i32
    %40 = arith.addi %39, %c-8_i32 : i32
    %41 = tpu.iota {dimensions = array<i32: 0>} : vector<32x1xi32>
    %42 = vector.broadcast %40 : i32 to vector<32x1xi32>
    %43 = arith.addi %42, %41 : vector<32x1xi32>
    %c0_i32 = arith.constant 0 : i32
    %44 = vector.broadcast %c0_i32 : i32 to vector<32x1xi32>
    %45 = arith.cmpi sge, %43, %44 : vector<32x1xi32>
    %c16_i32_37 = arith.constant 16 : i32
    %46 = vector.broadcast %c16_i32_37 : i32 to vector<32x1xi32>
    %47 = arith.cmpi slt, %43, %46 : vector<32x1xi32>
    %48 = arith.andi %45, %47 : vector<32x1xi1>
    %cst_38 = arith.constant 0.000000e+00 : f32
    %49 = vector.shape_cast %48 : vector<32x1xi1> to vector<32x1xi1>
    %50 = vector.broadcast %49 : vector<32x1xi1> to vector<32x128xi1>
    %51 = vector.broadcast %cst_38 : f32 to vector<32x128xf32>
    %52 = arith.select %50, %38, %51 : vector<32x128xi1>, vector<32x128xf32>
    %53 = arith.truncf %52 : vector<32x128xf32> to vector<32x128xbf16>
    %c0_39 = arith.constant 0 : index
    %c0_40 = arith.constant 0 : index
    %54 = vector.load %arg10[%c0_39, %c0_40] : memref<32x128xbf16, #tpu.memory_space<vmem>>, vector<32x128xbf16>
    tpu.vector_store %arg10[%c0_39, %c0_40], %53 {strides = array<i32>} : memref<32x128xbf16, #tpu.memory_space<vmem>>, vector<32x128xbf16>,
    %c0_41 = arith.constant 0 : index
    %c0_42 = arith.constant 0 : index
    %55 = vector.load %arg10[%c0_41, %c0_42] : memref<32x128xbf16, #tpu.memory_space<vmem>>, vector<22x128xbf16>
    %c0_43 = arith.constant 0 : index
    %c0_44 = arith.constant 0 : index
    %56 = vector.load %arg4[%c0_43, %c0_44] : memref<1408x128xbf16, #tpu.memory_space<vmem>>, vector<128x128xbf16>
    %cst_45 = arith.constant dense<0.000000e+00> : vector<22x128xf32>
    %57 = tpu.matmul %55, %56, %cst_45 {dimension_numbers = #tpu.dot_dimension_numbers<[1], [0], [0], [1], [0, 0, 1, 1], [], []>} : vector<22x128xbf16>, vector<128x128xbf16>, vector<22x128xf32> -> vector<22x128xf32>
    %c1 = arith.constant 1 : index
    %c0_46 = arith.constant 0 : index
    %58 = vector.load %arg10[%c1, %c0_46] : memref<32x128xbf16, #tpu.memory_space<vmem>>, vector<22x128xbf16>
    %c128_47 = arith.constant 128 : index
    %c0_48 = arith.constant 0 : index
    %59 = vector.load %arg4[%c128_47, %c0_48] : memref<1408x128xbf16, #tpu.memory_space<vmem>>, vector<128x128xbf16>
    %cst_49 = arith.constant dense<0.000000e+00> : vector<22x128xf32>
    %60 = tpu.matmul %58, %59, %cst_49 {dimension_numbers = #tpu.dot_dimension_numbers<[1], [0], [0], [1], [0, 0, 1, 1], [], []>} : vector<22x128xbf16>, vector<128x128xbf16>, vector<22x128xf32> -> vector<22x128xf32>
    %61 = arith.addf %57, %60 : vector<22x128xf32>
    %c2 = arith.constant 2 : index
    %c0_50 = arith.constant 0 : index
    %62 = vector.load %arg10[%c2, %c0_50] : memref<32x128xbf16, #tpu.memory_space<vmem>>, vector<22x128xbf16>
    %c256_51 = arith.constant 256 : index
    %c0_52 = arith.constant 0 : index
    %63 = vector.load %arg4[%c256_51, %c0_52] : memref<1408x128xbf16, #tpu.memory_space<vmem>>, vector<128x128xbf16>
    %cst_53 = arith.constant dense<0.000000e+00> : vector<22x128xf32>
    %64 = tpu.matmul %62, %63, %cst_53 {dimension_numbers = #tpu.dot_dimension_numbers<[1], [0], [0], [1], [0, 0, 1, 1], [], []>} : vector<22x128xbf16>, vector<128x128xbf16>, vector<22x128xf32> -> vector<22x128xf32>
    %65 = arith.addf %61, %64 : vector<22x128xf32>
    %c3 = arith.constant 3 : index
    %c0_54 = arith.constant 0 : index
    %66 = vector.load %arg10[%c3, %c0_54] : memref<32x128xbf16, #tpu.memory_space<vmem>>, vector<22x128xbf16>
    %c384_55 = arith.constant 384 : index
    %c0_56 = arith.constant 0 : index
    %67 = vector.load %arg4[%c384_55, %c0_56] : memref<1408x128xbf16, #tpu.memory_space<vmem>>, vector<128x128xbf16>
    %cst_57 = arith.constant dense<0.000000e+00> : vector<22x128xf32>
    %68 = tpu.matmul %66, %67, %cst_57 {dimension_numbers = #tpu.dot_dimension_numbers<[1], [0], [0], [1], [0, 0, 1, 1], [], []>} : vector<22x128xbf16>, vector<128x128xbf16>, vector<22x128xf32> -> vector<22x128xf32>
    %69 = arith.addf %65, %68 : vector<22x128xf32>
    %c4 = arith.constant 4 : index
    %c0_58 = arith.constant 0 : index
    %70 = vector.load %arg10[%c4, %c0_58] : memref<32x128xbf16, #tpu.memory_space<vmem>>, vector<22x128xbf16>
    %c512_59 = arith.constant 512 : index
    %c0_60 = arith.constant 0 : index
    %71 = vector.load %arg4[%c512_59, %c0_60] : memref<1408x128xbf16, #tpu.memory_space<vmem>>, vector<128x128xbf16>
    %cst_61 = arith.constant dense<0.000000e+00> : vector<22x128xf32>
    %72 = tpu.matmul %70, %71, %cst_61 {dimension_numbers = #tpu.dot_dimension_numbers<[1], [0], [0], [1], [0, 0, 1, 1], [], []>} : vector<22x128xbf16>, vector<128x128xbf16>, vector<22x128xf32> -> vector<22x128xf32>
    %73 = arith.addf %69, %72 : vector<22x128xf32>
    %c5_62 = arith.constant 5 : index
    %c0_63 = arith.constant 0 : index
    %74 = vector.load %arg10[%c5_62, %c0_63] : memref<32x128xbf16, #tpu.memory_space<vmem>>, vector<22x128xbf16>
    %c640_64 = arith.constant 640 : index
    %c0_65 = arith.constant 0 : index
    %75 = vector.load %arg4[%c640_64, %c0_65] : memref<1408x128xbf16, #tpu.memory_space<vmem>>, vector<128x128xbf16>
    %cst_66 = arith.constant dense<0.000000e+00> : vector<22x128xf32>
    %76 = tpu.matmul %74, %75, %cst_66 {dimension_numbers = #tpu.dot_dimension_numbers<[1], [0], [0], [1], [0, 0, 1, 1], [], []>} : vector<22x128xbf16>, vector<128x128xbf16>, vector<22x128xf32> -> vector<22x128xf32>
    %77 = arith.addf %73, %76 : vector<22x128xf32>
    %c6_67 = arith.constant 6 : index
    %c0_68 = arith.constant 0 : index
    %78 = vector.load %arg10[%c6_67, %c0_68] : memref<32x128xbf16, #tpu.memory_space<vmem>>, vector<22x128xbf16>
    %c768_69 = arith.constant 768 : index
    %c0_70 = arith.constant 0 : index
    %79 = vector.load %arg4[%c768_69, %c0_70] : memref<1408x128xbf16, #tpu.memory_space<vmem>>, vector<128x128xbf16>
    %cst_71 = arith.constant dense<0.000000e+00> : vector<22x128xf32>
    %80 = tpu.matmul %78, %79, %cst_71 {dimension_numbers = #tpu.dot_dimension_numbers<[1], [0], [0], [1], [0, 0, 1, 1], [], []>} : vector<22x128xbf16>, vector<128x128xbf16>, vector<22x128xf32> -> vector<22x128xf32>
    %81 = arith.addf %77, %80 : vector<22x128xf32>
    %c7_72 = arith.constant 7 : index
    %c0_73 = arith.constant 0 : index
    %82 = vector.load %arg10[%c7_72, %c0_73] : memref<32x128xbf16, #tpu.memory_space<vmem>>, vector<22x128xbf16>
    %c896 = arith.constant 896 : index
    %c0_74 = arith.constant 0 : index
    %83 = vector.load %arg4[%c896, %c0_74] : memref<1408x128xbf16, #tpu.memory_space<vmem>>, vector<128x128xbf16>
    %cst_75 = arith.constant dense<0.000000e+00> : vector<22x128xf32>
    %84 = tpu.matmul %82, %83, %cst_75 {dimension_numbers = #tpu.dot_dimension_numbers<[1], [0], [0], [1], [0, 0, 1, 1], [], []>} : vector<22x128xbf16>, vector<128x128xbf16>, vector<22x128xf32> -> vector<22x128xf32>
    %85 = arith.addf %81, %84 : vector<22x128xf32>
    %c8_76 = arith.constant 8 : index
    %c0_77 = arith.constant 0 : index
    %86 = vector.load %arg10[%c8_76, %c0_77] : memref<32x128xbf16, #tpu.memory_space<vmem>>, vector<22x128xbf16>
    %c1024 = arith.constant 1024 : index
    %c0_78 = arith.constant 0 : index
    %87 = vector.load %arg4[%c1024, %c0_78] : memref<1408x128xbf16, #tpu.memory_space<vmem>>, vector<128x128xbf16>
    %cst_79 = arith.constant dense<0.000000e+00> : vector<22x128xf32>
    %88 = tpu.matmul %86, %87, %cst_79 {dimension_numbers = #tpu.dot_dimension_numbers<[1], [0], [0], [1], [0, 0, 1, 1], [], []>} : vector<22x128xbf16>, vector<128x128xbf16>, vector<22x128xf32> -> vector<22x128xf32>
    %89 = arith.addf %85, %88 : vector<22x128xf32>
    %c9_80 = arith.constant 9 : index
    %c0_81 = arith.constant 0 : index
    %90 = vector.load %arg10[%c9_80, %c0_81] : memref<32x128xbf16, #tpu.memory_space<vmem>>, vector<22x128xbf16>
    %c1152 = arith.constant 1152 : index
    %c0_82 = arith.constant 0 : index
    %91 = vector.load %arg4[%c1152, %c0_82] : memref<1408x128xbf16, #tpu.memory_space<vmem>>, vector<128x128xbf16>
    %cst_83 = arith.constant dense<0.000000e+00> : vector<22x128xf32>
    %92 = tpu.matmul %90, %91, %cst_83 {dimension_numbers = #tpu.dot_dimension_numbers<[1], [0], [0], [1], [0, 0, 1, 1], [], []>} : vector<22x128xbf16>, vector<128x128xbf16>, vector<22x128xf32> -> vector<22x128xf32>
    %93 = arith.addf %89, %92 : vector<22x128xf32>
    %c10_84 = arith.constant 10 : index
    %c0_85 = arith.constant 0 : index
    %94 = vector.load %arg10[%c10_84, %c0_85] : memref<32x128xbf16, #tpu.memory_space<vmem>>, vector<22x128xbf16>
    %c1280 = arith.constant 1280 : index
    %c0_86 = arith.constant 0 : index
    %95 = vector.load %arg4[%c1280, %c0_86] : memref<1408x128xbf16, #tpu.memory_space<vmem>>, vector<128x128xbf16>
    %cst_87 = arith.constant dense<0.000000e+00> : vector<22x128xf32>
    %96 = tpu.matmul %94, %95, %cst_87 {dimension_numbers = #tpu.dot_dimension_numbers<[1], [0], [0], [1], [0, 0, 1, 1], [], []>} : vector<22x128xbf16>, vector<128x128xbf16>, vector<22x128xf32> -> vector<22x128xf32>
    %97 = arith.addf %93, %96 : vector<22x128xf32>
    %c0_88 = arith.constant 0 : index
    %c0_89 = arith.constant 0 : index
    %98 = vector.load %arg7[%c0_88, %c0_89] : memref<1x128xf32, #tpu.memory_space<vmem>>, vector<1x128xf32>
    %99 = vector.broadcast %98 : vector<1x128xf32> to vector<22x128xf32>
    %100 = arith.addf %97, %99 : vector<22x128xf32>
    %cst_90 = arith.constant 0.000000e+00 : f32
    %101 = vector.broadcast %cst_90 : f32 to vector<22x128xf32>
    %102 = arith.maximumf %100, %101 : vector<22x128xf32>
    %c16_i32_91 = arith.constant 16 : i32
    %103 = arith.muli %arg1, %c16_i32_91 : i32
    %c-3_i32 = arith.constant -3 : i32
    %104 = arith.addi %103, %c-3_i32 : i32
    %105 = tpu.iota {dimensions = array<i32: 0>} : vector<22x1xi32>
    %106 = vector.broadcast %104 : i32 to vector<22x1xi32>
    %107 = arith.addi %106, %105 : vector<22x1xi32>
    %c0_i32_92 = arith.constant 0 : i32
    %108 = vector.broadcast %c0_i32_92 : i32 to vector<22x1xi32>
    %109 = arith.cmpi sge, %107, %108 : vector<22x1xi32>
    %c16_i32_93 = arith.constant 16 : i32
    %110 = vector.broadcast %c16_i32_93 : i32 to vector<22x1xi32>
    %111 = arith.cmpi slt, %107, %110 : vector<22x1xi32>
    %112 = arith.andi %109, %111 : vector<22x1xi1>
    %cst_94 = arith.constant 0.000000e+00 : f32
    %113 = vector.shape_cast %112 : vector<22x1xi1> to vector<22x1xi1>
    %114 = vector.broadcast %113 : vector<22x1xi1> to vector<22x128xi1>
    %115 = vector.broadcast %cst_94 : f32 to vector<22x128xf32>
    %116 = arith.select %114, %102, %115 : vector<22x128xi1>, vector<22x128xf32>
    %117 = arith.truncf %116 : vector<22x128xf32> to vector<22x128xbf16>
    %c0_95 = arith.constant 0 : index
    %c0_96 = arith.constant 0 : index
    %118 = vector.load %arg10[%c0_95, %c0_96] : memref<32x128xbf16, #tpu.memory_space<vmem>>, vector<22x128xbf16>
    tpu.vector_store %arg10[%c0_95, %c0_96], %117 {strides = array<i32>} : memref<32x128xbf16, #tpu.memory_space<vmem>>, vector<22x128xbf16>,
    %c0_97 = arith.constant 0 : index
    %c0_98 = arith.constant 0 : index
    %119 = vector.load %arg10[%c0_97, %c0_98] : memref<32x128xbf16, #tpu.memory_space<vmem>>, vector<16x128xbf16>
    %c0_99 = arith.constant 0 : index
    %c0_100 = arith.constant 0 : index
    %120 = vector.load %arg5[%c0_99, %c0_100] : memref<896x128xbf16, #tpu.memory_space<vmem>>, vector<128x128xbf16>
    %cst_101 = arith.constant dense<0.000000e+00> : vector<16x128xf32>
    %121 = tpu.matmul %119, %120, %cst_101 {dimension_numbers = #tpu.dot_dimension_numbers<[1], [0], [0], [1], [0, 0, 1, 1], [], []>} : vector<16x128xbf16>, vector<128x128xbf16>, vector<16x128xf32> -> vector<16x128xf32>
    %c1_102 = arith.constant 1 : index
    %c0_103 = arith.constant 0 : index
    %122 = vector.load %arg10[%c1_102, %c0_103] : memref<32x128xbf16, #tpu.memory_space<vmem>>, vector<16x128xbf16>
    %c128_104 = arith.constant 128 : index
    %c0_105 = arith.constant 0 : index
    %123 = vector.load %arg5[%c128_104, %c0_105] : memref<896x128xbf16, #tpu.memory_space<vmem>>, vector<128x128xbf16>
    %cst_106 = arith.constant dense<0.000000e+00> : vector<16x128xf32>
    %124 = tpu.matmul %122, %123, %cst_106 {dimension_numbers = #tpu.dot_dimension_numbers<[1], [0], [0], [1], [0, 0, 1, 1], [], []>} : vector<16x128xbf16>, vector<128x128xbf16>, vector<16x128xf32> -> vector<16x128xf32>
    %125 = arith.addf %121, %124 : vector<16x128xf32>
    %c2_107 = arith.constant 2 : index
    %c0_108 = arith.constant 0 : index
    %126 = vector.load %arg10[%c2_107, %c0_108] : memref<32x128xbf16, #tpu.memory_space<vmem>>, vector<16x128xbf16>
    %c256_109 = arith.constant 256 : index
    %c0_110 = arith.constant 0 : index
    %127 = vector.load %arg5[%c256_109, %c0_110] : memref<896x128xbf16, #tpu.memory_space<vmem>>, vector<128x128xbf16>
    %cst_111 = arith.constant dense<0.000000e+00> : vector<16x128xf32>
    %128 = tpu.matmul %126, %127, %cst_111 {dimension_numbers = #tpu.dot_dimension_numbers<[1], [0], [0], [1], [0, 0, 1, 1], [], []>} : vector<16x128xbf16>, vector<128x128xbf16>, vector<16x128xf32> -> vector<16x128xf32>
    %129 = arith.addf %125, %128 : vector<16x128xf32>
    %c3_112 = arith.constant 3 : index
    %c0_113 = arith.constant 0 : index
    %130 = vector.load %arg10[%c3_112, %c0_113] : memref<32x128xbf16, #tpu.memory_space<vmem>>, vector<16x128xbf16>
    %c384_114 = arith.constant 384 : index
    %c0_115 = arith.constant 0 : index
    %131 = vector.load %arg5[%c384_114, %c0_115] : memref<896x128xbf16, #tpu.memory_space<vmem>>, vector<128x128xbf16>
    %cst_116 = arith.constant dense<0.000000e+00> : vector<16x128xf32>
    %132 = tpu.matmul %130, %131, %cst_116 {dimension_numbers = #tpu.dot_dimension_numbers<[1], [0], [0], [1], [0, 0, 1, 1], [], []>} : vector<16x128xbf16>, vector<128x128xbf16>, vector<16x128xf32> -> vector<16x128xf32>
    %133 = arith.addf %129, %132 : vector<16x128xf32>
    %c4_117 = arith.constant 4 : index
    %c0_118 = arith.constant 0 : index
    %134 = vector.load %arg10[%c4_117, %c0_118] : memref<32x128xbf16, #tpu.memory_space<vmem>>, vector<16x128xbf16>
    %c512_119 = arith.constant 512 : index
    %c0_120 = arith.constant 0 : index
    %135 = vector.load %arg5[%c512_119, %c0_120] : memref<896x128xbf16, #tpu.memory_space<vmem>>, vector<128x128xbf16>
    %cst_121 = arith.constant dense<0.000000e+00> : vector<16x128xf32>
    %136 = tpu.matmul %134, %135, %cst_121 {dimension_numbers = #tpu.dot_dimension_numbers<[1], [0], [0], [1], [0, 0, 1, 1], [], []>} : vector<16x128xbf16>, vector<128x128xbf16>, vector<16x128xf32> -> vector<16x128xf32>
    %137 = arith.addf %133, %136 : vector<16x128xf32>
    %c5_122 = arith.constant 5 : index
    %c0_123 = arith.constant 0 : index
    %138 = vector.load %arg10[%c5_122, %c0_123] : memref<32x128xbf16, #tpu.memory_space<vmem>>, vector<16x128xbf16>
    %c640_124 = arith.constant 640 : index
    %c0_125 = arith.constant 0 : index
    %139 = vector.load %arg5[%c640_124, %c0_125] : memref<896x128xbf16, #tpu.memory_space<vmem>>, vector<128x128xbf16>
    %cst_126 = arith.constant dense<0.000000e+00> : vector<16x128xf32>
    %140 = tpu.matmul %138, %139, %cst_126 {dimension_numbers = #tpu.dot_dimension_numbers<[1], [0], [0], [1], [0, 0, 1, 1], [], []>} : vector<16x128xbf16>, vector<128x128xbf16>, vector<16x128xf32> -> vector<16x128xf32>
    %141 = arith.addf %137, %140 : vector<16x128xf32>
    %c6_127 = arith.constant 6 : index
    %c0_128 = arith.constant 0 : index
    %142 = vector.load %arg10[%c6_127, %c0_128] : memref<32x128xbf16, #tpu.memory_space<vmem>>, vector<16x128xbf16>
    %c768_129 = arith.constant 768 : index
    %c0_130 = arith.constant 0 : index
    %143 = vector.load %arg5[%c768_129, %c0_130] : memref<896x128xbf16, #tpu.memory_space<vmem>>, vector<128x128xbf16>
    %cst_131 = arith.constant dense<0.000000e+00> : vector<16x128xf32>
    %144 = tpu.matmul %142, %143, %cst_131 {dimension_numbers = #tpu.dot_dimension_numbers<[1], [0], [0], [1], [0, 0, 1, 1], [], []>} : vector<16x128xbf16>, vector<128x128xbf16>, vector<16x128xf32> -> vector<16x128xf32>
    %145 = arith.addf %141, %144 : vector<16x128xf32>
    %c0_132 = arith.constant 0 : index
    %c0_133 = arith.constant 0 : index
    %146 = vector.load %arg8[%c0_132, %c0_133] : memref<1x128xf32, #tpu.memory_space<vmem>>, vector<1x128xf32>
    %147 = vector.broadcast %146 : vector<1x128xf32> to vector<16x128xf32>
    %148 = arith.addf %145, %147 : vector<16x128xf32>
    %c0_134 = arith.constant 0 : index
    %c0_135 = arith.constant 0 : index
    %c16 = arith.constant 16 : index
    %c0_136 = arith.constant 0 : index
    %149 = vector.load %arg2[%c0_134, %c0_135, %c16, %c0_136] : memref<1x1x48x128xbf16, #tpu.memory_space<vmem>>, vector<1x1x16x128xbf16>
    %150 = vector.shape_cast %149 : vector<1x1x16x128xbf16> to vector<16x128xbf16>
    %151 = arith.extf %150 : vector<16x128xbf16> to vector<16x128xf32>
    %152 = arith.addf %148, %151 : vector<16x128xf32>
    %cst_137 = arith.constant 0.000000e+00 : f32
    %153 = vector.broadcast %cst_137 : f32 to vector<16x128xf32>
    %154 = arith.maximumf %152, %153 : vector<16x128xf32>
    %c0_138 = arith.constant 0 : index
    %c0_139 = arith.constant 0 : index
    %c0_140 = arith.constant 0 : index
    %155 = vector.load %arg9[%c0_138, %c0_139, %c0_140] : memref<1x16x128xf32, #tpu.memory_space<vmem>>, vector<1x16x128xf32>
    %156 = vector.shape_cast %155 : vector<1x16x128xf32> to vector<16x128xf32>
    %157 = vector.shape_cast %154 : vector<16x128xf32> to vector<1x16x128xf32>
    tpu.vector_store %arg9[%c0_138, %c0_139, %c0_140], %157 {strides = array<i32>} : memref<1x16x128xf32, #tpu.memory_space<vmem>>, vector<1x16x128xf32>,
    return
  }
  func.func @transform_0(%arg0: i32, %arg1: i32) -> (i32, i32, i32, i32) {
    %c0_i32 = arith.constant 0 : i32
    %c0_i32_0 = arith.constant 0 : i32
    %c0_i32_1 = arith.constant 0 : i32
    return %arg0, %arg1, %c0_i32, %c0_i32_0 : i32, i32, i32, i32
  }
  func.func @transform_1(%arg0: i32, %arg1: i32) -> (i32, i32) {
    %c0_i32 = arith.constant 0 : i32
    %c0_i32_0 = arith.constant 0 : i32
    %c0_i32_1 = arith.constant 0 : i32
    return %c0_i32, %c0_i32_0 : i32, i32
  }
  func.func @transform_2(%arg0: i32, %arg1: i32) -> (i32, i32) {
    %c0_i32 = arith.constant 0 : i32
    %c0_i32_0 = arith.constant 0 : i32
    %c0_i32_1 = arith.constant 0 : i32
    return %c0_i32, %c0_i32_0 : i32, i32
  }
  func.func @transform_3(%arg0: i32, %arg1: i32) -> (i32, i32) {
    %c0_i32 = arith.constant 0 : i32
    %c0_i32_0 = arith.constant 0 : i32
    %c0_i32_1 = arith.constant 0 : i32
    return %c0_i32, %c0_i32_0 : i32, i32
  }
  func.func @transform_4(%arg0: i32, %arg1: i32) -> (i32, i32) {
    %c0_i32 = arith.constant 0 : i32
    %c0_i32_0 = arith.constant 0 : i32
    %c0_i32_1 = arith.constant 0 : i32
    return %c0_i32, %c0_i32_0 : i32, i32
  }
  func.func @transform_5(%arg0: i32, %arg1: i32) -> (i32, i32) {
    %c0_i32 = arith.constant 0 : i32
    %c0_i32_0 = arith.constant 0 : i32
    %c0_i32_1 = arith.constant 0 : i32
    return %c0_i32, %c0_i32_0 : i32, i32
  }
  func.func @transform_6(%arg0: i32, %arg1: i32) -> (i32, i32) {
    %c0_i32 = arith.constant 0 : i32
    %c0_i32_0 = arith.constant 0 : i32
    %c0_i32_1 = arith.constant 0 : i32
    return %c0_i32, %c0_i32_0 : i32, i32
  }
  func.func @transform_7(%arg0: i32, %arg1: i32) -> (i32, i32, i32) {
    %c0_i32 = arith.constant 0 : i32
    %c0_i32_0 = arith.constant 0 : i32
    return %arg0, %arg1, %c0_i32 : i32, i32, i32
  }
}

module attributes {stable_mosaic.version = 11 : i64} {
  func.func @bottleneck_kernel(%arg0: i32, %arg1: i32, %arg2: memref<1x1x48x128xbf16, #tpu.memory_space<vmem>>, %arg3: memref<896x128xbf16, #tpu.memory_space<vmem>>, %arg4: memref<1408x128xbf16, #tpu.memory_space<vmem>>, %arg5: memref<896x128xbf16, #tpu.memory_space<vmem>>, %arg6: memref<1x128xf32, #tpu.memory_space<vmem>>, %arg7: memref<1x128xf32, #tpu.memory_space<vmem>>, %arg8: memref<1x128xf32, #tpu.memory_space<vmem>>, %arg9: memref<1x16x128xf32, #tpu.memory_space<vmem>>, %arg10: memref<32x128xbf16, #tpu.memory_space<vmem>>) attributes {dimension_semantics = [#tpu.dimension_semantics<parallel>, #tpu.dimension_semantics<parallel>], iteration_bounds = array<i64: 2, 1>, scalar_prefetch = 0 : i64, scratch_operands = 1 : i64, tpu.core_type = #tpu.core_type<tc>, window_params = [{transform_indices = @transform_0, window_bounds = array<i64: 1, 1, 48, 128>}, {pipeline_mode = #tpu.pipeline_mode<synchronous>, transform_indices = @transform_1, window_bounds = array<i64: 896, 128>}, {pipeline_mode = #tpu.pipeline_mode<synchronous>, transform_indices = @transform_2, window_bounds = array<i64: 1408, 128>}, {pipeline_mode = #tpu.pipeline_mode<synchronous>, transform_indices = @transform_3, window_bounds = array<i64: 896, 128>}, {pipeline_mode = #tpu.pipeline_mode<synchronous>, transform_indices = @transform_4, window_bounds = array<i64: 1, 128>}, {pipeline_mode = #tpu.pipeline_mode<synchronous>, transform_indices = @transform_5, window_bounds = array<i64: 1, 128>}, {pipeline_mode = #tpu.pipeline_mode<synchronous>, transform_indices = @transform_6, window_bounds = array<i64: 1, 128>}, {transform_indices = @transform_7, window_bounds = array<i64: 1, 16, 128>}]} {
    %c0 = arith.constant 0 : index
    %c0_0 = arith.constant 0 : index
    %c5 = arith.constant 5 : index
    %c0_1 = arith.constant 0 : index
    %0 = vector.load %arg2[%c0, %c0_0, %c5, %c0_1] : memref<1x1x48x128xbf16, #tpu.memory_space<vmem>>, vector<1x1x32x128xbf16>
    %1 = vector.shape_cast %0 : vector<1x1x32x128xbf16> to vector<32x128xbf16>
    %c0_2 = arith.constant 0 : index
    %c0_3 = arith.constant 0 : index
    %2 = vector.load %arg3[%c0_2, %c0_3] : memref<896x128xbf16, #tpu.memory_space<vmem>>, vector<128x128xbf16>
    %cst = arith.constant dense<0.000000e+00> : vector<32x128xf32>
    %3 = tpu.matmul %1, %2, %cst {dimension_numbers = #tpu.dot_dimension_numbers<[1], [0], [0], [1], [0, 0, 1, 1], [], []>} : vector<32x128xbf16>, vector<128x128xbf16>, vector<32x128xf32> -> vector<32x128xf32>
    %c0_4 = arith.constant 0 : index
    %c0_5 = arith.constant 0 : index
    %c6 = arith.constant 6 : index
    %c0_6 = arith.constant 0 : index
    %4 = vector.load %arg2[%c0_4, %c0_5, %c6, %c0_6] : memref<1x1x48x128xbf16, #tpu.memory_space<vmem>>, vector<1x1x32x128xbf16>
    %5 = vector.shape_cast %4 : vector<1x1x32x128xbf16> to vector<32x128xbf16>
    %c128 = arith.constant 128 : index
    %c0_7 = arith.constant 0 : index
    %6 = vector.load %arg3[%c128, %c0_7] : memref<896x128xbf16, #tpu.memory_space<vmem>>, vector<128x128xbf16>
    %cst_8 = arith.constant dense<0.000000e+00> : vector<32x128xf32>
    %7 = tpu.matmul %5, %6, %cst_8 {dimension_numbers = #tpu.dot_dimension_numbers<[1], [0], [0], [1], [0, 0, 1, 1], [], []>} : vector<32x128xbf16>, vector<128x128xbf16>, vector<32x128xf32> -> vector<32x128xf32>
    %8 = arith.addf %3, %7 : vector<32x128xf32>
    %c0_9 = arith.constant 0 : index
    %c0_10 = arith.constant 0 : index
    %c7 = arith.constant 7 : index
    %c0_11 = arith.constant 0 : index
    %9 = vector.load %arg2[%c0_9, %c0_10, %c7, %c0_11] : memref<1x1x48x128xbf16, #tpu.memory_space<vmem>>, vector<1x1x32x128xbf16>
    %10 = vector.shape_cast %9 : vector<1x1x32x128xbf16> to vector<32x128xbf16>
    %c256 = arith.constant 256 : index
    %c0_12 = arith.constant 0 : index
    %11 = vector.load %arg3[%c256, %c0_12] : memref<896x128xbf16, #tpu.memory_space<vmem>>, vector<128x128xbf16>
    %cst_13 = arith.constant dense<0.000000e+00> : vector<32x128xf32>
    %12 = tpu.matmul %10, %11, %cst_13 {dimension_numbers = #tpu.dot_dimension_numbers<[1], [0], [0], [1], [0, 0, 1, 1], [], []>} : vector<32x128xbf16>, vector<128x128xbf16>, vector<32x128xf32> -> vector<32x128xf32>
    %13 = arith.addf %8, %12 : vector<32x128xf32>
    %c0_14 = arith.constant 0 : index
    %c0_15 = arith.constant 0 : index
    %c8 = arith.constant 8 : index
    %c0_16 = arith.constant 0 : index
    %14 = vector.load %arg2[%c0_14, %c0_15, %c8, %c0_16] : memref<1x1x48x128xbf16, #tpu.memory_space<vmem>>, vector<1x1x32x128xbf16>
    %15 = vector.shape_cast %14 : vector<1x1x32x128xbf16> to vector<32x128xbf16>
    %c384 = arith.constant 384 : index
    %c0_17 = arith.constant 0 : index
    %16 = vector.load %arg3[%c384, %c0_17] : memref<896x128xbf16, #tpu.memory_space<vmem>>, vector<128x128xbf16>
    %cst_18 = arith.constant dense<0.000000e+00> : vector<32x128xf32>
    %17 = tpu.matmul %15, %16, %cst_18 {dimension_numbers = #tpu.dot_dimension_numbers<[1], [0], [0], [1], [0, 0, 1, 1], [], []>} : vector<32x128xbf16>, vector<128x128xbf16>, vector<32x128xf32> -> vector<32x128xf32>
    %18 = arith.addf %13, %17 : vector<32x128xf32>
    %c0_19 = arith.constant 0 : index
    %c0_20 = arith.constant 0 : index
    %c9 = arith.constant 9 : index
    %c0_21 = arith.constant 0 : index
    %19 = vector.load %arg2[%c0_19, %c0_20, %c9, %c0_21] : memref<1x1x48x128xbf16, #tpu.memory_space<vmem>>, vector<1x1x32x128xbf16>
    %20 = vector.shape_cast %19 : vector<1x1x32x128xbf16> to vector<32x128xbf16>
    %c512 = arith.constant 512 : index
    %c0_22 = arith.constant 0 : index
    %21 = vector.load %arg3[%c512, %c0_22] : memref<896x128xbf16, #tpu.memory_space<vmem>>, vector<128x128xbf16>
    %cst_23 = arith.constant dense<0.000000e+00> : vector<32x128xf32>
    %22 = tpu.matmul %20, %21, %cst_23 {dimension_numbers = #tpu.dot_dimension_numbers<[1], [0], [0], [1], [0, 0, 1, 1], [], []>} : vector<32x128xbf16>, vector<128x128xbf16>, vector<32x128xf32> -> vector<32x128xf32>
    %23 = arith.addf %18, %22 : vector<32x128xf32>
    %c0_24 = arith.constant 0 : index
    %c0_25 = arith.constant 0 : index
    %c10 = arith.constant 10 : index
    %c0_26 = arith.constant 0 : index
    %24 = vector.load %arg2[%c0_24, %c0_25, %c10, %c0_26] : memref<1x1x48x128xbf16, #tpu.memory_space<vmem>>, vector<1x1x32x128xbf16>
    %25 = vector.shape_cast %24 : vector<1x1x32x128xbf16> to vector<32x128xbf16>
    %c640 = arith.constant 640 : index
    %c0_27 = arith.constant 0 : index
    %26 = vector.load %arg3[%c640, %c0_27] : memref<896x128xbf16, #tpu.memory_space<vmem>>, vector<128x128xbf16>
    %cst_28 = arith.constant dense<0.000000e+00> : vector<32x128xf32>
    %27 = tpu.matmul %25, %26, %cst_28 {dimension_numbers = #tpu.dot_dimension_numbers<[1], [0], [0], [1], [0, 0, 1, 1], [], []>} : vector<32x128xbf16>, vector<128x128xbf16>, vector<32x128xf32> -> vector<32x128xf32>
    %28 = arith.addf %23, %27 : vector<32x128xf32>
    %c0_29 = arith.constant 0 : index
    %c0_30 = arith.constant 0 : index
    %c11 = arith.constant 11 : index
    %c0_31 = arith.constant 0 : index
    %29 = vector.load %arg2[%c0_29, %c0_30, %c11, %c0_31] : memref<1x1x48x128xbf16, #tpu.memory_space<vmem>>, vector<1x1x32x128xbf16>
    %30 = vector.shape_cast %29 : vector<1x1x32x128xbf16> to vector<32x128xbf16>
    %c768 = arith.constant 768 : index
    %c0_32 = arith.constant 0 : index
    %31 = vector.load %arg3[%c768, %c0_32] : memref<896x128xbf16, #tpu.memory_space<vmem>>, vector<128x128xbf16>
    %cst_33 = arith.constant dense<0.000000e+00> : vector<32x128xf32>
    %32 = tpu.matmul %30, %31, %cst_33 {dimension_numbers = #tpu.dot_dimension_numbers<[1], [0], [0], [1], [0, 0, 1, 1], [], []>} : vector<32x128xbf16>, vector<128x128xbf16>, vector<32x128xf32> -> vector<32x128xf32>
    %33 = arith.addf %28, %32 : vector<32x128xf32>
    %c0_34 = arith.constant 0 : index
    %c0_35 = arith.constant 0 : index
    %34 = vector.load %arg6[%c0_34, %c0_35] : memref<1x128xf32, #tpu.memory_space<vmem>>, vector<1x128xf32>
    %35 = vector.broadcast %34 : vector<1x128xf32> to vector<32x128xf32>
    %36 = arith.addf %33, %35 : vector<32x128xf32>
    %cst_36 = arith.constant 0.000000e+00 : f32
    %37 = vector.broadcast %cst_36 : f32 to vector<32x128xf32>
    %38 = arith.maximumf %36, %37 : vector<32x128xf32>
    %c16_i32 = arith.constant 16 : i32
    %39 = arith.muli %arg1, %c16_i32 : i32
    %c-8_i32 = arith.constant -8 : i32
    %40 = arith.addi %39, %c-8_i32 : i32
    %41 = tpu.iota {dimensions = array<i32: 0>} : vector<32x1xi32>
    %42 = vector.broadcast %40 : i32 to vector<32x1xi32>
    %43 = arith.addi %42, %41 : vector<32x1xi32>
    %c0_i32 = arith.constant 0 : i32
    %44 = vector.broadcast %c0_i32 : i32 to vector<32x1xi32>
    %45 = arith.cmpi sge, %43, %44 : vector<32x1xi32>
    %c16_i32_37 = arith.constant 16 : i32
    %46 = vector.broadcast %c16_i32_37 : i32 to vector<32x1xi32>
    %47 = arith.cmpi slt, %43, %46 : vector<32x1xi32>
    %48 = arith.andi %45, %47 : vector<32x1xi1>
    %cst_38 = arith.constant 0.000000e+00 : f32
    %49 = vector.shape_cast %48 : vector<32x1xi1> to vector<32x1xi1>
    %50 = vector.broadcast %49 : vector<32x1xi1> to vector<32x128xi1>
    %51 = vector.broadcast %cst_38 : f32 to vector<32x128xf32>
    %52 = arith.select %50, %38, %51 : vector<32x128xi1>, vector<32x128xf32>
    %53 = arith.truncf %52 : vector<32x128xf32> to vector<32x128xbf16>
    %c0_39 = arith.constant 0 : index
    %c0_40 = arith.constant 0 : index
    %54 = vector.load %arg10[%c0_39, %c0_40] : memref<32x128xbf16, #tpu.memory_space<vmem>>, vector<32x128xbf16>
    tpu.vector_store %arg10[%c0_39, %c0_40], %53 {strides = array<i32>} : memref<32x128xbf16, #tpu.memory_space<vmem>>, vector<32x128xbf16>,
    %c0_41 = arith.constant 0 : index
    %c0_42 = arith.constant 0 : index
    %55 = vector.load %arg10[%c0_41, %c0_42] : memref<32x128xbf16, #tpu.memory_space<vmem>>, vector<22x128xbf16>
    %c0_43 = arith.constant 0 : index
    %c0_44 = arith.constant 0 : index
    %56 = vector.load %arg4[%c0_43, %c0_44] : memref<1408x128xbf16, #tpu.memory_space<vmem>>, vector<128x128xbf16>
    %cst_45 = arith.constant dense<0.000000e+00> : vector<22x128xf32>
    %57 = tpu.matmul %55, %56, %cst_45 {dimension_numbers = #tpu.dot_dimension_numbers<[1], [0], [0], [1], [0, 0, 1, 1], [], []>} : vector<22x128xbf16>, vector<128x128xbf16>, vector<22x128xf32> -> vector<22x128xf32>
    %c1 = arith.constant 1 : index
    %c0_46 = arith.constant 0 : index
    %58 = vector.load %arg10[%c1, %c0_46] : memref<32x128xbf16, #tpu.memory_space<vmem>>, vector<22x128xbf16>
    %c128_47 = arith.constant 128 : index
    %c0_48 = arith.constant 0 : index
    %59 = vector.load %arg4[%c128_47, %c0_48] : memref<1408x128xbf16, #tpu.memory_space<vmem>>, vector<128x128xbf16>
    %cst_49 = arith.constant dense<0.000000e+00> : vector<22x128xf32>
    %60 = tpu.matmul %58, %59, %cst_49 {dimension_numbers = #tpu.dot_dimension_numbers<[1], [0], [0], [1], [0, 0, 1, 1], [], []>} : vector<22x128xbf16>, vector<128x128xbf16>, vector<22x128xf32> -> vector<22x128xf32>
    %61 = arith.addf %57, %60 : vector<22x128xf32>
    %c2 = arith.constant 2 : index
    %c0_50 = arith.constant 0 : index
    %62 = vector.load %arg10[%c2, %c0_50] : memref<32x128xbf16, #tpu.memory_space<vmem>>, vector<22x128xbf16>
    %c256_51 = arith.constant 256 : index
    %c0_52 = arith.constant 0 : index
    %63 = vector.load %arg4[%c256_51, %c0_52] : memref<1408x128xbf16, #tpu.memory_space<vmem>>, vector<128x128xbf16>
    %cst_53 = arith.constant dense<0.000000e+00> : vector<22x128xf32>
    %64 = tpu.matmul %62, %63, %cst_53 {dimension_numbers = #tpu.dot_dimension_numbers<[1], [0], [0], [1], [0, 0, 1, 1], [], []>} : vector<22x128xbf16>, vector<128x128xbf16>, vector<22x128xf32> -> vector<22x128xf32>
    %65 = arith.addf %61, %64 : vector<22x128xf32>
    %c3 = arith.constant 3 : index
    %c0_54 = arith.constant 0 : index
    %66 = vector.load %arg10[%c3, %c0_54] : memref<32x128xbf16, #tpu.memory_space<vmem>>, vector<22x128xbf16>
    %c384_55 = arith.constant 384 : index
    %c0_56 = arith.constant 0 : index
    %67 = vector.load %arg4[%c384_55, %c0_56] : memref<1408x128xbf16, #tpu.memory_space<vmem>>, vector<128x128xbf16>
    %cst_57 = arith.constant dense<0.000000e+00> : vector<22x128xf32>
    %68 = tpu.matmul %66, %67, %cst_57 {dimension_numbers = #tpu.dot_dimension_numbers<[1], [0], [0], [1], [0, 0, 1, 1], [], []>} : vector<22x128xbf16>, vector<128x128xbf16>, vector<22x128xf32> -> vector<22x128xf32>
    %69 = arith.addf %65, %68 : vector<22x128xf32>
    %c4 = arith.constant 4 : index
    %c0_58 = arith.constant 0 : index
    %70 = vector.load %arg10[%c4, %c0_58] : memref<32x128xbf16, #tpu.memory_space<vmem>>, vector<22x128xbf16>
    %c512_59 = arith.constant 512 : index
    %c0_60 = arith.constant 0 : index
    %71 = vector.load %arg4[%c512_59, %c0_60] : memref<1408x128xbf16, #tpu.memory_space<vmem>>, vector<128x128xbf16>
    %cst_61 = arith.constant dense<0.000000e+00> : vector<22x128xf32>
    %72 = tpu.matmul %70, %71, %cst_61 {dimension_numbers = #tpu.dot_dimension_numbers<[1], [0], [0], [1], [0, 0, 1, 1], [], []>} : vector<22x128xbf16>, vector<128x128xbf16>, vector<22x128xf32> -> vector<22x128xf32>
    %73 = arith.addf %69, %72 : vector<22x128xf32>
    %c5_62 = arith.constant 5 : index
    %c0_63 = arith.constant 0 : index
    %74 = vector.load %arg10[%c5_62, %c0_63] : memref<32x128xbf16, #tpu.memory_space<vmem>>, vector<22x128xbf16>
    %c640_64 = arith.constant 640 : index
    %c0_65 = arith.constant 0 : index
    %75 = vector.load %arg4[%c640_64, %c0_65] : memref<1408x128xbf16, #tpu.memory_space<vmem>>, vector<128x128xbf16>
    %cst_66 = arith.constant dense<0.000000e+00> : vector<22x128xf32>
    %76 = tpu.matmul %74, %75, %cst_66 {dimension_numbers = #tpu.dot_dimension_numbers<[1], [0], [0], [1], [0, 0, 1, 1], [], []>} : vector<22x128xbf16>, vector<128x128xbf16>, vector<22x128xf32> -> vector<22x128xf32>
    %77 = arith.addf %73, %76 : vector<22x128xf32>
    %c6_67 = arith.constant 6 : index
    %c0_68 = arith.constant 0 : index
    %78 = vector.load %arg10[%c6_67, %c0_68] : memref<32x128xbf16, #tpu.memory_space<vmem>>, vector<22x128xbf16>
    %c768_69 = arith.constant 768 : index
    %c0_70 = arith.constant 0 : index
    %79 = vector.load %arg4[%c768_69, %c0_70] : memref<1408x128xbf16, #tpu.memory_space<vmem>>, vector<128x128xbf16>
    %cst_71 = arith.constant dense<0.000000e+00> : vector<22x128xf32>
    %80 = tpu.matmul %78, %79, %cst_71 {dimension_numbers = #tpu.dot_dimension_numbers<[1], [0], [0], [1], [0, 0, 1, 1], [], []>} : vector<22x128xbf16>, vector<128x128xbf16>, vector<22x128xf32> -> vector<22x128xf32>
    %81 = arith.addf %77, %80 : vector<22x128xf32>
    %c7_72 = arith.constant 7 : index
    %c0_73 = arith.constant 0 : index
    %82 = vector.load %arg10[%c7_72, %c0_73] : memref<32x128xbf16, #tpu.memory_space<vmem>>, vector<22x128xbf16>
    %c896 = arith.constant 896 : index
    %c0_74 = arith.constant 0 : index
    %83 = vector.load %arg4[%c896, %c0_74] : memref<1408x128xbf16, #tpu.memory_space<vmem>>, vector<128x128xbf16>
    %cst_75 = arith.constant dense<0.000000e+00> : vector<22x128xf32>
    %84 = tpu.matmul %82, %83, %cst_75 {dimension_numbers = #tpu.dot_dimension_numbers<[1], [0], [0], [1], [0, 0, 1, 1], [], []>} : vector<22x128xbf16>, vector<128x128xbf16>, vector<22x128xf32> -> vector<22x128xf32>
    %85 = arith.addf %81, %84 : vector<22x128xf32>
    %c8_76 = arith.constant 8 : index
    %c0_77 = arith.constant 0 : index
    %86 = vector.load %arg10[%c8_76, %c0_77] : memref<32x128xbf16, #tpu.memory_space<vmem>>, vector<22x128xbf16>
    %c1024 = arith.constant 1024 : index
    %c0_78 = arith.constant 0 : index
    %87 = vector.load %arg4[%c1024, %c0_78] : memref<1408x128xbf16, #tpu.memory_space<vmem>>, vector<128x128xbf16>
    %cst_79 = arith.constant dense<0.000000e+00> : vector<22x128xf32>
    %88 = tpu.matmul %86, %87, %cst_79 {dimension_numbers = #tpu.dot_dimension_numbers<[1], [0], [0], [1], [0, 0, 1, 1], [], []>} : vector<22x128xbf16>, vector<128x128xbf16>, vector<22x128xf32> -> vector<22x128xf32>
    %89 = arith.addf %85, %88 : vector<22x128xf32>
    %c9_80 = arith.constant 9 : index
    %c0_81 = arith.constant 0 : index
    %90 = vector.load %arg10[%c9_80, %c0_81] : memref<32x128xbf16, #tpu.memory_space<vmem>>, vector<22x128xbf16>
    %c1152 = arith.constant 1152 : index
    %c0_82 = arith.constant 0 : index
    %91 = vector.load %arg4[%c1152, %c0_82] : memref<1408x128xbf16, #tpu.memory_space<vmem>>, vector<128x128xbf16>
    %cst_83 = arith.constant dense<0.000000e+00> : vector<22x128xf32>
    %92 = tpu.matmul %90, %91, %cst_83 {dimension_numbers = #tpu.dot_dimension_numbers<[1], [0], [0], [1], [0, 0, 1, 1], [], []>} : vector<22x128xbf16>, vector<128x128xbf16>, vector<22x128xf32> -> vector<22x128xf32>
    %93 = arith.addf %89, %92 : vector<22x128xf32>
    %c10_84 = arith.constant 10 : index
    %c0_85 = arith.constant 0 : index
    %94 = vector.load %arg10[%c10_84, %c0_85] : memref<32x128xbf16, #tpu.memory_space<vmem>>, vector<22x128xbf16>
    %c1280 = arith.constant 1280 : index
    %c0_86 = arith.constant 0 : index
    %95 = vector.load %arg4[%c1280, %c0_86] : memref<1408x128xbf16, #tpu.memory_space<vmem>>, vector<128x128xbf16>
    %cst_87 = arith.constant dense<0.000000e+00> : vector<22x128xf32>
    %96 = tpu.matmul %94, %95, %cst_87 {dimension_numbers = #tpu.dot_dimension_numbers<[1], [0], [0], [1], [0, 0, 1, 1], [], []>} : vector<22x128xbf16>, vector<128x128xbf16>, vector<22x128xf32> -> vector<22x128xf32>
    %97 = arith.addf %93, %96 : vector<22x128xf32>
    %c0_88 = arith.constant 0 : index
    %c0_89 = arith.constant 0 : index
    %98 = vector.load %arg7[%c0_88, %c0_89] : memref<1x128xf32, #tpu.memory_space<vmem>>, vector<1x128xf32>
    %99 = vector.broadcast %98 : vector<1x128xf32> to vector<22x128xf32>
    %100 = arith.addf %97, %99 : vector<22x128xf32>
    %cst_90 = arith.constant 0.000000e+00 : f32
    %101 = vector.broadcast %cst_90 : f32 to vector<22x128xf32>
    %102 = arith.maximumf %100, %101 : vector<22x128xf32>
    %c16_i32_91 = arith.constant 16 : i32
    %103 = arith.muli %arg1, %c16_i32_91 : i32
    %c-3_i32 = arith.constant -3 : i32
    %104 = arith.addi %103, %c-3_i32 : i32
    %105 = tpu.iota {dimensions = array<i32: 0>} : vector<22x1xi32>
    %106 = vector.broadcast %104 : i32 to vector<22x1xi32>
    %107 = arith.addi %106, %105 : vector<22x1xi32>
    %c0_i32_92 = arith.constant 0 : i32
    %108 = vector.broadcast %c0_i32_92 : i32 to vector<22x1xi32>
    %109 = arith.cmpi sge, %107, %108 : vector<22x1xi32>
    %c16_i32_93 = arith.constant 16 : i32
    %110 = vector.broadcast %c16_i32_93 : i32 to vector<22x1xi32>
    %111 = arith.cmpi slt, %107, %110 : vector<22x1xi32>
    %112 = arith.andi %109, %111 : vector<22x1xi1>
    %cst_94 = arith.constant 0.000000e+00 : f32
    %113 = vector.shape_cast %112 : vector<22x1xi1> to vector<22x1xi1>
    %114 = vector.broadcast %113 : vector<22x1xi1> to vector<22x128xi1>
    %115 = vector.broadcast %cst_94 : f32 to vector<22x128xf32>
    %116 = arith.select %114, %102, %115 : vector<22x128xi1>, vector<22x128xf32>
    %117 = arith.truncf %116 : vector<22x128xf32> to vector<22x128xbf16>
    %c0_95 = arith.constant 0 : index
    %c0_96 = arith.constant 0 : index
    %118 = vector.load %arg10[%c0_95, %c0_96] : memref<32x128xbf16, #tpu.memory_space<vmem>>, vector<22x128xbf16>
    tpu.vector_store %arg10[%c0_95, %c0_96], %117 {strides = array<i32>} : memref<32x128xbf16, #tpu.memory_space<vmem>>, vector<22x128xbf16>,
    %c0_97 = arith.constant 0 : index
    %c0_98 = arith.constant 0 : index
    %119 = vector.load %arg10[%c0_97, %c0_98] : memref<32x128xbf16, #tpu.memory_space<vmem>>, vector<16x128xbf16>
    %c0_99 = arith.constant 0 : index
    %c0_100 = arith.constant 0 : index
    %120 = vector.load %arg5[%c0_99, %c0_100] : memref<896x128xbf16, #tpu.memory_space<vmem>>, vector<128x128xbf16>
    %cst_101 = arith.constant dense<0.000000e+00> : vector<16x128xf32>
    %121 = tpu.matmul %119, %120, %cst_101 {dimension_numbers = #tpu.dot_dimension_numbers<[1], [0], [0], [1], [0, 0, 1, 1], [], []>} : vector<16x128xbf16>, vector<128x128xbf16>, vector<16x128xf32> -> vector<16x128xf32>
    %c1_102 = arith.constant 1 : index
    %c0_103 = arith.constant 0 : index
    %122 = vector.load %arg10[%c1_102, %c0_103] : memref<32x128xbf16, #tpu.memory_space<vmem>>, vector<16x128xbf16>
    %c128_104 = arith.constant 128 : index
    %c0_105 = arith.constant 0 : index
    %123 = vector.load %arg5[%c128_104, %c0_105] : memref<896x128xbf16, #tpu.memory_space<vmem>>, vector<128x128xbf16>
    %cst_106 = arith.constant dense<0.000000e+00> : vector<16x128xf32>
    %124 = tpu.matmul %122, %123, %cst_106 {dimension_numbers = #tpu.dot_dimension_numbers<[1], [0], [0], [1], [0, 0, 1, 1], [], []>} : vector<16x128xbf16>, vector<128x128xbf16>, vector<16x128xf32> -> vector<16x128xf32>
    %125 = arith.addf %121, %124 : vector<16x128xf32>
    %c2_107 = arith.constant 2 : index
    %c0_108 = arith.constant 0 : index
    %126 = vector.load %arg10[%c2_107, %c0_108] : memref<32x128xbf16, #tpu.memory_space<vmem>>, vector<16x128xbf16>
    %c256_109 = arith.constant 256 : index
    %c0_110 = arith.constant 0 : index
    %127 = vector.load %arg5[%c256_109, %c0_110] : memref<896x128xbf16, #tpu.memory_space<vmem>>, vector<128x128xbf16>
    %cst_111 = arith.constant dense<0.000000e+00> : vector<16x128xf32>
    %128 = tpu.matmul %126, %127, %cst_111 {dimension_numbers = #tpu.dot_dimension_numbers<[1], [0], [0], [1], [0, 0, 1, 1], [], []>} : vector<16x128xbf16>, vector<128x128xbf16>, vector<16x128xf32> -> vector<16x128xf32>
    %129 = arith.addf %125, %128 : vector<16x128xf32>
    %c3_112 = arith.constant 3 : index
    %c0_113 = arith.constant 0 : index
    %130 = vector.load %arg10[%c3_112, %c0_113] : memref<32x128xbf16, #tpu.memory_space<vmem>>, vector<16x128xbf16>
    %c384_114 = arith.constant 384 : index
    %c0_115 = arith.constant 0 : index
    %131 = vector.load %arg5[%c384_114, %c0_115] : memref<896x128xbf16, #tpu.memory_space<vmem>>, vector<128x128xbf16>
    %cst_116 = arith.constant dense<0.000000e+00> : vector<16x128xf32>
    %132 = tpu.matmul %130, %131, %cst_116 {dimension_numbers = #tpu.dot_dimension_numbers<[1], [0], [0], [1], [0, 0, 1, 1], [], []>} : vector<16x128xbf16>, vector<128x128xbf16>, vector<16x128xf32> -> vector<16x128xf32>
    %133 = arith.addf %129, %132 : vector<16x128xf32>
    %c4_117 = arith.constant 4 : index
    %c0_118 = arith.constant 0 : index
    %134 = vector.load %arg10[%c4_117, %c0_118] : memref<32x128xbf16, #tpu.memory_space<vmem>>, vector<16x128xbf16>
    %c512_119 = arith.constant 512 : index
    %c0_120 = arith.constant 0 : index
    %135 = vector.load %arg5[%c512_119, %c0_120] : memref<896x128xbf16, #tpu.memory_space<vmem>>, vector<128x128xbf16>
    %cst_121 = arith.constant dense<0.000000e+00> : vector<16x128xf32>
    %136 = tpu.matmul %134, %135, %cst_121 {dimension_numbers = #tpu.dot_dimension_numbers<[1], [0], [0], [1], [0, 0, 1, 1], [], []>} : vector<16x128xbf16>, vector<128x128xbf16>, vector<16x128xf32> -> vector<16x128xf32>
    %137 = arith.addf %133, %136 : vector<16x128xf32>
    %c5_122 = arith.constant 5 : index
    %c0_123 = arith.constant 0 : index
    %138 = vector.load %arg10[%c5_122, %c0_123] : memref<32x128xbf16, #tpu.memory_space<vmem>>, vector<16x128xbf16>
    %c640_124 = arith.constant 640 : index
    %c0_125 = arith.constant 0 : index
    %139 = vector.load %arg5[%c640_124, %c0_125] : memref<896x128xbf16, #tpu.memory_space<vmem>>, vector<128x128xbf16>
    %cst_126 = arith.constant dense<0.000000e+00> : vector<16x128xf32>
    %140 = tpu.matmul %138, %139, %cst_126 {dimension_numbers = #tpu.dot_dimension_numbers<[1], [0], [0], [1], [0, 0, 1, 1], [], []>} : vector<16x128xbf16>, vector<128x128xbf16>, vector<16x128xf32> -> vector<16x128xf32>
    %141 = arith.addf %137, %140 : vector<16x128xf32>
    %c6_127 = arith.constant 6 : index
    %c0_128 = arith.constant 0 : index
    %142 = vector.load %arg10[%c6_127, %c0_128] : memref<32x128xbf16, #tpu.memory_space<vmem>>, vector<16x128xbf16>
    %c768_129 = arith.constant 768 : index
    %c0_130 = arith.constant 0 : index
    %143 = vector.load %arg5[%c768_129, %c0_130] : memref<896x128xbf16, #tpu.memory_space<vmem>>, vector<128x128xbf16>
    %cst_131 = arith.constant dense<0.000000e+00> : vector<16x128xf32>
    %144 = tpu.matmul %142, %143, %cst_131 {dimension_numbers = #tpu.dot_dimension_numbers<[1], [0], [0], [1], [0, 0, 1, 1], [], []>} : vector<16x128xbf16>, vector<128x128xbf16>, vector<16x128xf32> -> vector<16x128xf32>
    %145 = arith.addf %141, %144 : vector<16x128xf32>
    %c0_132 = arith.constant 0 : index
    %c0_133 = arith.constant 0 : index
    %146 = vector.load %arg8[%c0_132, %c0_133] : memref<1x128xf32, #tpu.memory_space<vmem>>, vector<1x128xf32>
    %147 = vector.broadcast %146 : vector<1x128xf32> to vector<16x128xf32>
    %148 = arith.addf %145, %147 : vector<16x128xf32>
    %c0_134 = arith.constant 0 : index
    %c0_135 = arith.constant 0 : index
    %c16 = arith.constant 16 : index
    %c0_136 = arith.constant 0 : index
    %149 = vector.load %arg2[%c0_134, %c0_135, %c16, %c0_136] : memref<1x1x48x128xbf16, #tpu.memory_space<vmem>>, vector<1x1x16x128xbf16>
    %150 = vector.shape_cast %149 : vector<1x1x16x128xbf16> to vector<16x128xbf16>
    %151 = arith.extf %150 : vector<16x128xbf16> to vector<16x128xf32>
    %152 = arith.addf %148, %151 : vector<16x128xf32>
    %cst_137 = arith.constant 0.000000e+00 : f32
    %153 = vector.broadcast %cst_137 : f32 to vector<16x128xf32>
    %154 = arith.maximumf %152, %153 : vector<16x128xf32>
    %c0_138 = arith.constant 0 : index
    %c0_139 = arith.constant 0 : index
    %c0_140 = arith.constant 0 : index
    %155 = vector.load %arg9[%c0_138, %c0_139, %c0_140] : memref<1x16x128xf32, #tpu.memory_space<vmem>>, vector<1x16x128xf32>
    %156 = vector.shape_cast %155 : vector<1x16x128xf32> to vector<16x128xf32>
    %157 = vector.shape_cast %154 : vector<16x128xf32> to vector<1x16x128xf32>
    tpu.vector_store %arg9[%c0_138, %c0_139, %c0_140], %157 {strides = array<i32>} : memref<1x16x128xf32, #tpu.memory_space<vmem>>, vector<1x16x128xf32>,
    return
  }
  func.func @transform_0(%arg0: i32, %arg1: i32) -> (i32, i32, i32, i32) {
    %c0_i32 = arith.constant 0 : i32
    %c0_i32_0 = arith.constant 0 : i32
    %c0_i32_1 = arith.constant 0 : i32
    return %arg0, %arg1, %c0_i32, %c0_i32_0 : i32, i32, i32, i32
  }
  func.func @transform_1(%arg0: i32, %arg1: i32) -> (i32, i32) {
    %c0_i32 = arith.constant 0 : i32
    %c0_i32_0 = arith.constant 0 : i32
    %c0_i32_1 = arith.constant 0 : i32
    return %c0_i32, %c0_i32_0 : i32, i32
  }
  func.func @transform_2(%arg0: i32, %arg1: i32) -> (i32, i32) {
    %c0_i32 = arith.constant 0 : i32
    %c0_i32_0 = arith.constant 0 : i32
    %c0_i32_1 = arith.constant 0 : i32
    return %c0_i32, %c0_i32_0 : i32, i32
  }
  func.func @transform_3(%arg0: i32, %arg1: i32) -> (i32, i32) {
    %c0_i32 = arith.constant 0 : i32
    %c0_i32_0 = arith.constant 0 : i32
    %c0_i32_1 = arith.constant 0 : i32
    return %c0_i32, %c0_i32_0 : i32, i32
  }
  func.func @transform_4(%arg0: i32, %arg1: i32) -> (i32, i32) {
    %c0_i32 = arith.constant 0 : i32
    %c0_i32_0 = arith.constant 0 : i32
    %c0_i32_1 = arith.constant 0 : i32
    return %c0_i32, %c0_i32_0 : i32, i32
  }
  func.func @transform_5(%arg0: i32, %arg1: i32) -> (i32, i32) {
    %c0_i32 = arith.constant 0 : i32
    %c0_i32_0 = arith.constant 0 : i32
    %c0_i32_1 = arith.constant 0 : i32
    return %c0_i32, %c0_i32_0 : i32, i32
  }
  func.func @transform_6(%arg0: i32, %arg1: i32) -> (i32, i32) {
    %c0_i32 = arith.constant 0 : i32
    %c0_i32_0 = arith.constant 0 : i32
    %c0_i32_1 = arith.constant 0 : i32
    return %c0_i32, %c0_i32_0 : i32, i32
  }
  func.func @transform_7(%arg0: i32, %arg1: i32) -> (i32, i32, i32) {
    %c0_i32 = arith.constant 0 : i32
    %c0_i32_0 = arith.constant 0 : i32
    return %arg0, %arg1, %c0_i32 : i32, i32, i32
  }
}

</mosaic_0001>

<bundles_post_ra>
// kernel: tpu_custom_call.1
= control target key start
LH: loop header
LB: loop body
LE: loop exit
PB: predicated region body
PF: predicated region fallthrough
CT: control target
= control target key end

     0   :  { %s5988_s0 = inlined_call_operand.hbm [shape: bf16[2,1,48,128], index: 0, kind: input, shape index: {}]   ;;  %s5989_s1 = inlined_call_operand.hbm [shape: bf16[896,128], index: 1, kind: input, shape index: {}]   ;;  %s5990_s2 = inlined_call_operand.hbm [shape: bf16[1408,128], index: 2, kind: input, shape index: {}]   ;;  %s5991_s3 = inlined_call_operand.hbm [shape: bf16[896,128], index: 3, kind: input, shape index: {}]   ;;  %s5992_s4 = inlined_call_operand.vmem [shape: f32[1,128], index: 4, kind: input, shape index: {}]   ;;  %s5993_s5 = inlined_call_operand.vmem [shape: f32[1,128], index: 5, kind: input, shape index: {}]   ;;  %s5994_s6 = inlined_call_operand.vmem [shape: f32[1,128], index: 6, kind: input, shape index: {}]   ;;  %s5995_s7 = inlined_call_operand.hbm [shape: f32[2,16,128], index: 7, kind: output, shape index: {}]  }
   0x1   :  { %6000 = sst [smem:[#allocation18_spill]] %s5989_s1 }
   0x2   :  { %6001 = sst [smem:[#allocation19_spill]] %s5990_s2 }
   0x3   :  { %6002 = sst [smem:[#allocation20_spill]] %s5991_s3 }
   0x4   :  { %12 = vsyncpa [#allocation4], 0 }
   0x5   :  { %14 = vsyncpa [#allocation4 + $0x1], 0 }
   0x6   :  { %15 = vsyncpa [#allocation7], 0 }
   0x7   :  { %16 = vsyncpa [#allocation10], 0 }
   0x8   :  { %17 = vsyncpa [#allocation5], 0 }
   0x9   :  { %19 = vsyncpa [#allocation5 + $0x1], 0  ;;  %s5503_s24 = smov 0   ;;  %s5505_s25 = smov 0  }
   0xa   :  { %s5507_s26 = smov 0   ;;  %s5509_s27 = smov 0  }
   0xb   :  { %s5511_s28 = smov 0   ;;  %s5513_s29 = smov 0  }
   0xc LB: > { %6003 = sst [smem:[#allocation16_spill]] %s5446_s28  ;;  %s3890_s30 = sadd.s32 4294967295, %s5450_s29   ;;  %s5450_s29 = sphi %s5513_s29, %s25_s29   ;;  %s5446_s28 = sphi %s5511_s28, %s6021_s28   ;;  %s5442_s27 = sphi %s5509_s27, %s6020_s27   ;;  %s5438_s26 = sphi %s5507_s26, %s6024_s26   ;;  %s5434_s25 = sphi %s5505_s25, %s6023_s25   ;;  %s5430_s24 = sphi %s5503_s24, %s6022_s24  }
   0xd   : > { %s3891_s8 = sadd.s32 4294967294, %s5450_s29   ;;  %p59_p0 = scmp.ne.s32.totalorder %s5434_s25, %s5430_s24 }
   0xe   : > { %p5537_p1 = scmp.eq.s32.totalorder %s3890_s30, 0  ;;  %p5541_p2 = scmp.eq.s32.totalorder %s3890_s30, 1 }
   0xf   : > { %p217_p3 = scmp.eq.s32.totalorder %s3891_s8, 1  ;;  %p3892_p5 = scmp.ge.s32.totalorder %s5450_s29, 1 }
  0x10   : > { %p5547_p4 = por %p5537_p1, %p59_p0  ;;  %p224_p7 = scmp.lt.s32.totalorder %s5450_s29, 3 }
  0x11   : > { %p5552_p6 = por %p217_p3, %p59_p0  ;;  %s5452_s14 = smov [#allocation6]  }
  0x12   : > { %p5557_p8 = pnand %p3892_p5, %p224_p7  ;;  %s236_s15 = sshll.u32 %s5452_s14, 4  ;;  %s237_s15 = int_to_ptr.vmem [resolvable:$true] %s236_s15 }
  0x13   : > { %s6007_s12 = scalar_select %p5552_p6, 1, 0 }
  0x14   : > { %p4940_p9 = pneg %p5557_p8  ;;  %s5453_s17 = smov [#allocation8]  }
  0x15   : > { %s249_s18 = sshll.u32 %s5453_s17, 4  ;;  %s5454_s19 = smov [#allocation9]   ;;  %s250_s18 = int_to_ptr.vmem [resolvable:$true] %s249_s18 }
  0x16   : > { %p5566_p11 = pnand %p4940_p9, %p5537_p1  ;;  %s262_s20 = sshll.u32 %s5454_s19, 4  ;;  %s263_s20 = int_to_ptr.vmem [resolvable:$true] %s262_s20 }
  0x17   : > { %s5267_s21 = scalar_lea.vmem %s237_s15, 7168  ;;  %p5275_p5 = scmp.lt.s32.totalorder %s237_s15, %s237_s15 }
  0x18   : > { %p5258_p12 = pneg %p5566_p11  ;;  %p5268_p13 = scmp.ne.s32.totalorder %s237_s15, %s5267_s21 }
  0x19   : > { %p5276_p7 = scmp.lt.s32.totalorder %s5267_s21, %s5267_s21 }
  0x1a   : > { %p5270_p0 = pnand %p5268_p13, %p5258_p12 }
  0x1b   : > { %p5277_p9 = por %p5276_p7, %p5275_p5 }
  0x1c   : > { %p5271_p3 = pneg %p5270_p0 }
  0x1e   : > { %p5278_p10 = pnand %p5277_p9, %p5271_p3 }
  0x20   : > { %5281 = shalt.err (!%p5278_p10)
}
  0x21   : > { %s5996_s22 = smov 64   ;;  %s5997_s23 = smov 4  }
  0x22   : > { %s6010_s1 = sld [smem:[#allocation18_spill]]  ;;  %s5293_s14 = scalar_lea.vmem %s250_s18, 11264 }
  0x23   : > { %p5294_p13 = scmp.ne.s32.totalorder %s250_s18, %s5293_s14  ;;  %p5301_p3 = scmp.lt.s32.totalorder %s250_s18, %s250_s18 }
  0x24   : > { %p5302_p10 = scmp.lt.s32.totalorder %s5293_s14, %s5293_s14 }
  0x25   : > { %p5296_p0 = pnand %p5294_p13, %p5258_p12 }
  0x26   : > { %p5303_p7 = por %p5302_p10, %p5301_p3 }
  0x27   : > { %p5297_p5 = pneg %p5296_p0 }
  0x28   : > { %4943 = dma.hbm_to_vmem [thread:$0]  (!%p5566_p11), %s6010_s1, 7168, %s237_s15, [#allocation7], %s5996_s22, %s5996_s22, %s5997_s23  }
  0x29   : > { %p5304_p9 = pnand %p5303_p7, %p5297_p5 }
  0x2b   : > { %5307 = shalt.err (!%p5304_p9)
}
  0x2c   : > { %s6011_s2 = sld [smem:[#allocation19_spill]]  ;;  %s5319_s15 = scalar_lea.vmem %s263_s20, 7168 }
  0x2d   : > { %p5320_p6 = scmp.ne.s32.totalorder %s263_s20, %s5319_s15  ;;  %p5327_p3 = scmp.lt.s32.totalorder %s263_s20, %s263_s20 }
  0x2e   : > { %p5328_p5 = scmp.lt.s32.totalorder %s5319_s15, %s5319_s15 }
  0x2f   : > { %p5322_p13 = pnand %p5320_p6, %p5258_p12 }
  0x30   : > { %p5329_p10 = por %p5328_p5, %p5327_p3 }
  0x31   : > { %p5323_p0 = pneg %p5322_p13 }
  0x32   : > { %4946 = dma.hbm_to_vmem [thread:$0]  (!%p5566_p11), %s6011_s2, 11264, %s250_s18, [#allocation7], %s5996_s22, %s5996_s22, %s5997_s23  }
  0x33   : > { %p5330_p7 = pnand %p5329_p10, %p5323_p0 }
  0x35   : > { %5333 = shalt.err (!%p5330_p7)
}
  0x36   : > { %s6012_s3 = sld [smem:[#allocation20_spill]]  ;;  %s46_s18 = sadd.s32 1, %s5438_s26 }
  0x37   : > { %s37_s16 = sadd.s32 1, %s5446_s28  ;;  %p53_p6 = scmp.ne.s32.totalorder %s5438_s26, %s5434_s25 }
  0x38   : > { %p39_p12 = scmp.ge.s32.totalorder %s37_s16, 2  ;;  %p54_p9 = scmp.eq.s32.totalorder %s5450_s29, 0 }
  0x39   : > { %p5612_p13 = por %p5541_p2, %p53_p6  ;;  %p4961_p0 = scmp.lt.s32.totalorder %s5450_s29, 2 }
  0x3a   : > { %s6026_s16 = smov (%p39_p12, %s37_s16), 0  ;;  %p55_p3 = por %p54_p9, %p53_p6 }
  0x3b   : > { %6014 = sst [smem:[#allocation17_spill]] %s6026_s16  ;;  %s285_s14 = sand.u32 1, %s5438_s26  }
  0x3c   : > { %4949 = dma.hbm_to_vmem [thread:$0]  (!%p5566_p11), %s6012_s3, 7168, %s263_s20, [#allocation10], %s5996_s22, %s5996_s22, %s5997_s23  }
  0x3d   : > { %s41_s17 = ssub.s32 %s5446_s28, %s6026_s16  ;;  %s4921_s20 = smul.u32 24, %s285_s14 }
  0x3e   : > { %p44_p5 = scmp.eq.s32.totalorder %s41_s17, 0  ;;  %s4922_s19 = smul.u32 384, %s5446_s28 }
  0x3f   : > { %p5623_p11 = pnand %p4961_p0, %p55_p3  ;;  %s289_s23 = scalar_lea.vmem [#allocation3], %s4921_s20 }
  0x40   : > { %s5628_s10 = scalar_select %p44_p5, %s5438_s26, %s46_s18  }
  0x41   : > { %s297_s22 = scalar_lea.hbm %s5988_s0, %s4922_s19  ;;  %s298_s1 = sshll.u32 %s289_s23, 4  ;;  %s299_s1 = int_to_ptr.vmem [resolvable:$true] %s298_s1 }
  0x42   : > { %s286_s2 = scalar_lea.sflag [#allocation4], %s285_s14  ;;  %p5336_p2 = pneg %p5623_p11 }
  0x43   : > { %s5347_s17 = scalar_lea.vmem %s299_s1, 384  ;;  %s5457_s3 = smov [#allocation3]  }
  0x44   : > { %p5348_p10 = scmp.ne.s32.totalorder %s299_s1, %s5347_s17  ;;  %s5352_s16 = sshll.u32 %s5457_s3, 4  ;;  %s5353_s16 = int_to_ptr.vmem [resolvable:$false] %s5352_s16 }
  0x45   : > { %s5354_s28 = scalar_lea.vmem %s5353_s16, 768  ;;  %p5355_p12 = scmp.lt.s32.totalorder %s299_s1, %s5353_s16 }
  0x46   : > { %p5350_p7 = pnand %p5348_p10, %p5336_p2  ;;  %p5356_p9 = scmp.lt.s32.totalorder %s5354_s28, %s5347_s17 }
  0x48   : > { %p5351_p6 = pneg %p5350_p7  ;;  %p5357_p0 = por %p5356_p9, %p5355_p12 }
  0x4a   : > { %p5358_p3 = pnand %p5357_p0, %p5351_p6 }
  0x4c   : > { %5361 = shalt.err (!%p5358_p3)
}
  0x4d   : > { %s6016_s23 = smov 4   ;;  %s6017_s18 = smov 64  }
  0x4e   : > { %4953 = dma.hbm_to_vmem [thread:$0]  (!%p5623_p11), %s297_s22, 384, %s299_s1, %s286_s2, %s6017_s18, %s6017_s18, %s6016_s23  }
  0x4f   : > { %310 = sbr.rel (%p5557_p8) target bundleno = 1142 (0x476), region = 48  ;;  %s5643_s14 = sand.u32 (!%p5557_p8), 1, %s5434_s25  }
  0x50   : > { %s4923_s3 = smul.u32 (!%p5557_p8), 24, %s5643_s14  ;;  %s313_s28 = scalar_lea.sflag (!%p5557_p8), [#allocation4], %s5643_s14 }
  0x52   : > { %s5647_s16 = scalar_lea.vmem (!%p5557_p8), [#allocation3], %s4923_s3 }
  0x54   : > { %5413 = dma.done.wait (%p5547_p4), %s313_s28, 384  }
  0x55   : > { %5415 = vsyncadd (%p5547_p4), %s313_s28, 4294966912 }
  0x56   : > { %5417 = dma.done.wait (%p5537_p1), [#allocation7], 18432  }
  0x57   : > { %5419 = vsyncadd (%p5537_p1), [#allocation7], 4294948864 }
  0x58   : > { %5421 = dma.done.wait (%p5537_p1), [#allocation10], 7168  }
  0x59   : > { %5423 = vsyncadd (%p5537_p1), [#allocation10], 4294960128  ;;  %v5023_v0 = vld [vmem:[#allocation6 + $0x78] sm:$0xff]   ;;  %v5025_v2 = vld [vmem:[#allocation6 + $0x70] sm:$0xff]   ;;  %vm520_vm0 = vsmask.f32 5376 }
  0x5a   : > { %v5024_v1 = vld [vmem:[#allocation6 + $0x38] sm:$0xff]   ;;  %4421 = vmatprep.subr.bf16.mxu0 %v5023_v0  ;;  %v5026_v3 = vld [vmem:[#allocation6 + $0x30] sm:$0xff]   ;;  %v5027_v4 = vld [vmem:[#allocation6 + $0x68] sm:$0xff]   ;;  %vm412_vm1 = vcmask 1044480   ;;  %vm666_vm2 = vsmask.f32 4352 }
  0x5b   : > { %4441 = vmatprep.subr.bf16.mxu1 %v5024_v1  ;;  %4422 = vmatpush3.bf16.msra.mxu0 %v5023_v0  ;;  %v5028_v5 = vld [vmem:[#allocation6 + $0x28] sm:$0xff]   ;;  %v5029_v6 = vld [vmem:[#allocation6 + $0x60] sm:$0xff]   ;;  %v5031_v8 = vld [vmem:[#allocation6 + $0x58] sm:$0xff]   ;;  %vm1090_vm3 = vcmask 1046528   ;;  %vm946_vm4 = vsmask.f32 7424 }
  0x5c   : > { %4442 = vmatpush3.bf16.msra.mxu1 %v5024_v1  ;;  %4423 = vmatprep.subr.bf16.mxu0 %v5025_v2  ;;  %v5030_v7 = vld [vmem:[#allocation6 + $0x20] sm:$0xff]   ;;  %v5032_v9 = vld [vmem:[#allocation6 + $0x18] sm:$0xff]   ;;  %v5033_v10 = vld [vmem:[#allocation6 + $0x50] sm:$0xff]   ;;  %vm1219_vm5 = vsmask.f32 6400  ;;  %vm1965_vm6 = vcmask 1045504  }
  0x5d   : > { %4443 = vmatprep.subr.bf16.mxu1 %v5026_v3  ;;  %v5034_v11 = vld [vmem:[#allocation6 + $0x10] sm:$0xff]   ;;  %v5042_v20 = vld [vmem:[%s5647_s16 + $0x10] ss:$0 sps:$4 sm:$0x77]   ;;  %v5035_v21 = vld [vmem:[#allocation6 + $0x48] sm:$0xff]   ;;  %vm5459_vm7 = vmmov 0  }
  0x5e   : > { %v5662_v12 = vld [vmem:[%s5647_s16 + $0x4] sm:$0xf]  ;;  %v5665_v13 = vld [vmem:[%s5647_s16 + $0x8] sm:$0xf]  ;;  %v5668_v14 = vld [vmem:[%s5647_s16 + $0xc] sm:$0xf] }
  0x5f   : > { %4424 = vmatpush3.bf16.msra.mxu0 %v5025_v2  ;;  %v382_v15 = vld [vmem:[%s5647_s16] sm:$0x8]  ;;  %v3904_v16 = vcombine.low %v5665_v13, %v5668_v14  ;;  %v539_v31 = vshrl.u32 %v5042_v20, 16  ;;  %v542_v32 = vshll.u32 %v5042_v20, 16  ;;  %v5037_v36 = vld [vmem:[#allocation6 + $0x40] sm:$0xff]   ;;  %v416_v45 = vrot.slane %v5042_v20, 3 }
  0x60   : > { %4444 = vmatpush3.bf16.msra.mxu1 %v5026_v3  ;;  %4425 = vmatprep.subr.bf16.mxu0 %v5027_v4  ;;  %v361_v17 = vld [vmem:[%s5647_s16] sm:$0xc]  ;;  %v3903_v18 = vcombine.low %v382_v15, %v5662_v12  ;;  %v5038_v41 = vld [vmem:[#allocation6] sm:$0xff]   ;;  %v5043_v48 = vld [vmem:[#allocation6 + $0xb8] sm:$0xff]   ;;  %v3932_v60 = vcombine.low %v5662_v12, %v5665_v13  ;;  %s3902_s20 = sshll.u32 %s5643_s14, 4  ;;  %s4158_s21 = sshll.u32 %s5442_s27, 8 }
  0x61   : > { %4445 = vmatprep.subr.bf16.mxu1 %v5028_v5  ;;  %v3914_v19 = vcombine.low %v361_v17, %v5662_v12  ;;  %v414_v22 = vrot.slane %v3904_v16, 3  ;;  %v530_v23 = vshrl.u32 %v3904_v16, 16  ;;  %v533_v24 = vshll.u32 %v3904_v16, 16  ;;  %v5036_v25 = vld [vmem:[#allocation6 + $0x8] sm:$0xff]   ;;  %v5044_v50 = vld [vmem:[#allocation6 + $0xf8] sm:$0xff]   ;;  %v5045_v56 = vld [vmem:[#allocation6 + $0xb0] sm:$0xff]   ;;  %s5940_s23 = scalar_lea.hbm %s5995_s7, %s4158_s21 }
  0x62   : > { %v413_v26 = vrot.slane %v3903_v18, 3  ;;  %v541_v38 = vrot.slane %v539_v31, 2  ;;  %v544_v39 = vrot.slane %v542_v32, 3  ;;  %v668_v42 = vshrl.u32 %v3903_v18, 16  ;;  %v5046_v58 = vld [vmem:[#allocation6 + $0xf0] sm:$0xff]   ;;  %v5047_v61 = vld [vmem:[#allocation6 + $0xa8] sm:$0xff]  }
  0x63   : > { %4426 = vmatpush3.bf16.msra.mxu0 %v5027_v4  ;;  %v522_v27 = vshrl.u32 %v3914_v19, 16  ;;  %v525_v28 = vshll.u32 %v3914_v19, 16  ;;  %v532_v29 = vrot.slane %v530_v23, 2  ;;  %v535_v30 = vrot.slane %v533_v24, 3  ;;  %v5048_v62 = vld [vmem:[#allocation6 + $0xe8] sm:$0xff]   ;;  %v5049_v63 = vld [vmem:[#allocation6 + $0xa0] sm:$0xff]  }
  0x64   : > { %4446 = vmatpush3.bf16.msra.mxu1 %v5028_v5  ;;  %4427 = vmatprep.subr.bf16.mxu0 %v5029_v6  ;;  %v415_v33 = vsel %vm412_vm1, %v413_v26, %v414_v22  ;;  %v671_v44 = vshll.u32 %v3903_v18, 16  ;;  %v670_v46 = vrot.slane %v668_v42, 3  ;;  %v545_v47 = vor.u32 %v544_v39, %v541_v38  ;;  %v5050_v0 = vld [vmem:[#allocation6 + $0xe0] sm:$0xff]   ;;  %v5051_v1 = vld [vmem:[#allocation6 + $0x98] sm:$0xff]   ;;  %v5053_v5 = vld [vmem:[#allocation6 + $0x90] sm:$0xff]   ;;  %s358_s19 = scalar_lea.vmem [#allocation11], %s3902_s20 }
  0x65   : > { %4447 = vmatprep.subr.bf16.mxu1 %v5030_v7  ;;  %v524_v34 = vrot.slane %v522_v27, 2  ;;  %v527_v35 = vrot.slane %v525_v28, 3  ;;  %4437 = vmatprep.mubr.bf16.mxu0 %v415_v33  ;;  %v536_v37 = vor.u32 %v535_v30, %v532_v29  ;;  %v675_v51 = vrot.slane %v530_v23, 3  ;;  %v5688_v2 = vld [vmem:[%s5647_s16 + $0x10] sm:$0xf]  ;;  %s3774_s15 = sshll.u32 %s358_s19, 4  ;;  %s5935_s15 = int_to_ptr.vmem [resolvable:$true] %s3774_s15 }
  0x66   : > { %v673_v49 = vrot.slane %v671_v44, 4  ;;  %v676_v53 = vrot.slane %v533_v24, 4  ;;  %v417_v54 = vsel %vm412_vm1, %v414_v22, %v416_v45  ;;  %v5052_v3 = vld [vmem:[#allocation6 + $0xd8] sm:$0xff]   ;;  %v3923_v4 = vcombine.low %v5688_v2, %v5688_v2  ;;  %v5057_v19 = vld [vmem:[#allocation6 + $0x80] sm:$0xff]   ;;  %s3759_s18 = scalar_lea.sflag [#allocation5], %s5643_s14  ;;  %s5362_s3 = scalar_lea.vmem %s5935_s15, 256 }
  0x67   : > { %4428 = vmatpush3.bf16.msra.mxu0 %v5029_v6  ;;  %v528_v40 = vor.u32 %v527_v35, %v524_v34  ;;  %v546_v55 = vsel %vm520_vm0, %v536_v37, %v545_v47  ;;  %v5054_v6 = vld [vmem:[#allocation6 + $0xd0] sm:$0xff]   ;;  %v5698_v16 = vld [vmem:[%s5647_s16 + $0x14] ss:$0 sps:$4 sm:$0x11]   ;;  %v3933_v39 = vcombine.low %v5668_v14, %v5688_v2  ;;  %v5066_v14 = vld [vmem:[#allocation6 + $0x128] sm:$0xff]   ;;  %p5363_p1 = scmp.ne.s32.totalorder %s5935_s15, %s5362_s3  ;;  %s5460_s27 = smov [#allocation11]  }
  0x68   : > { %4448 = vmatpush3.bf16.msra.mxu1 %v5030_v7  ;;  %4429 = vmatprep.subr.bf16.mxu0 %v5031_v8  ;;  %v674_v52 = vor.u32 %v673_v49, %v670_v46  ;;  %v5681_v57 = vor.u32 %v676_v53, %v675_v51  ;;  %v5055_v7 = vld [vmem:[#allocation6 + $0x88] sm:$0xff]   ;;  %v913_v12 = vld [vmem:[%s5647_s16 + $0x8] sm:$0xf]  ;;  %v5695_v15 = vld [vmem:[%s5647_s16 + $0xc] sm:$0xff]   ;;  %v963_v30 = vshll.u32 %v5698_v16, 16  ;;  %v1094_v42 = vrot.slane %v5698_v16, 1 }
  0x69   : > { %4449 = vmatprep.subr.bf16.mxu1 %v5032_v9  ;;  %v537_v43 = vsel %vm520_vm0, %v528_v40, %v536_v37  ;;  %v5058_v22 = vld [vmem:[#allocation6 + $0xc0] sm:$0xff]   ;;  %v5060_v27 = vld [vmem:[#allocation6 + $0x138] sm:$0xff]   ;;  %v959_v29 = vshrl.u32 %v5695_v15, 16  ;;  %v1092_v32 = vrot.slane %v5695_v15, 1  ;;  %v5064_v34 = vld [vmem:[#allocation6 + $0x130] sm:$0xff]   ;;  %p5364_p4 = pnand %p5363_p1, %p5612_p13  ;;  %s5366_s28 = sshll.u32 %s5460_s27, 4  ;;  %s5367_s28 = int_to_ptr.vmem [resolvable:$false] %s5366_s28 }
  0x6a   : > { %4457 = vmatprep.mubr.bf16.mxu1 %v537_v43  ;;  %v678_v59 = vsel %vm666_vm2, %v674_v52, %v5681_v57  ;;  %v5063_v28 = vld [vmem:[#allocation6 + $0x178] sm:$0xff]   ;;  %v5065_v40 = vld [vmem:[#allocation6 + $0x170] sm:$0xff]   ;;  %v5712_v43 = vrot.slane %v963_v30, 1  ;;  %v5089_v16 = vld [vmem:[#allocation6 + $0x180] sm:$0xff]   ;;  %p5369_p5 = scmp.lt.s32.totalorder %s5935_s15, %s5367_s28 }
  0x6b   : > { %4430 = vmatpush3.bf16.msra.mxu0 %v5031_v8  ;;  %v680_v8 = vshrl.u32 %v3923_v4, 16  ;;  %v1228_v46 = vrot.slane %v959_v29, 1  ;;  %v5081_v2 = vld [vmem:[#allocation6 + $0x1b8] sm:$0xff]   ;;  %v5102_v30 = vld [vmem:[#allocation8 + $0x8] sm:$0xff]   ;;  %p5365_p8 = pneg %p5364_p4 }
  0x6c   : > { %4450 = vmatpush3.bf16.msra.mxu1 %v5032_v9  ;;  %4431 = vmatprep.subr.bf16.mxu0 %v5033_v10  ;;  %v683_v9 = vshll.u32 %v3923_v4, 16 }
  0x6d   : > { %4451 = vmatprep.subr.bf16.mxu1 %v5034_v11  ;;  %v682_v17 = vrot.slane %v680_v8, 3  ;;  %v1095_v8 = vsel %vm1090_vm3, %v1092_v32, %v1094_v42 }
  0x6e   : > { %v685_v18 = vrot.slane %v683_v9, 4 }
  0x6f   : > { %4432 = vmatpush3.bf16.msra.mxu0 %v5033_v10  ;;  %v5056_v10 = vld [vmem:[#allocation6 + $0xc8] sm:$0xff]  }
  0x70   : > { %4452 = vmatpush3.bf16.msra.mxu1 %v5034_v11  ;;  %4433 = vmatprep.subr.bf16.mxu0 %v5035_v21  ;;  %v912_v11 = vld [vmem:[%s5647_s16 + $0x4] sm:$0xf]  ;;  %v686_v26 = vor.u32 %v685_v18, %v682_v17 }
  0x71   : > { %4453 = vmatprep.subr.bf16.mxu1 %v5036_v25  ;;  %v3942_v13 = vcombine.low %v912_v11, %v913_v12  ;;  %v5085_v11 = vld [vmem:[#allocation6 + $0x1a0] sm:$0xff]  }
  0x72   : > { %v687_v38 = vsel %vm666_vm2, %v5681_v57, %v686_v26  ;;  %v5069_v57 = vld [vmem:[#allocation6 + $0x160] sm:$0xff]   ;;  %v5098_v26 = vld [vmem:[#allocation8 + $0x18] sm:$0xff]  }
  0x73   : > { %4434 = vmatpush3.bf16.msra.mxu0 %v5035_v21  ;;  %v950_v20 = vshll.u32 %v3942_v13, 16  ;;  %v1070_v21 = vld [vmem:[%s5647_s16 + $0x4] sm:$0xe]  ;;  %v948_v23 = vshrl.u32 %v3942_v13, 16 }
  0x74   : > { %4454 = vmatpush3.bf16.msra.mxu1 %v5036_v25  ;;  %4435 = vmatprep.subr.bf16.mxu0 %v5037_v36  ;;  %v955_v25 = vshll.u32 %v5695_v15, 16  ;;  %v3953_v31 = vcombine.low %v1070_v21, %v913_v12  ;;  %v5086_v12 = vld [vmem:[#allocation6 + $0x198] sm:$0xff]   ;;  %v5087_v13 = vld [vmem:[#allocation6 + $0x190] sm:$0xff]   ;;  %v5088_v15 = vld [vmem:[#allocation6 + $0x188] sm:$0xff]  }
  0x75   : > { %4455 = vmatprep.subr.bf16.mxu1 %v5038_v41  ;;  %v952_v24 = vrot.slane %v950_v20, 1  ;;  %v5092_v20 = vld [vmem:[#allocation8 + $0x30] sm:$0xff]   ;;  %v5093_v21 = vld [vmem:[#allocation8 + $0x78] sm:$0xff]  }
  0x76   : > { %v1221_v33 = vshrl.u32 %v3953_v31, 16  ;;  %v1224_v37 = vshll.u32 %v3953_v31, 16  ;;  %v1229_v47 = vrot.slane %v955_v25, 2 }
  0x77   : > { %4436 = vmatpush3.bf16.msra.mxu0 %v5037_v36  ;;  %v953_v35 = vor.u32 %v952_v24, %v948_v23  ;;  %v5705_v36 = vrot.slane %v955_v25, 1  ;;  %v5095_v23 = vld [vmem:[#allocation8 + $0x70] sm:$0xff]   ;;  %v5096_v24 = vld [vmem:[#allocation8 + $0x20] sm:$0xff]   ;;  %v5097_v25 = vld [vmem:[#allocation8 + $0x68] sm:$0xff]  }
  0x78   : > { %4456 = vmatpush3.bf16.msra.mxu1 %v5038_v41  ;;  %4461 = vmatprep.subr.bf16.mxu0 %v5043_v48  ;;  %v1091_v41 = vrot.slane %v3953_v31, 1  ;;  %v5714_v44 = vrot.slane %v1221_v33, 1  ;;  %v5716_v45 = vrot.slane %v1224_v37, 2  ;;  %v5103_v31 = vld [vmem:[#allocation8 + $0x50] sm:$0xff]   ;;  %v5105_v33 = vld [vmem:[#allocation8 + $0x48] sm:$0xff]  }
  0x79   : > { %4481 = vmatprep.subr.bf16.mxu1 %v5044_v50  ;;  %v958_v49 = vsel %vm946_vm4, %v953_v35, %v5705_v36  ;;  %v5109_v35 = vld [vmem:[#allocation8 + $0x40] sm:$0xff]  }
  0x7a   : > { %4438 = vmatmul.mubr.bf16.vlgmr.msra.gmra.mxu0 %v417_v54  ;;  %v1093_v51 = vsel %vm1090_vm3, %v1091_v41, %v1092_v32  ;;  %v1227_v4 = vor.u32 %v5716_v45, %v5714_v44  ;;  %v5104_v32 = vld [vmem:[#allocation8] sm:$0xff]  }
  0x7b   : > { %4458 = vmatmul.mubr.bf16.vlgmr.msra.gmra.mxu1 %v546_v55  ;;  %4462 = vmatpush3.bf16.msra.mxu0 %v5043_v48  ;;  %v5090_v48 = vld [vmem:[%s5647_s16 + $0x14] ss:$0 sps:$4 sm:$0x33]  }
  0x7c   : > { %4482 = vmatpush3.bf16.msra.mxu1 %v5044_v50  ;;  %4463 = vmatprep.subr.bf16.mxu0 %v5045_v56  ;;  %v5067_v50 = vld [vmem:[#allocation6 + $0x168] sm:$0xff]   ;;  %v1233_v52 = vshrl.u32 %v5090_v48, 16  ;;  %v1236_v53 = vshll.u32 %v5090_v48, 16 }
  0x7d   : > { %4483 = vmatprep.subr.bf16.mxu1 %v5046_v58  ;;  %4477 = vmatprep.mubr.bf16.mxu0 %v678_v59  ;;  %v5071_v59 = vld [vmem:[#allocation6 + $0x158] sm:$0xff]  }
  0x7e   : > { %4497 = vmatprep.mubr.bf16.mxu1 %v3932_v60  ;;  %v5726_v54 = vrot.slane %v1233_v52, 1  ;;  %v5728_v55 = vrot.slane %v1236_v53, 2  ;;  %v5072_v60 = vld [vmem:[#allocation6 + $0x110] sm:$0xff]  }
  0x7f   : > { %4464 = vmatpush3.bf16.msra.mxu0 %v5045_v56  ;;  %v5068_v56 = vld [vmem:[#allocation6 + $0x120] sm:$0xff]  }
  0x80   : > { %4484 = vmatpush3.bf16.msra.mxu1 %v5046_v58  ;;  %4465 = vmatprep.subr.bf16.mxu0 %v5047_v61  ;;  %v5070_v58 = vld [vmem:[#allocation6 + $0x118] sm:$0xff]   ;;  %v1239_v17 = vor.u32 %v5728_v55, %v5726_v54 }
  0x81   : > { %4485 = vmatprep.subr.bf16.mxu1 %v5048_v62 }
  0x83   : > { %4466 = vmatpush3.bf16.msra.mxu0 %v5047_v61  ;;  %v5073_v61 = vld [vmem:[#allocation6 + $0x150] sm:$0xff]  }
  0x84   : > { %4486 = vmatpush3.bf16.msra.mxu1 %v5048_v62  ;;  %4467 = vmatprep.subr.bf16.mxu0 %v5049_v63  ;;  %v5074_v62 = vld [vmem:[#allocation6 + $0x108] sm:$0xff]  }
  0x85   : > { %4487 = vmatprep.subr.bf16.mxu1 %v5050_v0 }
  0x87   : > { %4468 = vmatpush3.bf16.msra.mxu0 %v5049_v63  ;;  %v5075_v63 = vld [vmem:[#allocation6 + $0x148] sm:$0xff]  }
  0x88   : > { %4488 = vmatpush3.bf16.msra.mxu1 %v5050_v0  ;;  %4469 = vmatprep.subr.bf16.mxu0 %v5051_v1  ;;  %v5076_v0 = vld [vmem:[#allocation6 + $0x100] sm:$0xff]  }
  0x89   : > { %4489 = vmatprep.subr.bf16.mxu1 %v5052_v3 }
  0x8b   : > { %4470 = vmatpush3.bf16.msra.mxu0 %v5051_v1  ;;  %v5077_v1 = vld [vmem:[#allocation6 + $0x140] sm:$0xff]  }
  0x8c   : > { %4490 = vmatpush3.bf16.msra.mxu1 %v5052_v3  ;;  %4471 = vmatprep.subr.bf16.mxu0 %v5053_v5  ;;  %v961_v3 = vor.u32 %v959_v29, %v5705_v36  ;;  %v5101_v29 = vld [vmem:[#allocation8 + $0x58] sm:$0xff]  }
  0x8d   : > { %4491 = vmatprep.subr.bf16.mxu1 %v5054_v6  ;;  %v5749_v36 = vld [vmem:[#allocation8 + $0xb8] sm:$0xff]  }
  0x8f   : > { %4472 = vmatpush3.bf16.msra.mxu0 %v5053_v5  ;;  %v1230_v5 = vor.u32 %v1229_v47, %v1228_v46 }
  0x90   : > { %4492 = vmatpush3.bf16.msra.mxu1 %v5054_v6  ;;  %4473 = vmatprep.subr.bf16.mxu0 %v5055_v7  ;;  %v5083_v6 = vld [vmem:[#allocation6 + $0x1b0] sm:$0xff]  }
  0x91   : > { %4493 = vmatprep.subr.bf16.mxu1 %v5056_v10  ;;  %v1231_v9 = vsel %vm1219_vm5, %v1227_v4, %v1230_v5  ;;  %v1240_v18 = vsel %vm1219_vm5, %v1230_v5, %v1239_v17  ;;  %v3971_v4 = vld [vmem:[%s5992_s4] ss:$0 sm:$0xff] }
  0x93   : > { %4474 = vmatpush3.bf16.msra.mxu0 %v5055_v7  ;;  %v966_v7 = vsel %vm946_vm4, %v961_v3, %v5712_v43 }
  0x94   : > { %4494 = vmatpush3.bf16.msra.mxu1 %v5056_v10  ;;  %4475 = vmatprep.subr.bf16.mxu0 %v5057_v19  ;;  %v5084_v10 = vld [vmem:[#allocation6 + $0x1a8] sm:$0xff]  }
  0x95   : > { %4495 = vmatprep.subr.bf16.mxu1 %v5058_v22 }
  0x97   : > { %4476 = vmatpush3.bf16.msra.mxu0 %v5057_v19  ;;  %v5091_v19 = vld [vmem:[#allocation8 + $0x38] sm:$0xff]  }
  0x98   : > { %4496 = vmatpush3.bf16.msra.mxu1 %v5058_v22  ;;  %4501 = vmatprep.subr.bf16.mxu0 %v5060_v27  ;;  %v5094_v22 = vld [vmem:[#allocation8 + $0x28] sm:$0xff]  }
  0x99   : > { %4521 = vmatprep.subr.bf16.mxu1 %v5063_v28 }
  0x9a   : > { %4478 = vmatmul.mubr.bf16.vlgmr.msra.gmra.mxu0 %v687_v38 }
  0x9b   : > { %4502 = vmatpush3.bf16.msra.mxu0 %v5060_v27  ;;  %4498 = vmatmul.mubr.bf16.vlgmr.msra.gmra.mxu1 %v3933_v39  ;;  %v5099_v27 = vld [vmem:[#allocation8 + $0x60] sm:$0xff]  }
  0x9c   : > { %4522 = vmatpush3.bf16.msra.mxu1 %v5063_v28  ;;  %4503 = vmatprep.subr.bf16.mxu0 %v5064_v34  ;;  %v5100_v28 = vld [vmem:[#allocation8 + $0x10] sm:$0xff]  }
  0x9d   : > { %4523 = vmatprep.subr.bf16.mxu1 %v5065_v40  ;;  %4517 = vmatprep.mubr.bf16.mxu0 %v958_v49 }
  0x9e   : > { %4537 = vmatprep.mubr.bf16.mxu1 %v1093_v51 }
  0x9f   : > { %4504 = vmatpush3.bf16.msra.mxu0 %v5064_v34  ;;  %v5746_v34 = vld [vmem:[#allocation8 + $0xf8] sm:$0xff]  }
  0xa0   : > { %4524 = vmatpush3.bf16.msra.mxu1 %v5065_v40  ;;  %4505 = vmatprep.subr.bf16.mxu0 %v5066_v14 }
  0xa1   : > { %4525 = vmatprep.subr.bf16.mxu1 %v5067_v50 }
  0xa3   : > { %4506 = vmatpush3.bf16.msra.mxu0 %v5066_v14 }
  0xa4   : > { %4526 = vmatpush3.bf16.msra.mxu1 %v5067_v50  ;;  %4507 = vmatprep.subr.bf16.mxu0 %v5068_v56 }
  0xa5   : > { %4527 = vmatprep.subr.bf16.mxu1 %v5069_v57 }
  0xa7   : > { %4508 = vmatpush3.bf16.msra.mxu0 %v5068_v56 }
  0xa8   : > { %4528 = vmatpush3.bf16.msra.mxu1 %v5069_v57  ;;  %4509 = vmatprep.subr.bf16.mxu0 %v5070_v58 }
  0xa9   : > { %4529 = vmatprep.subr.bf16.mxu1 %v5071_v59 }
  0xab   : > { %4510 = vmatpush3.bf16.msra.mxu0 %v5070_v58 }
  0xac   : > { %4530 = vmatpush3.bf16.msra.mxu1 %v5071_v59  ;;  %4511 = vmatprep.subr.bf16.mxu0 %v5072_v60 }
  0xad   : > { %4531 = vmatprep.subr.bf16.mxu1 %v5073_v61 }
  0xaf   : > { %4512 = vmatpush3.bf16.msra.mxu0 %v5072_v60 }
  0xb0   : > { %4532 = vmatpush3.bf16.msra.mxu1 %v5073_v61  ;;  %4513 = vmatprep.subr.bf16.mxu0 %v5074_v62 }
  0xb1   : > { %4533 = vmatprep.subr.bf16.mxu1 %v5075_v63 }
  0xb3   : > { %4514 = vmatpush3.bf16.msra.mxu0 %v5074_v62 }
  0xb4   : > { %4534 = vmatpush3.bf16.msra.mxu1 %v5075_v63  ;;  %4515 = vmatprep.subr.bf16.mxu0 %v5076_v0 }
  0xb5   : > { %4535 = vmatprep.subr.bf16.mxu1 %v5077_v1 }
  0xb7   : > { %4516 = vmatpush3.bf16.msra.mxu0 %v5076_v0 }
  0xb8   : > { %4536 = vmatpush3.bf16.msra.mxu1 %v5077_v1  ;;  %4541 = vmatprep.subr.bf16.mxu0 %v5081_v2 }
  0xb9   : > { %4561 = vmatprep.subr.bf16.mxu1 %v5093_v21 }
  0xba   : > { %4518 = vmatmul.mubr.bf16.vlgmr.msra.gmra.mxu0 %v966_v7 }
  0xbb   : > { %4542 = vmatpush3.bf16.msra.mxu0 %v5081_v2  ;;  %4538 = vmatmul.mubr.bf16.vlgmr.msra.gmra.mxu1 %v1095_v8 }
  0xbc   : > { %4543 = vmatprep.subr.bf16.mxu0 %v5083_v6  ;;  %4557 = vmatprep.mubr.bf16.mxu0 %v1231_v9 }
  0xbd   : > { %4562 = vmatpush3.bf16.msra.mxu1 %v5093_v21 }
  0xbe   : > { %4563 = vmatprep.subr.bf16.mxu1 %v5095_v23 }
  0xbf   : > { %4544 = vmatpush3.bf16.msra.mxu0 %v5083_v6 }
  0xc0   : > { %4545 = vmatprep.subr.bf16.mxu0 %v5084_v10 }
  0xc1   : > { %4564 = vmatpush3.bf16.msra.mxu1 %v5095_v23 }
  0xc2   : > { %4565 = vmatprep.subr.bf16.mxu1 %v5097_v25 }
  0xc3   : > { %4546 = vmatpush3.bf16.msra.mxu0 %v5084_v10 }
  0xc4   : > { %4547 = vmatprep.subr.bf16.mxu0 %v5085_v11 }
  0xc5   : > { %4566 = vmatpush3.bf16.msra.mxu1 %v5097_v25 }
  0xc6   : > { %4567 = vmatprep.subr.bf16.mxu1 %v5099_v27 }
  0xc7   : > { %4548 = vmatpush3.bf16.msra.mxu0 %v5085_v11 }
  0xc8   : > { %4549 = vmatprep.subr.bf16.mxu0 %v5086_v12 }
  0xc9   : > { %4568 = vmatpush3.bf16.msra.mxu1 %v5099_v27 }
  0xca   : > { %4569 = vmatprep.subr.bf16.mxu1 %v5101_v29 }
  0xcb   : > { %4550 = vmatpush3.bf16.msra.mxu0 %v5086_v12 }
  0xcc   : > { %4551 = vmatprep.subr.bf16.mxu0 %v5087_v13 }
  0xcd   : > { %4570 = vmatpush3.bf16.msra.mxu1 %v5101_v29 }
  0xce   : > { %4571 = vmatprep.subr.bf16.mxu1 %v5103_v31 }
  0xcf   : > { %4552 = vmatpush3.bf16.msra.mxu0 %v5087_v13 }
  0xd0   : > { %4553 = vmatprep.subr.bf16.mxu0 %v5088_v15 }
  0xd1   : > { %4572 = vmatpush3.bf16.msra.mxu1 %v5103_v31 }
  0xd2   : > { %4573 = vmatprep.subr.bf16.mxu1 %v5105_v33 }
  0xd3   : > { %4554 = vmatpush3.bf16.msra.mxu0 %v5088_v15  ;;  %v5458_v15 = vmov 0.0  }
  0xd4   : > { %4555 = vmatprep.subr.bf16.mxu0 %v5089_v16 }
  0xd5   : > { %4574 = vmatpush3.bf16.msra.mxu1 %v5105_v33 }
  0xd6   : > { %4575 = vmatprep.subr.bf16.mxu1 %v5109_v35 }
  0xd7   : > { %4556 = vmatpush3.bf16.msra.mxu0 %v5089_v16 }
  0xd8   : > { %4581 = vmatprep.subr.bf16.mxu0 %v5091_v19 }
  0xd9   : > { %4576 = vmatpush3.bf16.msra.mxu1 %v5109_v35 }
  0xda   : > { %4558 = vmatmul.mubr.bf16.vlgmr.msra.gmra.mxu0 %v1240_v18  ;;  %4601 = vmatprep.subr.bf16.mxu1 %v5749_v36 }
  0xdb   : > { %4582 = vmatpush3.bf16.msra.mxu0 %v5091_v19 }
  0xdc   : > { %4583 = vmatprep.subr.bf16.mxu0 %v5092_v20 }
  0xdf   : > { %4584 = vmatpush3.bf16.msra.mxu0 %v5092_v20 }
  0xe0   : > { %4585 = vmatprep.subr.bf16.mxu0 %v5094_v22 }
  0xe3   : > { %4586 = vmatpush3.bf16.msra.mxu0 %v5094_v22 }
  0xe4   : > { %4587 = vmatprep.subr.bf16.mxu0 %v5096_v24 }
  0xe7   : > { %4588 = vmatpush3.bf16.msra.mxu0 %v5096_v24 }
  0xe8   : > { %4589 = vmatprep.subr.bf16.mxu0 %v5098_v26 }
  0xeb   : > { %4590 = vmatpush3.bf16.msra.mxu0 %v5098_v26 }
  0xec   : > { %4591 = vmatprep.subr.bf16.mxu0 %v5100_v28 }
  0xef   : > { %4592 = vmatpush3.bf16.msra.mxu0 %v5100_v28 }
  0xf0   : > { %4593 = vmatprep.subr.bf16.mxu0 %v5102_v30 }
  0xf3   : > { %4594 = vmatpush3.bf16.msra.mxu0 %v5102_v30 }
  0xf4   : > { %4595 = vmatprep.subr.bf16.mxu0 %v5104_v32 }
  0xf7   : > { %4596 = vmatpush3.bf16.msra.mxu0 %v5104_v32 }
  0xf8   : > { %4621 = vmatprep.subr.bf16.mxu0 %v5746_v34 }
 0x13a   : > { %v4439_v37 = vpop.f32.mrf.mxu0 }
 0x13b   : > { %v4459_v38 = vpop.f32.mrf.mxu1 }
 0x13c   : > { %v640_v39 = vadd.f32 %v4459_v38, %v4439_v37  ;;  %v502_v40 = vpop.f32.mrf.mxu0  ;;  %v5110_v37 = vld [vmem:[#allocation8 + $0xf0] sm:$0xff]  }
 0x13d   : > { %v631_v41 = vpop.f32.mrf.mxu1 }
 0x13e   : > { %v4440_v42 = vpop.f32.mrf.mxu0 }
 0x13f   : > { %v4460_v43 = vpop.f32.mrf.mxu1 }
 0x140   : > { %v505_v44 = vpop.f32.mrf.mxu0 }
 0x141   : > { %v634_v45 = vpop.f32.mrf.mxu1 }
 0x142   : > { %v635_v60 = vadd.f32 %v634_v45, %v505_v44 }
 0x15a   : > { %v4479_v46 = vpop.f32.mrf.mxu0 }
 0x15b   : > { %v4499_v47 = vpop.f32.mrf.mxu1  ;;  %v789_v59 = vadd.f32 %v4479_v46, %v640_v39 }
 0x15c   : > { %v772_v48 = vpop.f32.mrf.mxu0 }
 0x15d   : > { %v893_v14 = vpop.f32.mrf.mxu1  ;;  %v910_v61 = vadd.f32 %v4499_v47, %v789_v59  ;;  %v5118_v59 = vld [vmem:[#allocation8 + $0xe0] sm:$0xff]  }
 0x15e   : > { %v4480_v49 = vpop.f32.mrf.mxu0 }
 0x15f   : > { %v4500_v50 = vpop.f32.mrf.mxu1  ;;  %v5115_v49 = vld [vmem:[#allocation8 + $0xe8] sm:$0xff]  }
 0x160   : > { %v775_v51 = vpop.f32.mrf.mxu0 }
 0x161   : > { %v896_v52 = vpop.f32.mrf.mxu1  ;;  %v788_v62 = vadd.f32 %v775_v51, %v635_v60 }
 0x163   : > { %v909_v1 = vadd.f32 %v896_v52, %v788_v62  ;;  %v5120_v62 = vld [vmem:[#allocation8 + $0xd8] sm:$0xff]  }
 0x17a   : > { %v4519_v53 = vpop.f32.mrf.mxu0 }
 0x17b   : > { %v4539_v54 = vpop.f32.mrf.mxu1  ;;  %v1068_v63 = vadd.f32 %v4519_v53, %v910_v61  ;;  %v5119_v61 = vld [vmem:[#allocation8 + $0xa8] sm:$0xff]  }
 0x17c   : > { %v1051_v55 = vpop.f32.mrf.mxu0 }
 0x17d   : > { %v1180_v56 = vpop.f32.mrf.mxu1  ;;  %v1197_v2 = vadd.f32 %v4539_v54, %v1068_v63  ;;  %v5121_v63 = vld [vmem:[#allocation8 + $0xa0] sm:$0xff]  }
 0x17e   : > { %v4520_v57 = vpop.f32.mrf.mxu0 }
 0x17f   : > { %v4540_v58 = vpop.f32.mrf.mxu1  ;;  %v5117_v57 = vld [vmem:[#allocation8 + $0xb0] sm:$0xff]  }
 0x180   : > { %v1054_v0 = vpop.f32.mrf.mxu0 }
 0x181   : > { %v1067_v5 = vadd.f32 %v1054_v0, %v909_v1  ;;  %v1183_v7 = vpop.f32.mrf.mxu1  ;;  %v5122_v1 = vld [vmem:[#allocation8 + $0xd0] sm:$0xff]  }
 0x183   : > { %v1196_v11 = vadd.f32 %v1183_v7, %v1067_v5 }
 0x19a   : > { %v4559_v3 = vpop.f32.mrf.mxu0 }
 0x19b   : > { %v1342_v6 = vadd.f32 %v4559_v3, %v1197_v2 }
 0x19c   : > { %v1325_v8 = vpop.f32.mrf.mxu0 }
 0x19d   : > { %v1353_v9 = vadd.f32 %v3971_v4, %v1342_v6  ;;  %v5125_v8 = vld [vmem:[#allocation8 + $0x90] sm:$0xff]  }
 0x19e   : > { %v4560_v10 = vpop.f32.mrf.mxu0 }
 0x19f   : > { %v1357_v12 = vmax.f32 %v1353_v9, 0.0  ;;  %v5126_v9 = vld [vmem:[#allocation8 + $0xc0] sm:$0xff]  }
 0x1a0   : > { %v1328_v13 = vpop.f32.mrf.mxu0 }
 0x1a1   : > { %v4165_v16 = vpack.c.bf16 %v5458_v15, %v1357_v12  ;;  %v1341_v17 = vadd.f32 %v1328_v13, %v1196_v11 }
 0x1a3   : > { %4176 = vst [vmem:[#allocation2 + $0x8] sm:$0xff] %v4165_v16   ;;  %v1352_v18 = vadd.f32 %v3971_v4, %v1341_v17  ;;  %v5124_v4 = vld [vmem:[#allocation8 + $0xc8] sm:$0xff]   ;;  %v5128_v17 = vld [vmem:[#allocation8 + $0x178] sm:$0xff]  }
 0x1a4   : > { %v5127_v16 = vld [vmem:[#allocation8 + $0x88] sm:$0xff]  }
 0x1a5   : > { %v1356_v19 = vmax.f32 %v1352_v18, 0.0 }
 0x1a7   : > { %v4161_v20 = vpack.c.bf16 %v1356_v19, %v5458_v15 }
 0x1a9   : > { %4162 = vst [vmem:[#allocation2] sm:$0xff] %v4161_v20  }
 0x1aa   : > { %v5757_v21 = vld [vmem:[#allocation2 + $0x8] sm:$0xf]  ;;  %v1800_v22 = vld [vmem:[#allocation2 + $0xc] sm:$0x1] }
 0x1ab   : > { %v5759_v23 = vld [vmem:[#allocation2 + $0x8] ss:$0 sps:$4 sm:$0xff]   ;;  %v5762_v24 = vcombine.low %v5757_v21, %v1800_v22  ;;  %v2070_v2 = vld [vmem:[#allocation2 + $0xc] sm:$0x3] }
 0x1ac   : > { %v1467_v31 = vshll.u32 %v5759_v23, 16  ;;  %v5108_v35 = vld [vmem:[#allocation2 + $0x8] ss:$0 sps:$4 sm:$0x77]   ;;  %v1471_v51 = vshrl.u32 %v5759_v23, 16  ;;  %v5784_v5 = vcombine.low %v5757_v21, %v2070_v2  ;;  %v5153_v2 = vld [vmem:[#allocation8 + $0x1b0] sm:$0xff]  }
 0x1ad   : > { %v1836_v25 = vshrl.u32 %v5762_v24, 16  ;;  %v1839_v26 = vshll.u32 %v5762_v24, 16 }
 0x1ae   : > { %v1469_v47 = vrot.slane %v1467_v31, 1  ;;  %v2099_v10 = vshrl.u32 %v5784_v5, 16  ;;  %v2102_v11 = vshll.u32 %v5784_v5, 16  ;;  %v1967_v31 = vrot.slane %v5762_v24, 2 }
 0x1af   : > { %v1838_v43 = vrot.slane %v1836_v25, 1  ;;  %v1841_v44 = vrot.slane %v1839_v26, 2  ;;  %v5131_v25 = vld [vmem:[#allocation8 + $0x80] sm:$0xff]   ;;  %v5132_v26 = vld [vmem:[#allocation8 + $0x170] sm:$0xff]  }
 0x1b0   : > { %v1415_v27 = vld [vmem:[#allocation2] sm:$0xf]  ;;  %v1416_v28 = vld [vmem:[#allocation2 + $0x4] sm:$0xf]  ;;  %v1473_v56 = vor.u32 %v1471_v51, %v1469_v47  ;;  %v2101_v18 = vrot.slane %v2099_v10, 2  ;;  %v2104_v19 = vrot.slane %v2102_v11, 3 }
 0x1b1   : > { %v1797_v29 = vld [vmem:[#allocation2] sm:$0xe]  ;;  %v3976_v30 = vcombine.low %v1415_v27, %v1416_v28  ;;  %v5767_v32 = vld [vmem:[#allocation2 + $0x4] sm:$0xf]  ;;  %v5772_v54 = vor.u32 %v1841_v44, %v1838_v43  ;;  %v5141_v44 = vld [vmem:[#allocation8 + $0x118] sm:$0xff]  }
 0x1b2   : > { %v1673_v33 = vld [vmem:[#allocation2] sm:$0xe]  ;;  %v4004_v38 = vcombine.low %v1797_v29, %v5767_v32  ;;  %v5788_v22 = vor.u32 %v2104_v19, %v2101_v18  ;;  %v5134_v29 = vld [vmem:[#allocation8 + $0x168] sm:$0xff]   ;;  %v4050_v24 = vcombine.low %v5767_v32, %v5757_v21 }
 0x1b3   : > { %v1462_v39 = vshll.u32 %v3976_v30, 16  ;;  %4597 = vmatprep.mubr.bf16.mxu0 %v3976_v30  ;;  %v3995_v40 = vcombine.low %v1673_v33, %v1416_v28  ;;  %v1460_v45 = vshrl.u32 %v3976_v30, 16  ;;  %v1945_v0 = vld [vmem:[#allocation2] sm:$0xc]  ;;  %v5133_v28 = vld [vmem:[#allocation8 + $0x138] sm:$0xff]   ;;  %v5135_v33 = vld [vmem:[#allocation8 + $0x130] sm:$0xff]  }
 0x1b4   : > { %4598 = vmatmul.mubr.bf16.vlgmr.msra.gmra.mxu0 %v5108_v35  ;;  %v1828_v41 = vshrl.u32 %v4004_v38, 16  ;;  %v1831_v42 = vshll.u32 %v4004_v38, 16  ;;  %v4014_v3 = vcombine.low %v1945_v0, %v5767_v32  ;;  %v5136_v35 = vld [vmem:[#allocation8 + $0x160] sm:$0xff]   ;;  %v5137_v38 = vld [vmem:[#allocation8 + $0x128] sm:$0xff]   ;;  %v2612_v11 = vshll.u32 %v4050_v24, 16 }
 0x1b5   : > { %4622 = vmatpush3.bf16.msra.mxu0 %v5746_v34  ;;  %v1464_v46 = vrot.slane %v1462_v39, 1  ;;  %v1693_v52 = vrot.slane %v3995_v40, 1  ;;  %v1694_v34 = vrot.slane %v5759_v23, 1  ;;  %v5138_v39 = vld [vmem:[#allocation8 + $0x158] sm:$0xff]   ;;  %v5139_v40 = vld [vmem:[#allocation8 + $0x120] sm:$0xff]   ;;  %v5160_v10 = vld [vmem:[#allocation8 + $0x1c8] sm:$0xff]  }
 0x1b6   : > { %4623 = vmatprep.subr.bf16.mxu0 %v5110_v37  ;;  %v1830_v48 = vrot.slane %v1828_v41, 1  ;;  %v1833_v14 = vrot.slane %v1831_v42, 2  ;;  %v2091_v6 = vshrl.u32 %v4014_v3, 16  ;;  %v2094_v7 = vshll.u32 %v4014_v3, 16  ;;  %v2208_v41 = vld [vmem:[#allocation2] sm:$0x8] }
 0x1b7   : > { %v1465_v50 = vor.u32 %v1464_v46, %v1460_v45  ;;  %v1695_v60 = vsel %vm1090_vm3, %v1693_v52, %v1694_v34  ;;  %v1966_v30 = vrot.slane %v4014_v3, 2  ;;  %v5140_v42 = vld [vmem:[#allocation8 + $0x150] sm:$0xff]   ;;  %v5799_v23 = vld [vmem:[#allocation2 + $0xc] sm:$0x7]  ;;  %v4032_v43 = vcombine.low %v2208_v41, %v5767_v32  ;;  %v5154_v3 = vld [vmem:[#allocation8 + $0x1e0] sm:$0xff]  }
 0x1b8   : > { %v1834_v53 = vor.u32 %v1833_v14, %v1830_v48  ;;  %v2093_v12 = vrot.slane %v2091_v6, 2  ;;  %v2096_v13 = vrot.slane %v2094_v7, 3  ;;  %v5142_v45 = vld [vmem:[#allocation8 + $0x148] sm:$0xff]   ;;  %v4041_v46 = vcombine.low %v5757_v21, %v5799_v23  ;;  %v5143_v14 = vld [vmem:[#allocation8 + $0x110] sm:$0xff]   ;;  %v5156_v6 = vld [vmem:[#allocation8 + $0x1d8] sm:$0xff]  }
 0x1b9   : > { %4624 = vmatpush3.bf16.msra.mxu0 %v5110_v37  ;;  %v1470_v55 = vsel %vm946_vm4, %v1465_v50, %v1469_v47  ;;  %v1968_v37 = vsel %vm1965_vm6, %v1966_v30, %v1967_v31  ;;  %v2353_v47 = vshrl.u32 %v4032_v43, 16  ;;  %v2356_v48 = vshll.u32 %v4032_v43, 16  ;;  %v5157_v7 = vld [vmem:[#allocation8 + $0x1a0] sm:$0xff]   ;;  %v5163_v18 = vld [vmem:[#allocation8 + $0x188] sm:$0xff]   ;;  %v5164_v32 = vld [vmem:[#allocation8 + $0x278] sm:$0xff]  }
 0x1ba   : > { %4577 = vmatprep.mubr.bf16.mxu1 %v1470_v55  ;;  %v1843_v58 = vsel %vm1219_vm5, %v1834_v53, %v5772_v54  ;;  %4625 = vmatprep.subr.bf16.mxu0 %v5115_v49  ;;  %v2097_v20 = vor.u32 %v2096_v13, %v2093_v12  ;;  %v2361_v50 = vshrl.u32 %v4041_v46, 16  ;;  %v2364_v51 = vshll.u32 %v4041_v46, 16  ;;  %v5146_v55 = vld [vmem:[#allocation8 + $0x1f8] sm:$0xff]   ;;  %v5161_v12 = vld [vmem:[#allocation8 + $0x190] sm:$0xff]   ;;  %v5162_v13 = vld [vmem:[#allocation8 + $0x1c0] sm:$0xff]  }
 0x1bb   : > { %4637 = vmatprep.mubr.bf16.mxu0 %v1843_v58  ;;  %4578 = vmatmul.mubr.bf16.vlgmr.msra.gmra.mxu1 %v1473_v56  ;;  %v2355_v52 = vrot.slane %v2353_v47, 3  ;;  %v2358_v53 = vrot.slane %v2356_v48, 4  ;;  %v2228_v0 = vrot.slane %v4032_v43, 3  ;;  %v2610_v19 = vshrl.u32 %v4050_v24, 16  ;;  %v5170_v30 = vld [vmem:[#allocation8 + $0x268] sm:$0xff]   ;;  %v5179_v41 = vld [vmem:[#allocation8 + $0x210] sm:$0xff]  }
 0x1bc   : > { %4602 = vmatpush3.bf16.msra.mxu1 %v5749_v36  ;;  %4617 = vmatprep.mubr.bf16.mxu1 %v1695_v60  ;;  %v5123_v36 = vld [vmem:[#allocation8 + $0x98] sm:$0xff]   ;;  %v2106_v27 = vsel %vm520_vm0, %v2097_v20, %v5788_v22  ;;  %v2363_v56 = vrot.slane %v2361_v50, 3  ;;  %v5150_v60 = vld [vmem:[#allocation8 + $0x1f0] sm:$0xff]   ;;  %v5181_v43 = vld [vmem:[#allocation8 + $0x208] sm:$0xff]   ;;  %v4051_v50 = vcombine.low %v5799_v23, %v5799_v23 }
 0x1bd   : > { %4626 = vmatpush3.bf16.msra.mxu0 %v5115_v49  ;;  %4603 = vmatprep.subr.bf16.mxu1 %v5117_v57  ;;  %v5144_v49 = vld [vmem:[#allocation8 + $0x140] sm:$0xff]   ;;  %v5190_v23 = vld [vmem:[#allocation8 + $0x290] sm:$0xff]  }
 0x1be   : > { %4627 = vmatprep.subr.bf16.mxu0 %v5118_v59  ;;  %v5182_v46 = vld [vmem:[#allocation8 + $0x200] sm:$0xff]  }
 0x1c0   : > { %4604 = vmatpush3.bf16.msra.mxu1 %v5117_v57  ;;  %v2359_v57 = vor.u32 %v2358_v53, %v2355_v52  ;;  %v5186_v52 = vld [vmem:[#allocation8 + $0x2b0] sm:$0xff]  }
 0x1c1   : > { %4628 = vmatpush3.bf16.msra.mxu0 %v5118_v59  ;;  %4605 = vmatprep.subr.bf16.mxu1 %v5119_v61  ;;  %v5149_v59 = vld [vmem:[#allocation8 + $0x100] sm:$0xff]  }
 0x1c2   : > { %4629 = vmatprep.subr.bf16.mxu0 %v5120_v62 }
 0x1c4   : > { %4606 = vmatpush3.bf16.msra.mxu1 %v5119_v61 }
 0x1c5   : > { %4630 = vmatpush3.bf16.msra.mxu0 %v5120_v62  ;;  %4607 = vmatprep.subr.bf16.mxu1 %v5121_v63  ;;  %v5151_v62 = vld [vmem:[#allocation8 + $0x1b8] sm:$0xff]  }
 0x1c6   : > { %4631 = vmatprep.subr.bf16.mxu0 %v5122_v1 }
 0x1c8   : > { %4608 = vmatpush3.bf16.msra.mxu1 %v5121_v63  ;;  %v5152_v63 = vld [vmem:[#allocation8 + $0x1e8] sm:$0xff]  }
 0x1c9   : > { %4632 = vmatpush3.bf16.msra.mxu0 %v5122_v1  ;;  %4609 = vmatprep.subr.bf16.mxu1 %v5123_v36  ;;  %v2229_v1 = vrot.slane %v5784_v5, 3  ;;  %v5178_v5 = vld [vmem:[#allocation8 + $0x248] sm:$0xff]  }
 0x1ca   : > { %4633 = vmatprep.subr.bf16.mxu0 %v5124_v4 }
 0x1cc   : > { %4610 = vmatpush3.bf16.msra.mxu1 %v5123_v36  ;;  %v2230_v36 = vsel %vm412_vm1, %v2228_v0, %v2229_v1 }
 0x1cd   : > { %4634 = vmatpush3.bf16.msra.mxu0 %v5124_v4  ;;  %4611 = vmatprep.subr.bf16.mxu1 %v5125_v8  ;;  %v5155_v4 = vld [vmem:[#allocation8 + $0x1a8] sm:$0xff]  }
 0x1ce   : > { %4635 = vmatprep.subr.bf16.mxu0 %v5126_v9 }
 0x1d0   : > { %4612 = vmatpush3.bf16.msra.mxu1 %v5125_v8  ;;  %v5158_v8 = vld [vmem:[#allocation8 + $0x1d0] sm:$0xff]  }
 0x1d1   : > { %4636 = vmatpush3.bf16.msra.mxu0 %v5126_v9  ;;  %4613 = vmatprep.subr.bf16.mxu1 %v5127_v16  ;;  %v5159_v9 = vld [vmem:[#allocation8 + $0x198] sm:$0xff]  }
 0x1d2   : > { %4661 = vmatprep.subr.bf16.mxu0 %v5128_v17 }
 0x1d4   : > { %4614 = vmatpush3.bf16.msra.mxu1 %v5127_v16  ;;  %4638 = vmatmul.mubr.bf16.vlgmr.msra.gmra.mxu0 %v5772_v54  ;;  %v5145_v54 = vld [vmem:[#allocation8 + $0x108] sm:$0xff]  }
 0x1d5   : > { %4662 = vmatpush3.bf16.msra.mxu0 %v5128_v17  ;;  %4677 = vmatprep.mubr.bf16.mxu0 %v2106_v27  ;;  %v5817_v16 = vld [vmem:[#allocation2 + $0xc] ss:$0 sps:$4 sm:$0xff]   ;;  %v2614_v17 = vrot.slane %v2612_v11, 1  ;;  %v5168_v27 = vld [vmem:[#allocation8 + $0x270] sm:$0xff]  }
 0x1d6   : > { %4615 = vmatprep.subr.bf16.mxu1 %v5131_v25  ;;  %4663 = vmatprep.subr.bf16.mxu0 %v5132_v26  ;;  %v2617_v20 = vshll.u32 %v5817_v16, 16 }
 0x1d8   : > { %4616 = vmatpush3.bf16.msra.mxu1 %v5131_v25  ;;  %v2619_v25 = vrot.slane %v2617_v20, 1  ;;  %v5195_v20 = vld [vmem:[#allocation9 + $0x78] sm:$0xff]  }
 0x1d9   : > { %4664 = vmatpush3.bf16.msra.mxu0 %v5132_v26  ;;  %4641 = vmatprep.subr.bf16.mxu1 %v5133_v28  ;;  %v5167_v26 = vld [vmem:[#allocation8 + $0x180] sm:$0xff]  }
 0x1da   : > { %4665 = vmatprep.subr.bf16.mxu0 %v5134_v29 }
 0x1db   : > { %4618 = vmatmul.mubr.bf16.vlgmr.msra.gmra.mxu1 %v1694_v34  ;;  %v2366_v34 = vrot.slane %v2364_v51, 4  ;;  %v2746_v51 = vrot.slane %v5817_v16, 1 }
 0x1dc   : > { %4642 = vmatpush3.bf16.msra.mxu1 %v5133_v28  ;;  %4657 = vmatprep.mubr.bf16.mxu1 %v1968_v37  ;;  %v5174_v37 = vld [vmem:[#allocation8 + $0x258] sm:$0xff]  }
 0x1dd   : > { %4666 = vmatpush3.bf16.msra.mxu0 %v5134_v29  ;;  %4643 = vmatprep.subr.bf16.mxu1 %v5135_v33  ;;  %v5804_v58 = vor.u32 %v2366_v34, %v2363_v56  ;;  %v5169_v29 = vld [vmem:[#allocation8 + $0x238] sm:$0xff]   ;;  %v5191_v56 = vld [vmem:[#allocation8 + $0x288] sm:$0xff]   ;;  %v5192_v34 = vld [vmem:[#allocation8 + $0x280] sm:$0xff]  }
 0x1de   : > { %4667 = vmatprep.subr.bf16.mxu0 %v5136_v35 }
 0x1df   : > { %v2368_v61 = vsel %vm666_vm2, %v2359_v57, %v5804_v58 }
 0x1e0   : > { %4644 = vmatpush3.bf16.msra.mxu1 %v5135_v33  ;;  %v5172_v33 = vld [vmem:[#allocation8 + $0x260] sm:$0xff]  }
 0x1e1   : > { %4668 = vmatpush3.bf16.msra.mxu0 %v5136_v35  ;;  %4645 = vmatprep.subr.bf16.mxu1 %v5137_v38  ;;  %v5173_v35 = vld [vmem:[#allocation8 + $0x228] sm:$0xff]  }
 0x1e2   : > { %4669 = vmatprep.subr.bf16.mxu0 %v5138_v39 }
 0x1e4   : > { %4646 = vmatpush3.bf16.msra.mxu1 %v5137_v38  ;;  %v5175_v38 = vld [vmem:[#allocation8 + $0x220] sm:$0xff]  }
 0x1e5   : > { %4670 = vmatpush3.bf16.msra.mxu0 %v5138_v39  ;;  %4647 = vmatprep.subr.bf16.mxu1 %v5139_v40  ;;  %v5176_v39 = vld [vmem:[#allocation8 + $0x250] sm:$0xff]  }
 0x1e6   : > { %4671 = vmatprep.subr.bf16.mxu0 %v5140_v42 }
 0x1e8   : > { %4648 = vmatpush3.bf16.msra.mxu1 %v5139_v40  ;;  %v5177_v40 = vld [vmem:[#allocation8 + $0x218] sm:$0xff]  }
 0x1e9   : > { %4672 = vmatpush3.bf16.msra.mxu0 %v5140_v42  ;;  %4649 = vmatprep.subr.bf16.mxu1 %v5141_v44  ;;  %v5180_v42 = vld [vmem:[#allocation8 + $0x240] sm:$0xff]  }
 0x1ea   : > { %4673 = vmatprep.subr.bf16.mxu0 %v5142_v45 }
 0x1ec   : > { %4650 = vmatpush3.bf16.msra.mxu1 %v5141_v44  ;;  %v2621_v44 = vshrl.u32 %v5817_v16, 16 }
 0x1ed   : > { %4674 = vmatpush3.bf16.msra.mxu0 %v5142_v45  ;;  %4651 = vmatprep.subr.bf16.mxu1 %v5143_v14  ;;  %v2725_v45 = vld [vmem:[#allocation2 + $0x4] sm:$0xe] }
 0x1ee   : > { %4675 = vmatprep.subr.bf16.mxu0 %v5144_v49  ;;  %v2623_v47 = vor.u32 %v2621_v44, %v2619_v25  ;;  %v4069_v48 = vcombine.low %v2725_v45, %v5757_v21  ;;  %v5187_v21 = vld [vmem:[#allocation8 + $0x2a8] sm:$0xff]  }
 0x1f0   : > { %4652 = vmatpush3.bf16.msra.mxu1 %v5143_v14  ;;  %v5184_v14 = vld [vmem:[#allocation8 + $0x2b8] sm:$0xff]  }
 0x1f1   : > { %4676 = vmatpush3.bf16.msra.mxu0 %v5144_v49  ;;  %4653 = vmatprep.subr.bf16.mxu1 %v5145_v54  ;;  %v2745_v49 = vrot.slane %v4069_v48, 1 }
 0x1f2   : > { %4701 = vmatprep.subr.bf16.mxu0 %v5146_v55 }
 0x1f3   : > { %v2747_v53 = vsel %vm1090_vm3, %v2745_v49, %v2746_v51 }
 0x1f4   : > { %4654 = vmatpush3.bf16.msra.mxu1 %v5145_v54  ;;  %4678 = vmatmul.mubr.bf16.vlgmr.msra.gmra.mxu0 %v5788_v22  ;;  %v2615_v22 = vor.u32 %v2614_v17, %v2610_v19  ;;  %v5188_v54 = vld [vmem:[#allocation8 + $0x2a0] sm:$0xff]  }
 0x1f5   : > { %4702 = vmatpush3.bf16.msra.mxu0 %v5146_v55  ;;  %4717 = vmatprep.mubr.bf16.mxu0 %v2368_v61  ;;  %v5189_v55 = vld [vmem:[#allocation8 + $0x298] sm:$0xff]  }
 0x1f6   : > { %4655 = vmatprep.subr.bf16.mxu1 %v5149_v59  ;;  %4703 = vmatprep.subr.bf16.mxu0 %v5150_v60  ;;  %v2620_v28 = vsel %vm946_vm4, %v2615_v22, %v2619_v25  ;;  %v5196_v22 = vld [vmem:[#allocation9 + $0x28] sm:$0xff]   ;;  %v5197_v25 = vld [vmem:[#allocation9 + $0x70] sm:$0xff]  }
 0x1f8   : > { %4656 = vmatpush3.bf16.msra.mxu1 %v5149_v59 }
 0x1f9   : > { %4704 = vmatpush3.bf16.msra.mxu0 %v5150_v60  ;;  %4681 = vmatprep.subr.bf16.mxu1 %v5151_v62 }
 0x1fa   : > { %4705 = vmatprep.subr.bf16.mxu0 %v5152_v63 }
 0x1fb   : > { %4658 = vmatmul.mubr.bf16.vlgmr.msra.gmra.mxu1 %v1967_v31  ;;  %v5171_v31 = vld [vmem:[#allocation8 + $0x230] sm:$0xff]  }
 0x1fc   : > { %4682 = vmatpush3.bf16.msra.mxu1 %v5151_v62  ;;  %4697 = vmatprep.mubr.bf16.mxu1 %v2230_v36  ;;  %v5193_v36 = vld [vmem:[#allocation9 + $0x38] sm:$0xff]  }
 0x1fd   : > { %4706 = vmatpush3.bf16.msra.mxu0 %v5152_v63  ;;  %4683 = vmatprep.subr.bf16.mxu1 %v5153_v2 }
 0x1fe   : > { %4707 = vmatprep.subr.bf16.mxu0 %v5154_v3 }
 0x200   : > { %4684 = vmatpush3.bf16.msra.mxu1 %v5153_v2 }
 0x201   : > { %4708 = vmatpush3.bf16.msra.mxu0 %v5154_v3  ;;  %4685 = vmatprep.subr.bf16.mxu1 %v5155_v4 }
 0x202   : > { %4709 = vmatprep.subr.bf16.mxu0 %v5156_v6 }
 0x204   : > { %4686 = vmatpush3.bf16.msra.mxu1 %v5155_v4  ;;  %v5194_v4 = vld [vmem:[#allocation9 + $0x30] sm:$0xff]  }
 0x205   : > { %4710 = vmatpush3.bf16.msra.mxu0 %v5156_v6  ;;  %4687 = vmatprep.subr.bf16.mxu1 %v5157_v7 }
 0x206   : > { %4711 = vmatprep.subr.bf16.mxu0 %v5158_v8 }
 0x208   : > { %4688 = vmatpush3.bf16.msra.mxu1 %v5157_v7 }
 0x209   : > { %4712 = vmatpush3.bf16.msra.mxu0 %v5158_v8  ;;  %4689 = vmatprep.subr.bf16.mxu1 %v5159_v9 }
 0x20a   : > { %4713 = vmatprep.subr.bf16.mxu0 %v5160_v10 }
 0x20c   : > { %4690 = vmatpush3.bf16.msra.mxu1 %v5159_v9 }
 0x20d   : > { %4714 = vmatpush3.bf16.msra.mxu0 %v5160_v10  ;;  %4691 = vmatprep.subr.bf16.mxu1 %v5161_v12 }
 0x20e   : > { %4715 = vmatprep.subr.bf16.mxu0 %v5162_v13 }
 0x210   : > { %4692 = vmatpush3.bf16.msra.mxu1 %v5161_v12 }
 0x211   : > { %4716 = vmatpush3.bf16.msra.mxu0 %v5162_v13  ;;  %4693 = vmatprep.subr.bf16.mxu1 %v5163_v18 }
 0x212   : > { %4741 = vmatprep.subr.bf16.mxu0 %v5164_v32 }
 0x214   : > { %4694 = vmatpush3.bf16.msra.mxu1 %v5163_v18  ;;  %4718 = vmatmul.mubr.bf16.vlgmr.msra.gmra.mxu0 %v5804_v58 }
 0x215   : > { %4742 = vmatpush3.bf16.msra.mxu0 %v5164_v32  ;;  %4757 = vmatprep.mubr.bf16.mxu0 %v2620_v28  ;;  %v5200_v28 = vld [vmem:[#allocation9 + $0x18] sm:$0xff]  }
 0x216   : > { %4695 = vmatprep.subr.bf16.mxu1 %v5167_v26  ;;  %4743 = vmatprep.subr.bf16.mxu0 %v5168_v27 }
 0x218   : > { %4696 = vmatpush3.bf16.msra.mxu1 %v5167_v26  ;;  %v5198_v26 = vld [vmem:[#allocation9 + $0x20] sm:$0xff]  }
 0x219   : > { %4744 = vmatpush3.bf16.msra.mxu0 %v5168_v27  ;;  %4721 = vmatprep.subr.bf16.mxu1 %v5169_v29  ;;  %v5199_v27 = vld [vmem:[#allocation9 + $0x68] sm:$0xff]  }
 0x21a   : > { %4745 = vmatprep.subr.bf16.mxu0 %v5170_v30 }
 0x21b   : > { %4698 = vmatmul.mubr.bf16.vlgmr.msra.gmra.mxu1 %v2229_v1 }
 0x21c   : > { %4722 = vmatpush3.bf16.msra.mxu1 %v5169_v29  ;;  %4737 = vmatprep.mubr.bf16.mxu1 %v4050_v24  ;;  %v5201_v29 = vld [vmem:[#allocation9 + $0x60] sm:$0xff]  }
 0x21d   : > { %4746 = vmatpush3.bf16.msra.mxu0 %v5170_v30  ;;  %4723 = vmatprep.subr.bf16.mxu1 %v5171_v31  ;;  %v5202_v30 = vld [vmem:[#allocation9 + $0x10] sm:$0xff]  }
 0x21e   : > { %4747 = vmatprep.subr.bf16.mxu0 %v5172_v33 }
 0x220   : > { %4724 = vmatpush3.bf16.msra.mxu1 %v5171_v31  ;;  %v5203_v31 = vld [vmem:[#allocation9 + $0x58] sm:$0xff]  }
 0x221   : > { %4748 = vmatpush3.bf16.msra.mxu0 %v5172_v33  ;;  %4725 = vmatprep.subr.bf16.mxu1 %v5173_v35  ;;  %v5204_v33 = vld [vmem:[#allocation9 + $0x8] sm:$0xff]  }
 0x222   : > { %4749 = vmatprep.subr.bf16.mxu0 %v5174_v37 }
 0x224   : > { %4726 = vmatpush3.bf16.msra.mxu1 %v5173_v35 }
 0x225   : > { %4750 = vmatpush3.bf16.msra.mxu0 %v5174_v37  ;;  %4727 = vmatprep.subr.bf16.mxu1 %v5175_v38 }
 0x226   : > { %4751 = vmatprep.subr.bf16.mxu0 %v5176_v39 }
 0x228   : > { %4728 = vmatpush3.bf16.msra.mxu1 %v5175_v38  ;;  %v5205_v38 = vld [vmem:[#allocation9 + $0x50] sm:$0xff]  }
 0x229   : > { %4752 = vmatpush3.bf16.msra.mxu0 %v5176_v39  ;;  %4729 = vmatprep.subr.bf16.mxu1 %v5177_v40  ;;  %v5206_v39 = vld [vmem:[#allocation9] sm:$0xff]  }
 0x22a   : > { %4753 = vmatprep.subr.bf16.mxu0 %v5178_v5 }
 0x22c   : > { %4730 = vmatpush3.bf16.msra.mxu1 %v5177_v40 }
 0x22d   : > { %4754 = vmatpush3.bf16.msra.mxu0 %v5178_v5  ;;  %4731 = vmatprep.subr.bf16.mxu1 %v5179_v41 }
 0x22e   : > { %4755 = vmatprep.subr.bf16.mxu0 %v5180_v42 }
 0x230   : > { %4732 = vmatpush3.bf16.msra.mxu1 %v5179_v41  ;;  %v5207_v41 = vld [vmem:[#allocation9 + $0x48] sm:$0xff]  }
 0x231   : > { %4756 = vmatpush3.bf16.msra.mxu0 %v5180_v42  ;;  %4733 = vmatprep.subr.bf16.mxu1 %v5181_v43 }
 0x232   : > { %4781 = vmatprep.subr.bf16.mxu0 %v5458_v15 }
 0x234   : > { %4734 = vmatpush3.bf16.msra.mxu1 %v5181_v43  ;;  %4758 = vmatmul.mubr.bf16.vlgmr.msra.gmra.mxu0 %v2623_v47  ;;  %v5210_v47 = vld [vmem:[#allocation9 + $0x40] sm:$0xff]  }
 0x235   : > { %4735 = vmatprep.subr.bf16.mxu1 %v5182_v46  ;;  %4782 = vmatpush3.bf16.msra.mxu0 %v5195_v20 }
 0x236   : > { %4783 = vmatprep.subr.bf16.mxu0 %v5458_v15  ;;  %4797 = vmatprep.mubr.msk.bf16.mxu0 %vm5459_vm7, %v5458_v15 }
 0x238   : > { %4736 = vmatpush3.bf16.msra.mxu1 %v5182_v46 }
 0x239   : > { %4761 = vmatprep.subr.bf16.mxu1 %v5184_v14  ;;  %4784 = vmatpush3.bf16.msra.mxu0 %v5197_v25 }
 0x23a   : > { %4785 = vmatprep.subr.bf16.mxu0 %v5458_v15 }
 0x23b   : > { %4738 = vmatmul.mubr.bf16.vlgmr.msra.gmra.mxu1 %v4051_v50 }
 0x23c   : > { %4762 = vmatpush3.bf16.msra.mxu1 %v5184_v14  ;;  %4777 = vmatprep.mubr.bf16.mxu1 %v2747_v53 }
 0x23d   : > { %4763 = vmatprep.subr.bf16.mxu1 %v5186_v52  ;;  %4786 = vmatpush3.bf16.msra.mxu0 %v5199_v27 }
 0x23e   : > { %4787 = vmatprep.subr.bf16.mxu0 %v5458_v15 }
 0x240   : > { %4764 = vmatpush3.bf16.msra.mxu1 %v5186_v52 }
 0x241   : > { %4765 = vmatprep.subr.bf16.mxu1 %v5187_v21  ;;  %4788 = vmatpush3.bf16.msra.mxu0 %v5201_v29 }
 0x242   : > { %4789 = vmatprep.subr.bf16.mxu0 %v5458_v15 }
 0x244   : > { %4766 = vmatpush3.bf16.msra.mxu1 %v5187_v21 }
 0x245   : > { %4767 = vmatprep.subr.bf16.mxu1 %v5188_v54  ;;  %4790 = vmatpush3.bf16.msra.mxu0 %v5203_v31 }
 0x246   : > { %4791 = vmatprep.subr.bf16.mxu0 %v5458_v15 }
 0x248   : > { %4768 = vmatpush3.bf16.msra.mxu1 %v5188_v54 }
 0x249   : > { %4769 = vmatprep.subr.bf16.mxu1 %v5189_v55  ;;  %4792 = vmatpush3.bf16.msra.mxu0 %v5205_v38 }
 0x24a   : > { %4793 = vmatprep.subr.bf16.mxu0 %v5458_v15 }
 0x24c   : > { %4770 = vmatpush3.bf16.msra.mxu1 %v5189_v55 }
 0x24d   : > { %4771 = vmatprep.subr.bf16.mxu1 %v5190_v23  ;;  %4794 = vmatpush3.bf16.msra.mxu0 %v5207_v41 }
 0x24e   : > { %4795 = vmatprep.subr.bf16.mxu0 %v5458_v15 }
 0x250   : > { %4772 = vmatpush3.bf16.msra.mxu1 %v5190_v23 }
 0x251   : > { %4773 = vmatprep.subr.bf16.mxu1 %v5191_v56  ;;  %4796 = vmatpush3.bf16.msra.mxu0 %v5210_v47 }
 0x252   : > { %4821 = vmatprep.subr.bf16.mxu0 %v5458_v15 }
 0x254   : > { %4774 = vmatpush3.bf16.msra.mxu1 %v5191_v56 }
 0x255   : > { %4775 = vmatprep.subr.bf16.mxu1 %v5192_v34 }
 0x258   : > { %4776 = vmatpush3.bf16.msra.mxu1 %v5192_v34 }
 0x259   : > { %4801 = vmatprep.subr.bf16.mxu1 %v5458_v15 }
 0x25b   : > { %4778 = vmatmul.mubr.bf16.vlgmr.msra.gmra.mxu1 %v2746_v51 }
 0x25c   : > { %4802 = vmatpush3.bf16.msra.mxu1 %v5193_v36  ;;  %4817 = vmatprep.mubr.msk.bf16.mxu1 %vm5459_vm7, %v5458_v15 }
 0x25d   : > { %4803 = vmatprep.subr.bf16.mxu1 %v5458_v15 }
 0x260   : > { %4804 = vmatpush3.bf16.msra.mxu1 %v5194_v4 }
 0x261   : > { %4805 = vmatprep.subr.bf16.mxu1 %v5458_v15 }
 0x264   : > { %4806 = vmatpush3.bf16.msra.mxu1 %v5196_v22 }
 0x265   : > { %4807 = vmatprep.subr.bf16.mxu1 %v5458_v15 }
 0x268   : > { %4808 = vmatpush3.bf16.msra.mxu1 %v5198_v26 }
 0x269   : > { %4809 = vmatprep.subr.bf16.mxu1 %v5458_v15 }
 0x26c   : > { %4810 = vmatpush3.bf16.msra.mxu1 %v5200_v28 }
 0x26d   : > { %4811 = vmatprep.subr.bf16.mxu1 %v5458_v15 }
 0x270   : > { %4812 = vmatpush3.bf16.msra.mxu1 %v5202_v30 }
 0x271   : > { %4813 = vmatprep.subr.bf16.mxu1 %v5458_v15 }
 0x274   : > { %v4599_v57 = vpop.f32.mrf.mxu0  ;;  %4814 = vmatpush3.bf16.msra.mxu1 %v5204_v33 }
 0x275   : > { %4815 = vmatprep.subr.bf16.mxu1 %v5458_v15 }
 0x276   : > { %v1659_v58 = vpop.f32.mrf.mxu0 }
 0x278   : > { %v4600_v59 = vpop.f32.mrf.mxu0  ;;  %4816 = vmatpush3.bf16.msra.mxu1 %v5206_v39 }
 0x279   : > { %4841 = vmatprep.subr.bf16.mxu1 %v5458_v15 }
 0x27a   : > { %v1662_v1 = vpop.f32.mrf.mxu0 }
 0x27b   : > { %v4579_v60 = vpop.f32.mrf.mxu1 }
 0x27c   : > { %v1668_v61 = vadd.f32 %v4599_v57, %v4579_v60 }
 0x27d   : > { %v1558_v62 = vpop.f32.mrf.mxu1 }
 0x27e   : > { %v1660_v63 = vadd.f32 %v1659_v58, %v1558_v62 }
 0x27f   : > { %v4580_v0 = vpop.f32.mrf.mxu1 }
 0x281   : > { %v1561_v2 = vpop.f32.mrf.mxu1 }
 0x282   : > { %v1663_v3 = vadd.f32 %v1662_v1, %v1561_v2 }
 0x294   : > { %v4639_v6 = vpop.f32.mrf.mxu0 }
 0x296   : > { %v1928_v7 = vpop.f32.mrf.mxu0 }
 0x298   : > { %v4640_v8 = vpop.f32.mrf.mxu0 }
 0x29a   : > { %v1931_v32 = vpop.f32.mrf.mxu0 }
 0x29b   : > { %v4619_v24 = vpop.f32.mrf.mxu1 }
 0x29c   : > { %v1796_v9 = vadd.f32 %v4619_v24, %v1668_v61 }
 0x29d   : > { %v1780_v10 = vpop.f32.mrf.mxu1 }
 0x29e   : > { %v1794_v11 = vadd.f32 %v1780_v10, %v1660_v63  ;;  %v1944_v12 = vadd.f32 %v4639_v6, %v1796_v9 }
 0x29f   : > { %v4620_v13 = vpop.f32.mrf.mxu1 }
 0x2a0   : > { %v1942_v16 = vadd.f32 %v1928_v7, %v1794_v11 }
 0x2a1   : > { %v1783_v17 = vpop.f32.mrf.mxu1 }
 0x2a2   : > { %v1795_v18 = vadd.f32 %v1783_v17, %v1663_v3  ;;  %v1361_v3 = vlaneseq }
 0x2a4   : > { %v1943_v19 = vadd.f32 %v1931_v32, %v1795_v18  ;;  %v1362_v36 = vshrl.u32 %v1361_v3, 7 }
 0x2a6   : > { %v1364_v7 = vadd.s32 16, %v1362_v36  ;;  %v2864_v28 = vadd.s32 4294967293, %v1362_v36 }
 0x2a8   : > { %v2866_v13 = vadd.s32 4294967293, %v1364_v7  ;;  %vm2867_vm9 = vcmp.ge.s32.totalorder %v2864_v28, 0  ;;  %v5236_v28 = vld [vmem:[#allocation9 + $0x158] sm:$0xff]  }
 0x2aa   : > { %vm2872_vm8 = vcmp.lt.s32.totalorder %v2866_v13, 16  ;;  %v5229_v13 = vld [vmem:[#allocation9 + $0x80] sm:$0xff]  }
 0x2b4   : > { %v4679_v35 = vpop.f32.mrf.mxu0 }
 0x2b6   : > { %v2191_v37 = vpop.f32.mrf.mxu0 }
 0x2b8   : > { %v4680_v40 = vpop.f32.mrf.mxu0 }
 0x2ba   : > { %v2194_v50 = vpop.f32.mrf.mxu0 }
 0x2bb   : > { %v4659_v5 = vpop.f32.mrf.mxu1 }
 0x2bc   : > { %v2069_v42 = vadd.f32 %v4659_v5, %v1944_v12  ;;  %v4078_v12 = vld [vmem:[%s5993_s5] ss:$0 sm:$0xff] }
 0x2bd   : > { %v2053_v43 = vpop.f32.mrf.mxu1 }
 0x2be   : > { %v2067_v44 = vadd.f32 %v2053_v43, %v1942_v16  ;;  %v2207_v45 = vadd.f32 %v4679_v35, %v2069_v42 }
 0x2bf   : > { %v4660_v46 = vpop.f32.mrf.mxu1 }
 0x2c0   : > { %v2205_v48 = vadd.f32 %v2191_v37, %v2067_v44  ;;  %v5209_v44 = vld [vmem:[#allocation9 + $0xf8] sm:$0xff]  }
 0x2c1   : > { %v2056_v14 = vpop.f32.mrf.mxu1 }
 0x2c2   : > { %v2068_v49 = vadd.f32 %v2056_v14, %v1943_v19 }
 0x2c4   : > { %v2206_v51 = vadd.f32 %v2194_v50, %v2068_v49 }
 0x2d4   : > { %v4719_v52 = vpop.f32.mrf.mxu0 }
 0x2d6   : > { %v2453_v53 = vpop.f32.mrf.mxu0 }
 0x2d8   : > { %v4720_v21 = vpop.f32.mrf.mxu0 }
 0x2da   : > { %v2456_v59 = vpop.f32.mrf.mxu0 }
 0x2db   : > { %v4699_v54 = vpop.f32.mrf.mxu1 }
 0x2dc   : > { %v2331_v55 = vadd.f32 %v4699_v54, %v2207_v45  ;;  %v5215_v54 = vld [vmem:[#allocation9 + $0xb0] sm:$0xff]  }
 0x2dd   : > { %v2315_v23 = vpop.f32.mrf.mxu1 }
 0x2de   : > { %v2329_v56 = vadd.f32 %v2315_v23, %v2205_v48  ;;  %v2469_v34 = vadd.f32 %v4719_v52, %v2331_v55  ;;  %v5211_v48 = vld [vmem:[#allocation9 + $0xf0] sm:$0xff]   ;;  %v5213_v52 = vld [vmem:[#allocation9 + $0xb8] sm:$0xff]   ;;  %v5216_v55 = vld [vmem:[#allocation9 + $0xe0] sm:$0xff]  }
 0x2df   : > { %v4700_v57 = vpop.f32.mrf.mxu1  ;;  %v5217_v23 = vld [vmem:[#allocation9 + $0xa8] sm:$0xff]  }
 0x2e0   : > { %v2467_v58 = vadd.f32 %v2453_v53, %v2329_v56  ;;  %v5214_v53 = vld [vmem:[#allocation9 + $0xe8] sm:$0xff]  }
 0x2e1   : > { %v2318_v63 = vpop.f32.mrf.mxu1 }
 0x2e2   : > { %v2330_v4 = vadd.f32 %v2318_v63, %v2206_v51  ;;  %v5221_v63 = vld [vmem:[#allocation9 + $0x98] sm:$0xff]  }
 0x2e4   : > { %v2468_v9 = vadd.f32 %v2456_v59, %v2330_v4  ;;  %v5220_v59 = vld [vmem:[#allocation9 + $0xd0] sm:$0xff]  }
 0x2e5   : > { %v5223_v4 = vld [vmem:[#allocation9 + $0x90] sm:$0xff]  }
 0x2f4   : > { %v4759_v60 = vpop.f32.mrf.mxu0 }
 0x2f6   : > { %v2708_v61 = vpop.f32.mrf.mxu0 }
 0x2f8   : > { %v4760_v62 = vpop.f32.mrf.mxu0 }
 0x2fa   : > { %v2711_v22 = vpop.f32.mrf.mxu0 }
 0x2fb   : > { %v4739_v0 = vpop.f32.mrf.mxu1 }
 0x2fc   : > { %v2588_v6 = vadd.f32 %v4739_v0, %v2469_v34  ;;  %v5218_v34 = vld [vmem:[#allocation9 + $0xd8] sm:$0xff]   ;;  %v5222_v0 = vld [vmem:[#allocation9 + $0xc8] sm:$0xff]  }
 0x2fd   : > { %v2572_v1 = vpop.f32.mrf.mxu1 }
 0x2fe   : > { %v2586_v8 = vadd.f32 %v2572_v1, %v2467_v58  ;;  %v2724_v10 = vadd.f32 %v4759_v60, %v2588_v6  ;;  %v5219_v58 = vld [vmem:[#allocation9 + $0xa0] sm:$0xff]  }
 0x2ff   : > { %v4740_v2 = vpop.f32.mrf.mxu1  ;;  %v5224_v6 = vld [vmem:[#allocation9 + $0xc0] sm:$0xff]  }
 0x300   : > { %v2722_v18 = vadd.f32 %v2708_v61, %v2586_v8 }
 0x301   : > { %v2575_v24 = vpop.f32.mrf.mxu1 }
 0x302   : > { %v2587_v16 = vadd.f32 %v2575_v24, %v2468_v9  ;;  %v5225_v9 = vld [vmem:[#allocation9 + $0x88] sm:$0xff]  }
 0x304   : > { %v2723_v29 = vadd.f32 %v2711_v22, %v2587_v16  ;;  %v5230_v16 = vld [vmem:[#allocation9 + $0x170] sm:$0xff]  }
 0x305   : > { %v5233_v22 = vld [vmem:[#allocation9 + $0x130] sm:$0xff]  }
 0x31b   : > { %v4779_v11 = vpop.f32.mrf.mxu1 }
 0x31c   : > { %v2848_v17 = vadd.f32 %v4779_v11, %v2724_v10  ;;  %v5228_v11 = vld [vmem:[#allocation9 + $0x178] sm:$0xff]  }
 0x31d   : > { %v2832_v32 = vpop.f32.mrf.mxu1 }
 0x31e   : > { %v2858_v19 = vadd.f32 %v4078_v12, %v2848_v17  ;;  %v2846_v20 = vadd.f32 %v2832_v32, %v2722_v18  ;;  %v5231_v32 = vld [vmem:[#allocation9 + $0x138] sm:$0xff]  }
 0x31f   : > { %v4780_v25 = vpop.f32.mrf.mxu1 }
 0x320   : > { %v2861_v26 = vmax.f32 %v2858_v19, 0.0  ;;  %v2856_v27 = vadd.f32 %v4078_v12, %v2846_v20  ;;  %v5232_v19 = vld [vmem:[#allocation9 + $0x168] sm:$0xff]   ;;  %v5234_v25 = vld [vmem:[#allocation9 + $0x160] sm:$0xff]  }
 0x321   : > { %v2835_v30 = vpop.f32.mrf.mxu1 }
 0x322   : > { %v2884_v31 = vsel %vm2872_vm8, %v2861_v26, 0.0  ;;  %v2847_v33 = vadd.f32 %v2835_v30, %v2723_v29  ;;  %v2859_v37 = vmax.f32 %v2856_v27, 0.0  ;;  %v5235_v26 = vld [vmem:[#allocation9 + $0x128] sm:$0xff]   ;;  %v5237_v30 = vld [vmem:[#allocation9 + $0x120] sm:$0xff]  }
 0x323   : > { %v4157_v35 = vpack.c.bf16 %v2884_v31, %v2884_v31  ;;  %v5238_v31 = vld [vmem:[#allocation9 + $0x150] sm:$0xff]  }
 0x324   : > { %v2857_v38 = vadd.f32 %v4078_v12, %v2847_v33  ;;  %v2882_v40 = vsel %vm2867_vm9, %v2859_v37, 0.0 }
 0x325   : > { %2900 = vst [vmem:[#allocation2 + $0x8] sm:$0x7] %v4157_v35 }
 0x326   : > { %v2860_v39 = vmax.f32 %v2857_v38, 0.0  ;;  %v5239_v38 = vld [vmem:[#allocation9 + $0x118] sm:$0xff]  }
 0x328   : > { %v4170_v5 = vpack.c.bf16 %v2860_v39, %v2882_v40  ;;  %v5240_v39 = vld [vmem:[#allocation9 + $0x148] sm:$0xff]  }
 0x32a   : > { %4171 = vst [vmem:[#allocation2] sm:$0xff] %v4170_v5  }
 0x32c   : > { %v5855_v41 = vld [vmem:[#allocation2 + $0x8] ss:$0 sps:$4 sm:$0x11]  }
 0x32d   : > { %v2952_v47 = vshll.u32 %v5855_v41, 16  ;;  %v5874_v60 = vld [vmem:[#allocation2 + $0x8] ss:$0 sps:$4 sm:$0x33]   ;;  %v3157_v18 = vrot.slane %v5855_v41, 1 }
 0x32e   : > { %v3280_v1 = vshrl.u32 %v5874_v60, 16  ;;  %v3283_v2 = vshll.u32 %v5874_v60, 16  ;;  %v5902_v33 = vld [vmem:[#allocation2 + $0x8] ss:$0 sps:$4 sm:$0x77]  }
 0x32f   : > { %v2954_v51 = vrot.slane %v2952_v47, 1  ;;  %v3524_v40 = vshrl.u32 %v5902_v33, 16  ;;  %v3527_v5 = vshll.u32 %v5902_v33, 16 }
 0x330   : > { %v3282_v7 = vrot.slane %v3280_v1, 1  ;;  %v3285_v8 = vrot.slane %v3283_v2, 2 }
 0x331   : > { %v2901_v42 = vld [vmem:[#allocation2] sm:$0xf]  ;;  %v5857_v43 = vld [vmem:[#allocation2 + $0x4] sm:$0xf]  ;;  %v3529_v47 = vrot.slane %v3527_v5, 3 }
 0x332   : > { %v4082_v45 = vcombine.low %v2901_v42, %v5857_v43  ;;  %v3136_v56 = vld [vmem:[#allocation2] sm:$0xe]  ;;  %v3286_v10 = vor.u32 %v3285_v8, %v3282_v7 }
 0x333   : > { %v4100_v57 = vcombine.low %v3136_v56, %v5857_v43  ;;  %v3380_v27 = vld [vmem:[#allocation2] sm:$0xc] }
 0x334   : > { %4818 = vmatmul.mubr.bf16.vlgmr.msra.gmra.mxu1 %v4082_v45  ;;  %v2947_v46 = vshll.u32 %v4082_v45, 16  ;;  %v2945_v14 = vshrl.u32 %v4082_v45, 16  ;;  %v4118_v29 = vcombine.low %v3380_v27, %v5857_v43  ;;  %v5242_v45 = vld [vmem:[#allocation9 + $0x140] sm:$0xff]  }
 0x335   : > { %4842 = vmatpush3.bf16.msra.mxu1 %v5209_v44  ;;  %4857 = vmatprep.mubr.msk.bf16.mxu1 %vm5459_vm7, %v5458_v15  ;;  %v3272_v61 = vshrl.u32 %v4100_v57, 16  ;;  %v3275_v62 = vshll.u32 %v4100_v57, 16  ;;  %v3156_v17 = vrot.slane %v4100_v57, 1  ;;  %v5241_v44 = vld [vmem:[#allocation9 + $0x110] sm:$0xff]   ;;  %v5250_v56 = vld [vmem:[#allocation9 + $0x1a0] sm:$0xff]  }
 0x336   : > { %4843 = vmatprep.subr.bf16.mxu1 %v5458_v15  ;;  %v2949_v49 = vrot.slane %v2947_v46, 1  ;;  %v3516_v35 = vshrl.u32 %v4118_v29, 16  ;;  %v3519_v37 = vshll.u32 %v4118_v29, 16  ;;  %v3526_v46 = vrot.slane %v3524_v40, 2  ;;  %v5252_v57 = vld [vmem:[#allocation9 + $0x190] sm:$0xff]  }
 0x337   : > { %v3274_v3 = vrot.slane %v3272_v61, 1  ;;  %v3277_v36 = vrot.slane %v3275_v62, 2  ;;  %v3158_v20 = vsel %vm1090_vm3, %v3156_v17, %v3157_v18  ;;  %v5254_v61 = vld [vmem:[#allocation9 + $0x180] sm:$0xff]  }
 0x338   : > { %v2950_v50 = vor.u32 %v2949_v49, %v2945_v14  ;;  %v3518_v41 = vrot.slane %v3516_v35, 2  ;;  %v3521_v42 = vrot.slane %v3519_v37, 3  ;;  %v5243_v14 = vld [vmem:[#allocation9 + $0x108] sm:$0xff]   ;;  %v3530_v49 = vor.u32 %v3529_v47, %v3526_v46  ;;  %v4177_v35 = vld [vmem:[%s5647_s16 + $0x8] sm:$0xff]   ;;  %v4145_v40 = vld [vmem:[%s5994_s6] ss:$0 sm:$0xff] }
 0x339   : > { %4844 = vmatpush3.bf16.msra.mxu1 %v5211_v48  ;;  %v3278_v24 = vor.u32 %v3277_v36, %v3274_v3  ;;  %s5368_s16 = scalar_lea.vmem %s5367_s28, 512 }
 0x33a   : > { %v2955_v21 = vsel %vm946_vm4, %v2950_v50, %v2954_v51  ;;  %4845 = vmatprep.subr.bf16.mxu1 %v5458_v15  ;;  %v3522_v48 = vor.u32 %v3521_v42, %v3518_v41  ;;  %v5246_v51 = vld [vmem:[#allocation9 + $0x100] sm:$0xff]   ;;  %v4174_v41 = vunpack.c.l.bf16 %v4177_v35  ;;  %p5370_p11 = scmp.lt.s32.totalorder %s5368_s16, %s5362_s3 }
 0x33b   : > { %4798 = vmatmul.mubr.bf16.vlgmr.msra.gmra.mxu0 %v2955_v21  ;;  %v3287_v12 = vsel %vm1219_vm5, %v3278_v24, %v3286_v10  ;;  %v5247_v21 = vld [vmem:[#allocation9 + $0x1b8] sm:$0xff]  }
 0x33c   : > { %4822 = vmatpush3.bf16.msra.mxu0 %v5213_v52  ;;  %4837 = vmatprep.mubr.msk.bf16.mxu0 %vm5459_vm7, %v5458_v15  ;;  %v3531_v50 = vsel %vm520_vm0, %v3522_v48, %v3530_v49  ;;  %v3400_v52 = vrot.slane %v4118_v29, 2  ;;  %p5371_p2 = por %p5370_p11, %p5369_p5 }
 0x33d   : > { %4846 = vmatpush3.bf16.msra.mxu1 %v5214_v53  ;;  %4823 = vmatprep.subr.bf16.mxu0 %v5458_v15  ;;  %v3401_v53 = vrot.slane %v5874_v60, 2 }
 0x33e   : > { %4847 = vmatprep.subr.bf16.mxu1 %v5458_v15  ;;  %p5372_p10 = pnand %p5371_p2, %p5365_p8 }
 0x340   : > { %4824 = vmatpush3.bf16.msra.mxu0 %v5215_v54  ;;  %v3402_v54 = vsel %vm1965_vm6, %v3400_v52, %v3401_v53 }
 0x341   : > { %4848 = vmatpush3.bf16.msra.mxu1 %v5216_v55  ;;  %4825 = vmatprep.subr.bf16.mxu0 %v5458_v15  ;;  %v5248_v55 = vld [vmem:[#allocation9 + $0x1b0] sm:$0xff]  }
 0x342   : > { %4849 = vmatprep.subr.bf16.mxu1 %v5458_v15 }
 0x344   : > { %4826 = vmatpush3.bf16.msra.mxu0 %v5217_v23  ;;  %v5249_v23 = vld [vmem:[#allocation9 + $0x1a8] sm:$0xff]  }
 0x345   : > { %4850 = vmatpush3.bf16.msra.mxu1 %v5218_v34  ;;  %4827 = vmatprep.subr.bf16.mxu0 %v5458_v15  ;;  %v5251_v34 = vld [vmem:[#allocation9 + $0x198] sm:$0xff]  }
 0x346   : > { %4851 = vmatprep.subr.bf16.mxu1 %v5458_v15 }
 0x348   : > { %4828 = vmatpush3.bf16.msra.mxu0 %v5219_v58  ;;  %v3624_v58 = vld [vmem:[#allocation2] sm:$0x8] }
 0x349   : > { %4852 = vmatpush3.bf16.msra.mxu1 %v5220_v59  ;;  %4829 = vmatprep.subr.bf16.mxu0 %v5458_v15  ;;  %v5253_v59 = vld [vmem:[#allocation9 + $0x188] sm:$0xff]   ;;  %v4136_v60 = vcombine.low %v3624_v58, %v5857_v43 }
 0x34a   : > { %4853 = vmatprep.subr.bf16.mxu1 %v5458_v15 }
 0x34b   : > { %v3644_v62 = vrot.slane %v4136_v60, 3 }
 0x34c   : > { %4830 = vmatpush3.bf16.msra.mxu0 %v5221_v63  ;;  %v3645_v63 = vrot.slane %v5902_v33, 3 }
 0x34d   : > { %4854 = vmatpush3.bf16.msra.mxu1 %v5222_v0  ;;  %4831 = vmatprep.subr.bf16.mxu0 %v5458_v15 }
 0x34e   : > { %4855 = vmatprep.subr.bf16.mxu1 %v5458_v15  ;;  %v3646_v0 = vsel %vm412_vm1, %v3644_v62, %v3645_v63 }
 0x350   : > { %4832 = vmatpush3.bf16.msra.mxu0 %v5223_v4 }
 0x351   : > { %4856 = vmatpush3.bf16.msra.mxu1 %v5224_v6  ;;  %4833 = vmatprep.subr.bf16.mxu0 %v5458_v15 }
 0x352   : > { %4881 = vmatprep.subr.bf16.mxu1 %v5458_v15 }
 0x354   : > { %4834 = vmatpush3.bf16.msra.mxu0 %v5225_v9  ;;  %4858 = vmatmul.mubr.bf16.vlgmr.msra.gmra.mxu1 %v3287_v12 }
 0x355   : > { %4882 = vmatpush3.bf16.msra.mxu1 %v5228_v11  ;;  %4835 = vmatprep.subr.bf16.mxu0 %v5458_v15 }
 0x356   : > { %4883 = vmatprep.subr.bf16.mxu1 %v5458_v15  ;;  %4897 = vmatprep.mubr.msk.bf16.mxu1 %vm5459_vm7, %v5458_v15 }
 0x358   : > { %4836 = vmatpush3.bf16.msra.mxu0 %v5229_v13 }
 0x359   : > { %4884 = vmatpush3.bf16.msra.mxu1 %v5230_v16  ;;  %4861 = vmatprep.subr.bf16.mxu0 %v5458_v15 }
 0x35a   : > { %4885 = vmatprep.subr.bf16.mxu1 %v5458_v15 }
 0x35b   : > { %4838 = vmatmul.mubr.bf16.vlgmr.msra.gmra.mxu0 %v3158_v20 }
 0x35c   : > { %4862 = vmatpush3.bf16.msra.mxu0 %v5231_v32  ;;  %4877 = vmatprep.mubr.msk.bf16.mxu0 %vm5459_vm7, %v5458_v15 }
 0x35d   : > { %4886 = vmatpush3.bf16.msra.mxu1 %v5232_v19  ;;  %4863 = vmatprep.subr.bf16.mxu0 %v5458_v15 }
 0x35e   : > { %4887 = vmatprep.subr.bf16.mxu1 %v5458_v15 }
 0x360   : > { %4864 = vmatpush3.bf16.msra.mxu0 %v5233_v22 }
 0x361   : > { %4888 = vmatpush3.bf16.msra.mxu1 %v5234_v25  ;;  %4865 = vmatprep.subr.bf16.mxu0 %v5458_v15 }
 0x362   : > { %4889 = vmatprep.subr.bf16.mxu1 %v5458_v15 }
 0x364   : > { %4866 = vmatpush3.bf16.msra.mxu0 %v5235_v26 }
 0x365   : > { %4890 = vmatpush3.bf16.msra.mxu1 %v5236_v28  ;;  %4867 = vmatprep.subr.bf16.mxu0 %v5458_v15 }
 0x366   : > { %4891 = vmatprep.subr.bf16.mxu1 %v5458_v15 }
 0x368   : > { %4868 = vmatpush3.bf16.msra.mxu0 %v5237_v30 }
 0x369   : > { %4892 = vmatpush3.bf16.msra.mxu1 %v5238_v31  ;;  %4869 = vmatprep.subr.bf16.mxu0 %v5458_v15 }
 0x36a   : > { %4893 = vmatprep.subr.bf16.mxu1 %v5458_v15 }
 0x36c   : > { %4870 = vmatpush3.bf16.msra.mxu0 %v5239_v38 }
 0x36d   : > { %4894 = vmatpush3.bf16.msra.mxu1 %v5240_v39  ;;  %4871 = vmatprep.subr.bf16.mxu0 %v5458_v15 }
 0x36e   : > { %4895 = vmatprep.subr.bf16.mxu1 %v5458_v15 }
 0x370   : > { %4872 = vmatpush3.bf16.msra.mxu0 %v5241_v44 }
 0x371   : > { %4896 = vmatpush3.bf16.msra.mxu1 %v5242_v45  ;;  %4873 = vmatprep.subr.bf16.mxu0 %v5458_v15 }
 0x374   : > { %4874 = vmatpush3.bf16.msra.mxu0 %v5243_v14  ;;  %4898 = vmatmul.mubr.bf16.vlgmr.msra.gmra.mxu1 %v3531_v50  ;;  %v4175_v14 = vunpack.c.h.bf16 %v4177_v35 }
 0x375   : > { %4875 = vmatprep.subr.bf16.mxu0 %v5458_v15 }
 0x378   : > { %4876 = vmatpush3.bf16.msra.mxu0 %v5246_v51 }
 0x379   : > { %4901 = vmatprep.subr.bf16.mxu0 %v5458_v15 }
 0x37b   : > { %4878 = vmatmul.mubr.bf16.vlgmr.msra.gmra.mxu0 %v3402_v54 }
 0x37c   : > { %4902 = vmatpush3.bf16.msra.mxu0 %v5247_v21  ;;  %4917 = vmatprep.mubr.msk.bf16.mxu0 %vm5459_vm7, %v5458_v15 }
 0x37d   : > { %4903 = vmatprep.subr.bf16.mxu0 %v5458_v15 }
 0x380   : > { %4904 = vmatpush3.bf16.msra.mxu0 %v5248_v55 }
 0x381   : > { %4905 = vmatprep.subr.bf16.mxu0 %v5458_v15 }
 0x384   : > { %4906 = vmatpush3.bf16.msra.mxu0 %v5249_v23 }
 0x385   : > { %4907 = vmatprep.subr.bf16.mxu0 %v5458_v15 }
 0x388   : > { %4908 = vmatpush3.bf16.msra.mxu0 %v5250_v56 }
 0x389   : > { %4909 = vmatprep.subr.bf16.mxu0 %v5458_v15 }
 0x38c   : > { %4910 = vmatpush3.bf16.msra.mxu0 %v5251_v34 }
 0x38d   : > { %4911 = vmatprep.subr.bf16.mxu0 %v5458_v15 }
 0x390   : > { %4912 = vmatpush3.bf16.msra.mxu0 %v5252_v57 }
 0x391   : > { %4913 = vmatprep.subr.bf16.mxu0 %v5458_v15 }
 0x394   : > { %4914 = vmatpush3.bf16.msra.mxu0 %v5253_v59 }
 0x395   : > { %4915 = vmatprep.subr.bf16.mxu0 %v5458_v15 }
 0x398   : > { %4916 = vmatpush3.bf16.msra.mxu0 %v5254_v61 }
 0x39b   : > { %4918 = vmatmul.mubr.bf16.vlgmr.msra.gmra.mxu0 %v3646_v0 }
 0x3f4   : > { %v3129_v1 = vpop.f32.mrf.mxu1 }
 0x3f6   : > { %v4819_v2 = vpop.f32.mrf.mxu1 }
 0x3f8   : > { %v3132_v3 = vpop.f32.mrf.mxu1 }
 0x3fa   : > { %v4820_v36 = vpop.f32.mrf.mxu1 }
 0x3fb   : > { %v3039_v4 = vpop.f32.mrf.mxu0 }
 0x3fc   : > { %v3130_v6 = vadd.f32 %v3129_v1, %v3039_v4 }
 0x3fd   : > { %v4799_v7 = vpop.f32.mrf.mxu0 }
 0x3ff   : > { %v3042_v8 = vpop.f32.mrf.mxu0 }
 0x400   : > { %v3133_v43 = vadd.f32 %v3132_v3, %v3042_v8 }
 0x401   : > { %v4800_v24 = vpop.f32.mrf.mxu0 }
 0x414   : > { %v3371_v9 = vpop.f32.mrf.mxu1 }
 0x416   : > { %v4859_v10 = vpop.f32.mrf.mxu1 }
 0x418   : > { %v3374_v15 = vpop.f32.mrf.mxu1 }
 0x41a   : > { %v4860_v11 = vpop.f32.mrf.mxu1 }
 0x41b   : > { %v3242_v12 = vpop.f32.mrf.mxu0 }
 0x41c   : > { %v3249_v13 = vadd.f32 %v3242_v12, %v3130_v6 }
 0x41d   : > { %v4839_v16 = vpop.f32.mrf.mxu0 }
 0x41e   : > { %v3378_v17 = vadd.f32 %v3371_v9, %v3249_v13 }
 0x41f   : > { %v3245_v18 = vpop.f32.mrf.mxu0 }
 0x420   : > { %v3250_v32 = vadd.f32 %v3245_v18, %v3133_v43 }
 0x421   : > { %v4840_v19 = vpop.f32.mrf.mxu0 }
 0x422   : > { %v3379_v20 = vadd.f32 %v3374_v15, %v3250_v32 }
 0x434   : > { %v3615_v22 = vpop.f32.mrf.mxu1 }
 0x436   : > { %v4899_v25 = vpop.f32.mrf.mxu1 }
 0x438   : > { %v3618_v26 = vpop.f32.mrf.mxu1 }
 0x43a   : > { %v4900_v27 = vpop.f32.mrf.mxu1 }
 0x43b   : > { %v3486_v28 = vpop.f32.mrf.mxu0 }
 0x43c   : > { %v3493_v33 = vadd.f32 %v3486_v28, %v3378_v17 }
 0x43d   : > { %v4879_v29 = vpop.f32.mrf.mxu0 }
 0x43e   : > { %v3622_v38 = vadd.f32 %v3615_v22, %v3493_v33 }
 0x43f   : > { %v3489_v30 = vpop.f32.mrf.mxu0 }
 0x440   : > { %v3494_v37 = vadd.f32 %v3489_v30, %v3379_v20 }
 0x441   : > { %v4880_v31 = vpop.f32.mrf.mxu0 }
 0x442   : > { %v3623_v45 = vadd.f32 %v3618_v26, %v3494_v37 }
 0x45b   : > { %v3730_v39 = vpop.f32.mrf.mxu0 }
 0x45c   : > { %v3737_v5 = vadd.f32 %v3730_v39, %v3622_v38 }
 0x45d   : > { %v4919_v42 = vpop.f32.mrf.mxu0 }
 0x45e   : > { %v3746_v44 = vadd.f32 %v4145_v40, %v3737_v5 }
 0x45f   : > { %v3733_v46 = vpop.f32.mrf.mxu0 }
 0x460   : > { %v3752_v47 = vadd.f32 %v4174_v41, %v3746_v44  ;;  %v3738_v48 = vadd.f32 %v3733_v46, %v3623_v45 }
 0x461   : > { %v4920_v49 = vpop.f32.mrf.mxu0 }
 0x462   : > { %v3754_v50 = vmax.f32 %v3752_v47, 0.0  ;;  %v3747_v51 = vadd.f32 %v4145_v40, %v3738_v48 }
 0x464   : > { %3756 = vst [vmem:[%s358_s19] sm:$0xff] %v3754_v50  ;;  %v3753_v52 = vadd.f32 %v4175_v14, %v3747_v51 }
 0x466   : > { %v3755_v53 = vmax.f32 %v3753_v52, 0.0 }
 0x468   : > { %3757 = vst [vmem:[%s358_s19 + $0x8] sm:$0xff] %v3755_v53 }
 0x469   : > { %5375 = shalt.err (!%p5372_p10)
}
 0x46a   : > { %s5376_s1 = scalar_lea.hbm %s5940_s23, 256  ;;  %s5380_s11 = scalar_lea.hbm %s5995_s7, 512 }
 0x46b   : > { %p5377_p7 = scmp.ne.s32.totalorder %s5940_s23, %s5376_s1  ;;  %p5381_p9 = scmp.lt.s32.totalorder %s5940_s23, %s5995_s7 }
 0x46c   : > { %p5382_p0 = scmp.lt.s32.totalorder %s5380_s11, %s5376_s1 }
 0x46d   : > { %p5378_p6 = pnand %p5377_p7, %p5612_p13 }
 0x46e   : > { %p5383_p3 = por %p5382_p0, %p5381_p9 }
 0x46f   : > { %p5379_p12 = pneg %p5378_p6 }
 0x471   : > { %p5384_p1 = pnand %p5383_p3, %p5379_p12 }
 0x473   : > { %5387 = shalt.err (!%p5384_p1)
}
 0x474   : > { %s5461_s20 = smov 128   ;;  %s5462_s19 = smov 8  }
 0x475   : > { %4938 = dma.vmem_to_hbm [thread:$0]  (%p5612_p13), %s5935_s15, 256, %s5940_s23, %s3759_s18, %s5461_s20, %s5461_s20, %s5462_s19  }
 0x476 PF: > { %s3789_s21 = sand.u32 1, %s5430_s24   ;;  %p6018_p4 = scmp.ne.s32.totalorder %s6007_s12, 0 }
 0x477   : > { %p6019_p8 = scmp.ge.s32.totalorder %s5450_s29, 2  ;;  %s3790_s30 = scalar_lea.sflag [#allocation5], %s3789_s21 }
 0x479   : > { %p4955_p5 = pnand %p6019_p8, %p6018_p4 }
 0x47b   : > { %p4956_p11 = pneg %p4955_p5 }
 0x47d   : > { %5425 = dma.done.wait (%p4956_p11), %s3790_s30, 256  }
 0x47e   : > { %5427 = vsyncadd (%p4956_p11), %s3790_s30, 4294967040  ;;  %s25_s29 = sadd.s32 1, %s5450_s29   ;;  %s6020_s27 = sld [smem:[#allocation16_spill]] }
 0x47f   : > { %p22_p2 = scmp.ge.s32.totalorder %s25_s29, 4   ;;  %s6021_s28 = sld [smem:[#allocation17_spill]] }
 0x480   : > { %s6022_s24 = smov %s5434_s25  ;;  %s6023_s25 = smov %s5438_s26 }
 0x481   : > { %s6024_s26 = smov %s5628_s10  ;;  %24 = sbr.rel (!%p22_p2) target bundleno = 12 (0xc), region = 105 }
 0x486   :  { %3795 = vsyncpa [#allocation4], 1 }
 0x487   :  { %3797 = vsyncpa [#allocation4 + $0x1], 1 }
 0x488   :  { %3798 = vsyncpa [#allocation7], 1 }
 0x489   :  { %3799 = vsyncpa [#allocation10], 1 }
 0x48a   :  { %3800 = vsyncpa [#allocation5], 1 }
 0x48b   :  { %3802 = vsyncpa [#allocation5 + $0x1], 1 }

// kernel: tpu_custom_call.1
= control target key start
LH: loop header
LB: loop body
LE: loop exit
PB: predicated region body
PF: predicated region fallthrough
CT: control target
= control target key end

     0   :  { %s5988_s0 = inlined_call_operand.hbm [shape: bf16[2,1,48,128], index: 0, kind: input, shape index: {}]   ;;  %s5989_s1 = inlined_call_operand.hbm [shape: bf16[896,128], index: 1, kind: input, shape index: {}]   ;;  %s5990_s2 = inlined_call_operand.hbm [shape: bf16[1408,128], index: 2, kind: input, shape index: {}]   ;;  %s5991_s3 = inlined_call_operand.hbm [shape: bf16[896,128], index: 3, kind: input, shape index: {}]   ;;  %s5992_s4 = inlined_call_operand.vmem [shape: f32[1,128], index: 4, kind: input, shape index: {}]   ;;  %s5993_s5 = inlined_call_operand.vmem [shape: f32[1,128], index: 5, kind: input, shape index: {}]   ;;  %s5994_s6 = inlined_call_operand.vmem [shape: f32[1,128], index: 6, kind: input, shape index: {}]   ;;  %s5995_s7 = inlined_call_operand.hbm [shape: f32[2,16,128], index: 7, kind: output, shape index: {}]  }
   0x1   :  { %6000 = sst [smem:[#allocation18_spill]] %s5989_s1 }
   0x2   :  { %6001 = sst [smem:[#allocation19_spill]] %s5990_s2 }
   0x3   :  { %6002 = sst [smem:[#allocation20_spill]] %s5991_s3 }
   0x4   :  { %12 = vsyncpa [#allocation4], 0 }
   0x5   :  { %14 = vsyncpa [#allocation4 + $0x1], 0 }
   0x6   :  { %15 = vsyncpa [#allocation7], 0 }
   0x7   :  { %16 = vsyncpa [#allocation10], 0 }
   0x8   :  { %17 = vsyncpa [#allocation5], 0 }
   0x9   :  { %19 = vsyncpa [#allocation5 + $0x1], 0  ;;  %s5503_s24 = smov 0   ;;  %s5505_s25 = smov 0  }
   0xa   :  { %s5507_s26 = smov 0   ;;  %s5509_s27 = smov 0  }
   0xb   :  { %s5511_s28 = smov 0   ;;  %s5513_s29 = smov 0  }
   0xc LB: > { %6003 = sst [smem:[#allocation16_spill]] %s5446_s28  ;;  %s3890_s30 = sadd.s32 4294967295, %s5450_s29   ;;  %s5450_s29 = sphi %s5513_s29, %s25_s29   ;;  %s5446_s28 = sphi %s5511_s28, %s6021_s28   ;;  %s5442_s27 = sphi %s5509_s27, %s6020_s27   ;;  %s5438_s26 = sphi %s5507_s26, %s6024_s26   ;;  %s5434_s25 = sphi %s5505_s25, %s6023_s25   ;;  %s5430_s24 = sphi %s5503_s24, %s6022_s24  }
   0xd   : > { %s3891_s8 = sadd.s32 4294967294, %s5450_s29   ;;  %p59_p0 = scmp.ne.s32.totalorder %s5434_s25, %s5430_s24 }
   0xe   : > { %p5537_p1 = scmp.eq.s32.totalorder %s3890_s30, 0  ;;  %p5541_p2 = scmp.eq.s32.totalorder %s3890_s30, 1 }
   0xf   : > { %p217_p3 = scmp.eq.s32.totalorder %s3891_s8, 1  ;;  %p3892_p5 = scmp.ge.s32.totalorder %s5450_s29, 1 }
  0x10   : > { %p5547_p4 = por %p5537_p1, %p59_p0  ;;  %p224_p7 = scmp.lt.s32.totalorder %s5450_s29, 3 }
  0x11   : > { %p5552_p6 = por %p217_p3, %p59_p0  ;;  %s5452_s14 = smov [#allocation6]  }
  0x12   : > { %p5557_p8 = pnand %p3892_p5, %p224_p7  ;;  %s236_s15 = sshll.u32 %s5452_s14, 4  ;;  %s237_s15 = int_to_ptr.vmem [resolvable:$true] %s236_s15 }
  0x13   : > { %s6007_s12 = scalar_select %p5552_p6, 1, 0 }
  0x14   : > { %p4940_p9 = pneg %p5557_p8  ;;  %s5453_s17 = smov [#allocation8]  }
  0x15   : > { %s249_s18 = sshll.u32 %s5453_s17, 4  ;;  %s5454_s19 = smov [#allocation9]   ;;  %s250_s18 = int_to_ptr.vmem [resolvable:$true] %s249_s18 }
  0x16   : > { %p5566_p11 = pnand %p4940_p9, %p5537_p1  ;;  %s262_s20 = sshll.u32 %s5454_s19, 4  ;;  %s263_s20 = int_to_ptr.vmem [resolvable:$true] %s262_s20 }
  0x17   : > { %s5267_s21 = scalar_lea.vmem %s237_s15, 7168  ;;  %p5275_p5 = scmp.lt.s32.totalorder %s237_s15, %s237_s15 }
  0x18   : > { %p5258_p12 = pneg %p5566_p11  ;;  %p5268_p13 = scmp.ne.s32.totalorder %s237_s15, %s5267_s21 }
  0x19   : > { %p5276_p7 = scmp.lt.s32.totalorder %s5267_s21, %s5267_s21 }
  0x1a   : > { %p5270_p0 = pnand %p5268_p13, %p5258_p12 }
  0x1b   : > { %p5277_p9 = por %p5276_p7, %p5275_p5 }
  0x1c   : > { %p5271_p3 = pneg %p5270_p0 }
  0x1e   : > { %p5278_p10 = pnand %p5277_p9, %p5271_p3 }
  0x20   : > { %5281 = shalt.err (!%p5278_p10)
}
  0x21   : > { %s5996_s22 = smov 64   ;;  %s5997_s23 = smov 4  }
  0x22   : > { %s6010_s1 = sld [smem:[#allocation18_spill]]  ;;  %s5293_s14 = scalar_lea.vmem %s250_s18, 11264 }
  0x23   : > { %p5294_p13 = scmp.ne.s32.totalorder %s250_s18, %s5293_s14  ;;  %p5301_p3 = scmp.lt.s32.totalorder %s250_s18, %s250_s18 }
  0x24   : > { %p5302_p10 = scmp.lt.s32.totalorder %s5293_s14, %s5293_s14 }
  0x25   : > { %p5296_p0 = pnand %p5294_p13, %p5258_p12 }
  0x26   : > { %p5303_p7 = por %p5302_p10, %p5301_p3 }
  0x27   : > { %p5297_p5 = pneg %p5296_p0 }
  0x28   : > { %4943 = dma.hbm_to_vmem [thread:$0]  (!%p5566_p11), %s6010_s1, 7168, %s237_s15, [#allocation7], %s5996_s22, %s5996_s22, %s5997_s23  }
  0x29   : > { %p5304_p9 = pnand %p5303_p7, %p5297_p5 }
  0x2b   : > { %5307 = shalt.err (!%p5304_p9)
}
  0x2c   : > { %s6011_s2 = sld [smem:[#allocation19_spill]]  ;;  %s5319_s15 = scalar_lea.vmem %s263_s20, 7168 }
  0x2d   : > { %p5320_p6 = scmp.ne.s32.totalorder %s263_s20, %s5319_s15  ;;  %p5327_p3 = scmp.lt.s32.totalorder %s263_s20, %s263_s20 }
  0x2e   : > { %p5328_p5 = scmp.lt.s32.totalorder %s5319_s15, %s5319_s15 }
  0x2f   : > { %p5322_p13 = pnand %p5320_p6, %p5258_p12 }
  0x30   : > { %p5329_p10 = por %p5328_p5, %p5327_p3 }
  0x31   : > { %p5323_p0 = pneg %p5322_p13 }
  0x32   : > { %4946 = dma.hbm_to_vmem [thread:$0]  (!%p5566_p11), %s6011_s2, 11264, %s250_s18, [#allocation7], %s5996_s22, %s5996_s22, %s5997_s23  }
  0x33   : > { %p5330_p7 = pnand %p5329_p10, %p5323_p0 }
  0x35   : > { %5333 = shalt.err (!%p5330_p7)
}
  0x36   : > { %s6012_s3 = sld [smem:[#allocation20_spill]]  ;;  %s46_s18 = sadd.s32 1, %s5438_s26 }
  0x37   : > { %s37_s16 = sadd.s32 1, %s5446_s28  ;;  %p53_p6 = scmp.ne.s32.totalorder %s5438_s26, %s5434_s25 }
  0x38   : > { %p39_p12 = scmp.ge.s32.totalorder %s37_s16, 2  ;;  %p54_p9 = scmp.eq.s32.totalorder %s5450_s29, 0 }
  0x39   : > { %p5612_p13 = por %p5541_p2, %p53_p6  ;;  %p4961_p0 = scmp.lt.s32.totalorder %s5450_s29, 2 }
  0x3a   : > { %s6026_s16 = smov (%p39_p12, %s37_s16), 0  ;;  %p55_p3 = por %p54_p9, %p53_p6 }
  0x3b   : > { %6014 = sst [smem:[#allocation17_spill]] %s6026_s16  ;;  %s285_s14 = sand.u32 1, %s5438_s26  }
  0x3c   : > { %4949 = dma.hbm_to_vmem [thread:$0]  (!%p5566_p11), %s6012_s3, 7168, %s263_s20, [#allocation10], %s5996_s22, %s5996_s22, %s5997_s23  }
  0x3d   : > { %s41_s17 = ssub.s32 %s5446_s28, %s6026_s16  ;;  %s4921_s20 = smul.u32 24, %s285_s14 }
  0x3e   : > { %p44_p5 = scmp.eq.s32.totalorder %s41_s17, 0  ;;  %s4922_s19 = smul.u32 384, %s5446_s28 }
  0x3f   : > { %p5623_p11 = pnand %p4961_p0, %p55_p3  ;;  %s289_s23 = scalar_lea.vmem [#allocation3], %s4921_s20 }
  0x40   : > { %s5628_s10 = scalar_select %p44_p5, %s5438_s26, %s46_s18  }
  0x41   : > { %s297_s22 = scalar_lea.hbm %s5988_s0, %s4922_s19  ;;  %s298_s1 = sshll.u32 %s289_s23, 4  ;;  %s299_s1 = int_to_ptr.vmem [resolvable:$true] %s298_s1 }
  0x42   : > { %s286_s2 = scalar_lea.sflag [#allocation4], %s285_s14  ;;  %p5336_p2 = pneg %p5623_p11 }
  0x43   : > { %s5347_s17 = scalar_lea.vmem %s299_s1, 384  ;;  %s5457_s3 = smov [#allocation3]  }
  0x44   : > { %p5348_p10 = scmp.ne.s32.totalorder %s299_s1, %s5347_s17  ;;  %s5352_s16 = sshll.u32 %s5457_s3, 4  ;;  %s5353_s16 = int_to_ptr.vmem [resolvable:$false] %s5352_s16 }
  0x45   : > { %s5354_s28 = scalar_lea.vmem %s5353_s16, 768  ;;  %p5355_p12 = scmp.lt.s32.totalorder %s299_s1, %s5353_s16 }
  0x46   : > { %p5350_p7 = pnand %p5348_p10, %p5336_p2  ;;  %p5356_p9 = scmp.lt.s32.totalorder %s5354_s28, %s5347_s17 }
  0x48   : > { %p5351_p6 = pneg %p5350_p7  ;;  %p5357_p0 = por %p5356_p9, %p5355_p12 }
  0x4a   : > { %p5358_p3 = pnand %p5357_p0, %p5351_p6 }
  0x4c   : > { %5361 = shalt.err (!%p5358_p3)
}
  0x4d   : > { %s6016_s23 = smov 4   ;;  %s6017_s18 = smov 64  }
  0x4e   : > { %4953 = dma.hbm_to_vmem [thread:$0]  (!%p5623_p11), %s297_s22, 384, %s299_s1, %s286_s2, %s6017_s18, %s6017_s18, %s6016_s23  }
  0x4f   : > { %310 = sbr.rel (%p5557_p8) target bundleno = 1142 (0x476), region = 48  ;;  %s5643_s14 = sand.u32 (!%p5557_p8), 1, %s5434_s25  }
  0x50   : > { %s4923_s3 = smul.u32 (!%p5557_p8), 24, %s5643_s14  ;;  %s313_s28 = scalar_lea.sflag (!%p5557_p8), [#allocation4], %s5643_s14 }
  0x52   : > { %s5647_s16 = scalar_lea.vmem (!%p5557_p8), [#allocation3], %s4923_s3 }
  0x54   : > { %5413 = dma.done.wait (%p5547_p4), %s313_s28, 384  }
  0x55   : > { %5415 = vsyncadd (%p5547_p4), %s313_s28, 4294966912 }
  0x56   : > { %5417 = dma.done.wait (%p5537_p1), [#allocation7], 18432  }
  0x57   : > { %5419 = vsyncadd (%p5537_p1), [#allocation7], 4294948864 }
  0x58   : > { %5421 = dma.done.wait (%p5537_p1), [#allocation10], 7168  }
  0x59   : > { %5423 = vsyncadd (%p5537_p1), [#allocation10], 4294960128  ;;  %v5023_v0 = vld [vmem:[#allocation6 + $0x78] sm:$0xff]   ;;  %v5025_v2 = vld [vmem:[#allocation6 + $0x70] sm:$0xff]   ;;  %vm520_vm0 = vsmask.f32 5376 }
  0x5a   : > { %v5024_v1 = vld [vmem:[#allocation6 + $0x38] sm:$0xff]   ;;  %4421 = vmatprep.subr.bf16.mxu0 %v5023_v0  ;;  %v5026_v3 = vld [vmem:[#allocation6 + $0x30] sm:$0xff]   ;;  %v5027_v4 = vld [vmem:[#allocation6 + $0x68] sm:$0xff]   ;;  %vm412_vm1 = vcmask 1044480   ;;  %vm666_vm2 = vsmask.f32 4352 }
  0x5b   : > { %4441 = vmatprep.subr.bf16.mxu1 %v5024_v1  ;;  %4422 = vmatpush3.bf16.msra.mxu0 %v5023_v0  ;;  %v5028_v5 = vld [vmem:[#allocation6 + $0x28] sm:$0xff]   ;;  %v5029_v6 = vld [vmem:[#allocation6 + $0x60] sm:$0xff]   ;;  %v5031_v8 = vld [vmem:[#allocation6 + $0x58] sm:$0xff]   ;;  %vm1090_vm3 = vcmask 1046528   ;;  %vm946_vm4 = vsmask.f32 7424 }
  0x5c   : > { %4442 = vmatpush3.bf16.msra.mxu1 %v5024_v1  ;;  %4423 = vmatprep.subr.bf16.mxu0 %v5025_v2  ;;  %v5030_v7 = vld [vmem:[#allocation6 + $0x20] sm:$0xff]   ;;  %v5032_v9 = vld [vmem:[#allocation6 + $0x18] sm:$0xff]   ;;  %v5033_v10 = vld [vmem:[#allocation6 + $0x50] sm:$0xff]   ;;  %vm1219_vm5 = vsmask.f32 6400  ;;  %vm1965_vm6 = vcmask 1045504  }
  0x5d   : > { %4443 = vmatprep.subr.bf16.mxu1 %v5026_v3  ;;  %v5034_v11 = vld [vmem:[#allocation6 + $0x10] sm:$0xff]   ;;  %v5042_v20 = vld [vmem:[%s5647_s16 + $0x10] ss:$0 sps:$4 sm:$0x77]   ;;  %v5035_v21 = vld [vmem:[#allocation6 + $0x48] sm:$0xff]   ;;  %vm5459_vm7 = vmmov 0  }
  0x5e   : > { %v5662_v12 = vld [vmem:[%s5647_s16 + $0x4] sm:$0xf]  ;;  %v5665_v13 = vld [vmem:[%s5647_s16 + $0x8] sm:$0xf]  ;;  %v5668_v14 = vld [vmem:[%s5647_s16 + $0xc] sm:$0xf] }
  0x5f   : > { %4424 = vmatpush3.bf16.msra.mxu0 %v5025_v2  ;;  %v382_v15 = vld [vmem:[%s5647_s16] sm:$0x8]  ;;  %v3904_v16 = vcombine.low %v5665_v13, %v5668_v14  ;;  %v539_v31 = vshrl.u32 %v5042_v20, 16  ;;  %v542_v32 = vshll.u32 %v5042_v20, 16  ;;  %v5037_v36 = vld [vmem:[#allocation6 + $0x40] sm:$0xff]   ;;  %v416_v45 = vrot.slane %v5042_v20, 3 }
  0x60   : > { %4444 = vmatpush3.bf16.msra.mxu1 %v5026_v3  ;;  %4425 = vmatprep.subr.bf16.mxu0 %v5027_v4  ;;  %v361_v17 = vld [vmem:[%s5647_s16] sm:$0xc]  ;;  %v3903_v18 = vcombine.low %v382_v15, %v5662_v12  ;;  %v5038_v41 = vld [vmem:[#allocation6] sm:$0xff]   ;;  %v5043_v48 = vld [vmem:[#allocation6 + $0xb8] sm:$0xff]   ;;  %v3932_v60 = vcombine.low %v5662_v12, %v5665_v13  ;;  %s3902_s20 = sshll.u32 %s5643_s14, 4  ;;  %s4158_s21 = sshll.u32 %s5442_s27, 8 }
  0x61   : > { %4445 = vmatprep.subr.bf16.mxu1 %v5028_v5  ;;  %v3914_v19 = vcombine.low %v361_v17, %v5662_v12  ;;  %v414_v22 = vrot.slane %v3904_v16, 3  ;;  %v530_v23 = vshrl.u32 %v3904_v16, 16  ;;  %v533_v24 = vshll.u32 %v3904_v16, 16  ;;  %v5036_v25 = vld [vmem:[#allocation6 + $0x8] sm:$0xff]   ;;  %v5044_v50 = vld [vmem:[#allocation6 + $0xf8] sm:$0xff]   ;;  %v5045_v56 = vld [vmem:[#allocation6 + $0xb0] sm:$0xff]   ;;  %s5940_s23 = scalar_lea.hbm %s5995_s7, %s4158_s21 }
  0x62   : > { %v413_v26 = vrot.slane %v3903_v18, 3  ;;  %v541_v38 = vrot.slane %v539_v31, 2  ;;  %v544_v39 = vrot.slane %v542_v32, 3  ;;  %v668_v42 = vshrl.u32 %v3903_v18, 16  ;;  %v5046_v58 = vld [vmem:[#allocation6 + $0xf0] sm:$0xff]   ;;  %v5047_v61 = vld [vmem:[#allocation6 + $0xa8] sm:$0xff]  }
  0x63   : > { %4426 = vmatpush3.bf16.msra.mxu0 %v5027_v4  ;;  %v522_v27 = vshrl.u32 %v3914_v19, 16  ;;  %v525_v28 = vshll.u32 %v3914_v19, 16  ;;  %v532_v29 = vrot.slane %v530_v23, 2  ;;  %v535_v30 = vrot.slane %v533_v24, 3  ;;  %v5048_v62 = vld [vmem:[#allocation6 + $0xe8] sm:$0xff]   ;;  %v5049_v63 = vld [vmem:[#allocation6 + $0xa0] sm:$0xff]  }
  0x64   : > { %4446 = vmatpush3.bf16.msra.mxu1 %v5028_v5  ;;  %4427 = vmatprep.subr.bf16.mxu0 %v5029_v6  ;;  %v415_v33 = vsel %vm412_vm1, %v413_v26, %v414_v22  ;;  %v671_v44 = vshll.u32 %v3903_v18, 16  ;;  %v670_v46 = vrot.slane %v668_v42, 3  ;;  %v545_v47 = vor.u32 %v544_v39, %v541_v38  ;;  %v5050_v0 = vld [vmem:[#allocation6 + $0xe0] sm:$0xff]   ;;  %v5051_v1 = vld [vmem:[#allocation6 + $0x98] sm:$0xff]   ;;  %v5053_v5 = vld [vmem:[#allocation6 + $0x90] sm:$0xff]   ;;  %s358_s19 = scalar_lea.vmem [#allocation11], %s3902_s20 }
  0x65   : > { %4447 = vmatprep.subr.bf16.mxu1 %v5030_v7  ;;  %v524_v34 = vrot.slane %v522_v27, 2  ;;  %v527_v35 = vrot.slane %v525_v28, 3  ;;  %4437 = vmatprep.mubr.bf16.mxu0 %v415_v33  ;;  %v536_v37 = vor.u32 %v535_v30, %v532_v29  ;;  %v675_v51 = vrot.slane %v530_v23, 3  ;;  %v5688_v2 = vld [vmem:[%s5647_s16 + $0x10] sm:$0xf]  ;;  %s3774_s15 = sshll.u32 %s358_s19, 4  ;;  %s5935_s15 = int_to_ptr.vmem [resolvable:$true] %s3774_s15 }
  0x66   : > { %v673_v49 = vrot.slane %v671_v44, 4  ;;  %v676_v53 = vrot.slane %v533_v24, 4  ;;  %v417_v54 = vsel %vm412_vm1, %v414_v22, %v416_v45  ;;  %v5052_v3 = vld [vmem:[#allocation6 + $0xd8] sm:$0xff]   ;;  %v3923_v4 = vcombine.low %v5688_v2, %v5688_v2  ;;  %v5057_v19 = vld [vmem:[#allocation6 + $0x80] sm:$0xff]   ;;  %s3759_s18 = scalar_lea.sflag [#allocation5], %s5643_s14  ;;  %s5362_s3 = scalar_lea.vmem %s5935_s15, 256 }
  0x67   : > { %4428 = vmatpush3.bf16.msra.mxu0 %v5029_v6  ;;  %v528_v40 = vor.u32 %v527_v35, %v524_v34  ;;  %v546_v55 = vsel %vm520_vm0, %v536_v37, %v545_v47  ;;  %v5054_v6 = vld [vmem:[#allocation6 + $0xd0] sm:$0xff]   ;;  %v5698_v16 = vld [vmem:[%s5647_s16 + $0x14] ss:$0 sps:$4 sm:$0x11]   ;;  %v3933_v39 = vcombine.low %v5668_v14, %v5688_v2  ;;  %v5066_v14 = vld [vmem:[#allocation6 + $0x128] sm:$0xff]   ;;  %p5363_p1 = scmp.ne.s32.totalorder %s5935_s15, %s5362_s3  ;;  %s5460_s27 = smov [#allocation11]  }
  0x68   : > { %4448 = vmatpush3.bf16.msra.mxu1 %v5030_v7  ;;  %4429 = vmatprep.subr.bf16.mxu0 %v5031_v8  ;;  %v674_v52 = vor.u32 %v673_v49, %v670_v46  ;;  %v5681_v57 = vor.u32 %v676_v53, %v675_v51  ;;  %v5055_v7 = vld [vmem:[#allocation6 + $0x88] sm:$0xff]   ;;  %v913_v12 = vld [vmem:[%s5647_s16 + $0x8] sm:$0xf]  ;;  %v5695_v15 = vld [vmem:[%s5647_s16 + $0xc] sm:$0xff]   ;;  %v963_v30 = vshll.u32 %v5698_v16, 16  ;;  %v1094_v42 = vrot.slane %v5698_v16, 1 }
  0x69   : > { %4449 = vmatprep.subr.bf16.mxu1 %v5032_v9  ;;  %v537_v43 = vsel %vm520_vm0, %v528_v40, %v536_v37  ;;  %v5058_v22 = vld [vmem:[#allocation6 + $0xc0] sm:$0xff]   ;;  %v5060_v27 = vld [vmem:[#allocation6 + $0x138] sm:$0xff]   ;;  %v959_v29 = vshrl.u32 %v5695_v15, 16  ;;  %v1092_v32 = vrot.slane %v5695_v15, 1  ;;  %v5064_v34 = vld [vmem:[#allocation6 + $0x130] sm:$0xff]   ;;  %p5364_p4 = pnand %p5363_p1, %p5612_p13  ;;  %s5366_s28 = sshll.u32 %s5460_s27, 4  ;;  %s5367_s28 = int_to_ptr.vmem [resolvable:$false] %s5366_s28 }
  0x6a   : > { %4457 = vmatprep.mubr.bf16.mxu1 %v537_v43  ;;  %v678_v59 = vsel %vm666_vm2, %v674_v52, %v5681_v57  ;;  %v5063_v28 = vld [vmem:[#allocation6 + $0x178] sm:$0xff]   ;;  %v5065_v40 = vld [vmem:[#allocation6 + $0x170] sm:$0xff]   ;;  %v5712_v43 = vrot.slane %v963_v30, 1  ;;  %v5089_v16 = vld [vmem:[#allocation6 + $0x180] sm:$0xff]   ;;  %p5369_p5 = scmp.lt.s32.totalorder %s5935_s15, %s5367_s28 }
  0x6b   : > { %4430 = vmatpush3.bf16.msra.mxu0 %v5031_v8  ;;  %v680_v8 = vshrl.u32 %v3923_v4, 16  ;;  %v1228_v46 = vrot.slane %v959_v29, 1  ;;  %v5081_v2 = vld [vmem:[#allocation6 + $0x1b8] sm:$0xff]   ;;  %v5102_v30 = vld [vmem:[#allocation8 + $0x8] sm:$0xff]   ;;  %p5365_p8 = pneg %p5364_p4 }
  0x6c   : > { %4450 = vmatpush3.bf16.msra.mxu1 %v5032_v9  ;;  %4431 = vmatprep.subr.bf16.mxu0 %v5033_v10  ;;  %v683_v9 = vshll.u32 %v3923_v4, 16 }
  0x6d   : > { %4451 = vmatprep.subr.bf16.mxu1 %v5034_v11  ;;  %v682_v17 = vrot.slane %v680_v8, 3  ;;  %v1095_v8 = vsel %vm1090_vm3, %v1092_v32, %v1094_v42 }
  0x6e   : > { %v685_v18 = vrot.slane %v683_v9, 4 }
  0x6f   : > { %4432 = vmatpush3.bf16.msra.mxu0 %v5033_v10  ;;  %v5056_v10 = vld [vmem:[#allocation6 + $0xc8] sm:$0xff]  }
  0x70   : > { %4452 = vmatpush3.bf16.msra.mxu1 %v5034_v11  ;;  %4433 = vmatprep.subr.bf16.mxu0 %v5035_v21  ;;  %v912_v11 = vld [vmem:[%s5647_s16 + $0x4] sm:$0xf]  ;;  %v686_v26 = vor.u32 %v685_v18, %v682_v17 }
  0x71   : > { %4453 = vmatprep.subr.bf16.mxu1 %v5036_v25  ;;  %v3942_v13 = vcombine.low %v912_v11, %v913_v12  ;;  %v5085_v11 = vld [vmem:[#allocation6 + $0x1a0] sm:$0xff]  }
  0x72   : > { %v687_v38 = vsel %vm666_vm2, %v5681_v57, %v686_v26  ;;  %v5069_v57 = vld [vmem:[#allocation6 + $0x160] sm:$0xff]   ;;  %v5098_v26 = vld [vmem:[#allocation8 + $0x18] sm:$0xff]  }
  0x73   : > { %4434 = vmatpush3.bf16.msra.mxu0 %v5035_v21  ;;  %v950_v20 = vshll.u32 %v3942_v13, 16  ;;  %v1070_v21 = vld [vmem:[%s5647_s16 + $0x4] sm:$0xe]  ;;  %v948_v23 = vshrl.u32 %v3942_v13, 16 }
  0x74   : > { %4454 = vmatpush3.bf16.msra.mxu1 %v5036_v25  ;;  %4435 = vmatprep.subr.bf16.mxu0 %v5037_v36  ;;  %v955_v25 = vshll.u32 %v5695_v15, 16  ;;  %v3953_v31 = vcombine.low %v1070_v21, %v913_v12  ;;  %v5086_v12 = vld [vmem:[#allocation6 + $0x198] sm:$0xff]   ;;  %v5087_v13 = vld [vmem:[#allocation6 + $0x190] sm:$0xff]   ;;  %v5088_v15 = vld [vmem:[#allocation6 + $0x188] sm:$0xff]  }
  0x75   : > { %4455 = vmatprep.subr.bf16.mxu1 %v5038_v41  ;;  %v952_v24 = vrot.slane %v950_v20, 1  ;;  %v5092_v20 = vld [vmem:[#allocation8 + $0x30] sm:$0xff]   ;;  %v5093_v21 = vld [vmem:[#allocation8 + $0x78] sm:$0xff]  }
  0x76   : > { %v1221_v33 = vshrl.u32 %v3953_v31, 16  ;;  %v1224_v37 = vshll.u32 %v3953_v31, 16  ;;  %v1229_v47 = vrot.slane %v955_v25, 2 }
  0x77   : > { %4436 = vmatpush3.bf16.msra.mxu0 %v5037_v36  ;;  %v953_v35 = vor.u32 %v952_v24, %v948_v23  ;;  %v5705_v36 = vrot.slane %v955_v25, 1  ;;  %v5095_v23 = vld [vmem:[#allocation8 + $0x70] sm:$0xff]   ;;  %v5096_v24 = vld [vmem:[#allocation8 + $0x20] sm:$0xff]   ;;  %v5097_v25 = vld [vmem:[#allocation8 + $0x68] sm:$0xff]  }
  0x78   : > { %4456 = vmatpush3.bf16.msra.mxu1 %v5038_v41  ;;  %4461 = vmatprep.subr.bf16.mxu0 %v5043_v48  ;;  %v1091_v41 = vrot.slane %v3953_v31, 1  ;;  %v5714_v44 = vrot.slane %v1221_v33, 1  ;;  %v5716_v45 = vrot.slane %v1224_v37, 2  ;;  %v5103_v31 = vld [vmem:[#allocation8 + $0x50] sm:$0xff]   ;;  %v5105_v33 = vld [vmem:[#allocation8 + $0x48] sm:$0xff]  }
  0x79   : > { %4481 = vmatprep.subr.bf16.mxu1 %v5044_v50  ;;  %v958_v49 = vsel %vm946_vm4, %v953_v35, %v5705_v36  ;;  %v5109_v35 = vld [vmem:[#allocation8 + $0x40] sm:$0xff]  }
  0x7a   : > { %4438 = vmatmul.mubr.bf16.vlgmr.msra.gmra.mxu0 %v417_v54  ;;  %v1093_v51 = vsel %vm1090_vm3, %v1091_v41, %v1092_v32  ;;  %v1227_v4 = vor.u32 %v5716_v45, %v5714_v44  ;;  %v5104_v32 = vld [vmem:[#allocation8] sm:$0xff]  }
  0x7b   : > { %4458 = vmatmul.mubr.bf16.vlgmr.msra.gmra.mxu1 %v546_v55  ;;  %4462 = vmatpush3.bf16.msra.mxu0 %v5043_v48  ;;  %v5090_v48 = vld [vmem:[%s5647_s16 + $0x14] ss:$0 sps:$4 sm:$0x33]  }
  0x7c   : > { %4482 = vmatpush3.bf16.msra.mxu1 %v5044_v50  ;;  %4463 = vmatprep.subr.bf16.mxu0 %v5045_v56  ;;  %v5067_v50 = vld [vmem:[#allocation6 + $0x168] sm:$0xff]   ;;  %v1233_v52 = vshrl.u32 %v5090_v48, 16  ;;  %v1236_v53 = vshll.u32 %v5090_v48, 16 }
  0x7d   : > { %4483 = vmatprep.subr.bf16.mxu1 %v5046_v58  ;;  %4477 = vmatprep.mubr.bf16.mxu0 %v678_v59  ;;  %v5071_v59 = vld [vmem:[#allocation6 + $0x158] sm:$0xff]  }
  0x7e   : > { %4497 = vmatprep.mubr.bf16.mxu1 %v3932_v60  ;;  %v5726_v54 = vrot.slane %v1233_v52, 1  ;;  %v5728_v55 = vrot.slane %v1236_v53, 2  ;;  %v5072_v60 = vld [vmem:[#allocation6 + $0x110] sm:$0xff]  }
  0x7f   : > { %4464 = vmatpush3.bf16.msra.mxu0 %v5045_v56  ;;  %v5068_v56 = vld [vmem:[#allocation6 + $0x120] sm:$0xff]  }
  0x80   : > { %4484 = vmatpush3.bf16.msra.mxu1 %v5046_v58  ;;  %4465 = vmatprep.subr.bf16.mxu0 %v5047_v61  ;;  %v5070_v58 = vld [vmem:[#allocation6 + $0x118] sm:$0xff]   ;;  %v1239_v17 = vor.u32 %v5728_v55, %v5726_v54 }
  0x81   : > { %4485 = vmatprep.subr.bf16.mxu1 %v5048_v62 }
  0x83   : > { %4466 = vmatpush3.bf16.msra.mxu0 %v5047_v61  ;;  %v5073_v61 = vld [vmem:[#allocation6 + $0x150] sm:$0xff]  }
  0x84   : > { %4486 = vmatpush3.bf16.msra.mxu1 %v5048_v62  ;;  %4467 = vmatprep.subr.bf16.mxu0 %v5049_v63  ;;  %v5074_v62 = vld [vmem:[#allocation6 + $0x108] sm:$0xff]  }
  0x85   : > { %4487 = vmatprep.subr.bf16.mxu1 %v5050_v0 }
  0x87   : > { %4468 = vmatpush3.bf16.msra.mxu0 %v5049_v63  ;;  %v5075_v63 = vld [vmem:[#allocation6 + $0x148] sm:$0xff]  }
  0x88   : > { %4488 = vmatpush3.bf16.msra.mxu1 %v5050_v0  ;;  %4469 = vmatprep.subr.bf16.mxu0 %v5051_v1  ;;  %v5076_v0 = vld [vmem:[#allocation6 + $0x100] sm:$0xff]  }
  0x89   : > { %4489 = vmatprep.subr.bf16.mxu1 %v5052_v3 }
  0x8b   : > { %4470 = vmatpush3.bf16.msra.mxu0 %v5051_v1  ;;  %v5077_v1 = vld [vmem:[#allocation6 + $0x140] sm:$0xff]  }
  0x8c   : > { %4490 = vmatpush3.bf16.msra.mxu1 %v5052_v3  ;;  %4471 = vmatprep.subr.bf16.mxu0 %v5053_v5  ;;  %v961_v3 = vor.u32 %v959_v29, %v5705_v36  ;;  %v5101_v29 = vld [vmem:[#allocation8 + $0x58] sm:$0xff]  }
  0x8d   : > { %4491 = vmatprep.subr.bf16.mxu1 %v5054_v6  ;;  %v5749_v36 = vld [vmem:[#allocation8 + $0xb8] sm:$0xff]  }
  0x8f   : > { %4472 = vmatpush3.bf16.msra.mxu0 %v5053_v5  ;;  %v1230_v5 = vor.u32 %v1229_v47, %v1228_v46 }
  0x90   : > { %4492 = vmatpush3.bf16.msra.mxu1 %v5054_v6  ;;  %4473 = vmatprep.subr.bf16.mxu0 %v5055_v7  ;;  %v5083_v6 = vld [vmem:[#allocation6 + $0x1b0] sm:$0xff]  }
  0x91   : > { %4493 = vmatprep.subr.bf16.mxu1 %v5056_v10  ;;  %v1231_v9 = vsel %vm1219_vm5, %v1227_v4, %v1230_v5  ;;  %v1240_v18 = vsel %vm1219_vm5, %v1230_v5, %v1239_v17  ;;  %v3971_v4 = vld [vmem:[%s5992_s4] ss:$0 sm:$0xff] }
  0x93   : > { %4474 = vmatpush3.bf16.msra.mxu0 %v5055_v7  ;;  %v966_v7 = vsel %vm946_vm4, %v961_v3, %v5712_v43 }
  0x94   : > { %4494 = vmatpush3.bf16.msra.mxu1 %v5056_v10  ;;  %4475 = vmatprep.subr.bf16.mxu0 %v5057_v19  ;;  %v5084_v10 = vld [vmem:[#allocation6 + $0x1a8] sm:$0xff]  }
  0x95   : > { %4495 = vmatprep.subr.bf16.mxu1 %v5058_v22 }
  0x97   : > { %4476 = vmatpush3.bf16.msra.mxu0 %v5057_v19  ;;  %v5091_v19 = vld [vmem:[#allocation8 + $0x38] sm:$0xff]  }
  0x98   : > { %4496 = vmatpush3.bf16.msra.mxu1 %v5058_v22  ;;  %4501 = vmatprep.subr.bf16.mxu0 %v5060_v27  ;;  %v5094_v22 = vld [vmem:[#allocation8 + $0x28] sm:$0xff]  }
  0x99   : > { %4521 = vmatprep.subr.bf16.mxu1 %v5063_v28 }
  0x9a   : > { %4478 = vmatmul.mubr.bf16.vlgmr.msra.gmra.mxu0 %v687_v38 }
  0x9b   : > { %4502 = vmatpush3.bf16.msra.mxu0 %v5060_v27  ;;  %4498 = vmatmul.mubr.bf16.vlgmr.msra.gmra.mxu1 %v3933_v39  ;;  %v5099_v27 = vld [vmem:[#allocation8 + $0x60] sm:$0xff]  }
  0x9c   : > { %4522 = vmatpush3.bf16.msra.mxu1 %v5063_v28  ;;  %4503 = vmatprep.subr.bf16.mxu0 %v5064_v34  ;;  %v5100_v28 = vld [vmem:[#allocation8 + $0x10] sm:$0xff]  }
  0x9d   : > { %4523 = vmatprep.subr.bf16.mxu1 %v5065_v40  ;;  %4517 = vmatprep.mubr.bf16.mxu0 %v958_v49 }
  0x9e   : > { %4537 = vmatprep.mubr.bf16.mxu1 %v1093_v51 }
  0x9f   : > { %4504 = vmatpush3.bf16.msra.mxu0 %v5064_v34  ;;  %v5746_v34 = vld [vmem:[#allocation8 + $0xf8] sm:$0xff]  }
  0xa0   : > { %4524 = vmatpush3.bf16.msra.mxu1 %v5065_v40  ;;  %4505 = vmatprep.subr.bf16.mxu0 %v5066_v14 }
  0xa1   : > { %4525 = vmatprep.subr.bf16.mxu1 %v5067_v50 }
  0xa3   : > { %4506 = vmatpush3.bf16.msra.mxu0 %v5066_v14 }
  0xa4   : > { %4526 = vmatpush3.bf16.msra.mxu1 %v5067_v50  ;;  %4507 = vmatprep.subr.bf16.mxu0 %v5068_v56 }
  0xa5   : > { %4527 = vmatprep.subr.bf16.mxu1 %v5069_v57 }
  0xa7   : > { %4508 = vmatpush3.bf16.msra.mxu0 %v5068_v56 }
  0xa8   : > { %4528 = vmatpush3.bf16.msra.mxu1 %v5069_v57  ;;  %4509 = vmatprep.subr.bf16.mxu0 %v5070_v58 }
  0xa9   : > { %4529 = vmatprep.subr.bf16.mxu1 %v5071_v59 }
  0xab   : > { %4510 = vmatpush3.bf16.msra.mxu0 %v5070_v58 }
  0xac   : > { %4530 = vmatpush3.bf16.msra.mxu1 %v5071_v59  ;;  %4511 = vmatprep.subr.bf16.mxu0 %v5072_v60 }
  0xad   : > { %4531 = vmatprep.subr.bf16.mxu1 %v5073_v61 }
  0xaf   : > { %4512 = vmatpush3.bf16.msra.mxu0 %v5072_v60 }
  0xb0   : > { %4532 = vmatpush3.bf16.msra.mxu1 %v5073_v61  ;;  %4513 = vmatprep.subr.bf16.mxu0 %v5074_v62 }
  0xb1   : > { %4533 = vmatprep.subr.bf16.mxu1 %v5075_v63 }
  0xb3   : > { %4514 = vmatpush3.bf16.msra.mxu0 %v5074_v62 }
  0xb4   : > { %4534 = vmatpush3.bf16.msra.mxu1 %v5075_v63  ;;  %4515 = vmatprep.subr.bf16.mxu0 %v5076_v0 }
  0xb5   : > { %4535 = vmatprep.subr.bf16.mxu1 %v5077_v1 }
  0xb7   : > { %4516 = vmatpush3.bf16.msra.mxu0 %v5076_v0 }
  0xb8   : > { %4536 = vmatpush3.bf16.msra.mxu1 %v5077_v1  ;;  %4541 = vmatprep.subr.bf16.mxu0 %v5081_v2 }
  0xb9   : > { %4561 = vmatprep.subr.bf16.mxu1 %v5093_v21 }
  0xba   : > { %4518 = vmatmul.mubr.bf16.vlgmr.msra.gmra.mxu0 %v966_v7 }
  0xbb   : > { %4542 = vmatpush3.bf16.msra.mxu0 %v5081_v2  ;;  %4538 = vmatmul.mubr.bf16.vlgmr.msra.gmra.mxu1 %v1095_v8 }
  0xbc   : > { %4543 = vmatprep.subr.bf16.mxu0 %v5083_v6  ;;  %4557 = vmatprep.mubr.bf16.mxu0 %v1231_v9 }
  0xbd   : > { %4562 = vmatpush3.bf16.msra.mxu1 %v5093_v21 }
  0xbe   : > { %4563 = vmatprep.subr.bf16.mxu1 %v5095_v23 }
  0xbf   : > { %4544 = vmatpush3.bf16.msra.mxu0 %v5083_v6 }
  0xc0   : > { %4545 = vmatprep.subr.bf16.mxu0 %v5084_v10 }
  0xc1   : > { %4564 = vmatpush3.bf16.msra.mxu1 %v5095_v23 }
  0xc2   : > { %4565 = vmatprep.subr.bf16.mxu1 %v5097_v25 }
  0xc3   : > { %4546 = vmatpush3.bf16.msra.mxu0 %v5084_v10 }
  0xc4   : > { %4547 = vmatprep.subr.bf16.mxu0 %v5085_v11 }
  0xc5   : > { %4566 = vmatpush3.bf16.msra.mxu1 %v5097_v25 }
  0xc6   : > { %4567 = vmatprep.subr.bf16.mxu1 %v5099_v27 }
  0xc7   : > { %4548 = vmatpush3.bf16.msra.mxu0 %v5085_v11 }
  0xc8   : > { %4549 = vmatprep.subr.bf16.mxu0 %v5086_v12 }
  0xc9   : > { %4568 = vmatpush3.bf16.msra.mxu1 %v5099_v27 }
  0xca   : > { %4569 = vmatprep.subr.bf16.mxu1 %v5101_v29 }
  0xcb   : > { %4550 = vmatpush3.bf16.msra.mxu0 %v5086_v12 }
  0xcc   : > { %4551 = vmatprep.subr.bf16.mxu0 %v5087_v13 }
  0xcd   : > { %4570 = vmatpush3.bf16.msra.mxu1 %v5101_v29 }
  0xce   : > { %4571 = vmatprep.subr.bf16.mxu1 %v5103_v31 }
  0xcf   : > { %4552 = vmatpush3.bf16.msra.mxu0 %v5087_v13 }
  0xd0   : > { %4553 = vmatprep.subr.bf16.mxu0 %v5088_v15 }
  0xd1   : > { %4572 = vmatpush3.bf16.msra.mxu1 %v5103_v31 }
  0xd2   : > { %4573 = vmatprep.subr.bf16.mxu1 %v5105_v33 }
  0xd3   : > { %4554 = vmatpush3.bf16.msra.mxu0 %v5088_v15  ;;  %v5458_v15 = vmov 0.0  }
  0xd4   : > { %4555 = vmatprep.subr.bf16.mxu0 %v5089_v16 }
  0xd5   : > { %4574 = vmatpush3.bf16.msra.mxu1 %v5105_v33 }
  0xd6   : > { %4575 = vmatprep.subr.bf16.mxu1 %v5109_v35 }
  0xd7   : > { %4556 = vmatpush3.bf16.msra.mxu0 %v5089_v16 }
  0xd8   : > { %4581 = vmatprep.subr.bf16.mxu0 %v5091_v19 }
  0xd9   : > { %4576 = vmatpush3.bf16.msra.mxu1 %v5109_v35 }
  0xda   : > { %4558 = vmatmul.mubr.bf16.vlgmr.msra.gmra.mxu0 %v1240_v18  ;;  %4601 = vmatprep.subr.bf16.mxu1 %v5749_v36 }
  0xdb   : > { %4582 = vmatpush3.bf16.msra.mxu0 %v5091_v19 }
  0xdc   : > { %4583 = vmatprep.subr.bf16.mxu0 %v5092_v20 }
  0xdf   : > { %4584 = vmatpush3.bf16.msra.mxu0 %v5092_v20 }
  0xe0   : > { %4585 = vmatprep.subr.bf16.mxu0 %v5094_v22 }
  0xe3   : > { %4586 = vmatpush3.bf16.msra.mxu0 %v5094_v22 }
  0xe4   : > { %4587 = vmatprep.subr.bf16.mxu0 %v5096_v24 }
  0xe7   : > { %4588 = vmatpush3.bf16.msra.mxu0 %v5096_v24 }
  0xe8   : > { %4589 = vmatprep.subr.bf16.mxu0 %v5098_v26 }
  0xeb   : > { %4590 = vmatpush3.bf16.msra.mxu0 %v5098_v26 }
  0xec   : > { %4591 = vmatprep.subr.bf16.mxu0 %v5100_v28 }
  0xef   : > { %4592 = vmatpush3.bf16.msra.mxu0 %v5100_v28 }
  0xf0   : > { %4593 = vmatprep.subr.bf16.mxu0 %v5102_v30 }
  0xf3   : > { %4594 = vmatpush3.bf16.msra.mxu0 %v5102_v30 }
  0xf4   : > { %4595 = vmatprep.subr.bf16.mxu0 %v5104_v32 }
  0xf7   : > { %4596 = vmatpush3.bf16.msra.mxu0 %v5104_v32 }
  0xf8   : > { %4621 = vmatprep.subr.bf16.mxu0 %v5746_v34 }
 0x13a   : > { %v4439_v37 = vpop.f32.mrf.mxu0 }
 0x13b   : > { %v4459_v38 = vpop.f32.mrf.mxu1 }
 0x13c   : > { %v640_v39 = vadd.f32 %v4459_v38, %v4439_v37  ;;  %v502_v40 = vpop.f32.mrf.mxu0  ;;  %v5110_v37 = vld [vmem:[#allocation8 + $0xf0] sm:$0xff]  }
 0x13d   : > { %v631_v41 = vpop.f32.mrf.mxu1 }
 0x13e   : > { %v4440_v42 = vpop.f32.mrf.mxu0 }
 0x13f   : > { %v4460_v43 = vpop.f32.mrf.mxu1 }
 0x140   : > { %v505_v44 = vpop.f32.mrf.mxu0 }
 0x141   : > { %v634_v45 = vpop.f32.mrf.mxu1 }
 0x142   : > { %v635_v60 = vadd.f32 %v634_v45, %v505_v44 }
 0x15a   : > { %v4479_v46 = vpop.f32.mrf.mxu0 }
 0x15b   : > { %v4499_v47 = vpop.f32.mrf.mxu1  ;;  %v789_v59 = vadd.f32 %v4479_v46, %v640_v39 }
 0x15c   : > { %v772_v48 = vpop.f32.mrf.mxu0 }
 0x15d   : > { %v893_v14 = vpop.f32.mrf.mxu1  ;;  %v910_v61 = vadd.f32 %v4499_v47, %v789_v59  ;;  %v5118_v59 = vld [vmem:[#allocation8 + $0xe0] sm:$0xff]  }
 0x15e   : > { %v4480_v49 = vpop.f32.mrf.mxu0 }
 0x15f   : > { %v4500_v50 = vpop.f32.mrf.mxu1  ;;  %v5115_v49 = vld [vmem:[#allocation8 + $0xe8] sm:$0xff]  }
 0x160   : > { %v775_v51 = vpop.f32.mrf.mxu0 }
 0x161   : > { %v896_v52 = vpop.f32.mrf.mxu1  ;;  %v788_v62 = vadd.f32 %v775_v51, %v635_v60 }
 0x163   : > { %v909_v1 = vadd.f32 %v896_v52, %v788_v62  ;;  %v5120_v62 = vld [vmem:[#allocation8 + $0xd8] sm:$0xff]  }
 0x17a   : > { %v4519_v53 = vpop.f32.mrf.mxu0 }
 0x17b   : > { %v4539_v54 = vpop.f32.mrf.mxu1  ;;  %v1068_v63 = vadd.f32 %v4519_v53, %v910_v61  ;;  %v5119_v61 = vld [vmem:[#allocation8 + $0xa8] sm:$0xff]  }
 0x17c   : > { %v1051_v55 = vpop.f32.mrf.mxu0 }
 0x17d   : > { %v1180_v56 = vpop.f32.mrf.mxu1  ;;  %v1197_v2 = vadd.f32 %v4539_v54, %v1068_v63  ;;  %v5121_v63 = vld [vmem:[#allocation8 + $0xa0] sm:$0xff]  }
 0x17e   : > { %v4520_v57 = vpop.f32.mrf.mxu0 }
 0x17f   : > { %v4540_v58 = vpop.f32.mrf.mxu1  ;;  %v5117_v57 = vld [vmem:[#allocation8 + $0xb0] sm:$0xff]  }
 0x180   : > { %v1054_v0 = vpop.f32.mrf.mxu0 }
 0x181   : > { %v1067_v5 = vadd.f32 %v1054_v0, %v909_v1  ;;  %v1183_v7 = vpop.f32.mrf.mxu1  ;;  %v5122_v1 = vld [vmem:[#allocation8 + $0xd0] sm:$0xff]  }
 0x183   : > { %v1196_v11 = vadd.f32 %v1183_v7, %v1067_v5 }
 0x19a   : > { %v4559_v3 = vpop.f32.mrf.mxu0 }
 0x19b   : > { %v1342_v6 = vadd.f32 %v4559_v3, %v1197_v2 }
 0x19c   : > { %v1325_v8 = vpop.f32.mrf.mxu0 }
 0x19d   : > { %v1353_v9 = vadd.f32 %v3971_v4, %v1342_v6  ;;  %v5125_v8 = vld [vmem:[#allocation8 + $0x90] sm:$0xff]  }
 0x19e   : > { %v4560_v10 = vpop.f32.mrf.mxu0 }
 0x19f   : > { %v1357_v12 = vmax.f32 %v1353_v9, 0.0  ;;  %v5126_v9 = vld [vmem:[#allocation8 + $0xc0] sm:$0xff]  }
 0x1a0   : > { %v1328_v13 = vpop.f32.mrf.mxu0 }
 0x1a1   : > { %v4165_v16 = vpack.c.bf16 %v5458_v15, %v1357_v12  ;;  %v1341_v17 = vadd.f32 %v1328_v13, %v1196_v11 }
 0x1a3   : > { %4176 = vst [vmem:[#allocation2 + $0x8] sm:$0xff] %v4165_v16   ;;  %v1352_v18 = vadd.f32 %v3971_v4, %v1341_v17  ;;  %v5124_v4 = vld [vmem:[#allocation8 + $0xc8] sm:$0xff]   ;;  %v5128_v17 = vld [vmem:[#allocation8 + $0x178] sm:$0xff]  }
 0x1a4   : > { %v5127_v16 = vld [vmem:[#allocation8 + $0x88] sm:$0xff]  }
 0x1a5   : > { %v1356_v19 = vmax.f32 %v1352_v18, 0.0 }
 0x1a7   : > { %v4161_v20 = vpack.c.bf16 %v1356_v19, %v5458_v15 }
 0x1a9   : > { %4162 = vst [vmem:[#allocation2] sm:$0xff] %v4161_v20  }
 0x1aa   : > { %v5757_v21 = vld [vmem:[#allocation2 + $0x8] sm:$0xf]  ;;  %v1800_v22 = vld [vmem:[#allocation2 + $0xc] sm:$0x1] }
 0x1ab   : > { %v5759_v23 = vld [vmem:[#allocation2 + $0x8] ss:$0 sps:$4 sm:$0xff]   ;;  %v5762_v24 = vcombine.low %v5757_v21, %v1800_v22  ;;  %v2070_v2 = vld [vmem:[#allocation2 + $0xc] sm:$0x3] }
 0x1ac   : > { %v1467_v31 = vshll.u32 %v5759_v23, 16  ;;  %v5108_v35 = vld [vmem:[#allocation2 + $0x8] ss:$0 sps:$4 sm:$0x77]   ;;  %v1471_v51 = vshrl.u32 %v5759_v23, 16  ;;  %v5784_v5 = vcombine.low %v5757_v21, %v2070_v2  ;;  %v5153_v2 = vld [vmem:[#allocation8 + $0x1b0] sm:$0xff]  }
 0x1ad   : > { %v1836_v25 = vshrl.u32 %v5762_v24, 16  ;;  %v1839_v26 = vshll.u32 %v5762_v24, 16 }
 0x1ae   : > { %v1469_v47 = vrot.slane %v1467_v31, 1  ;;  %v2099_v10 = vshrl.u32 %v5784_v5, 16  ;;  %v2102_v11 = vshll.u32 %v5784_v5, 16  ;;  %v1967_v31 = vrot.slane %v5762_v24, 2 }
 0x1af   : > { %v1838_v43 = vrot.slane %v1836_v25, 1  ;;  %v1841_v44 = vrot.slane %v1839_v26, 2  ;;  %v5131_v25 = vld [vmem:[#allocation8 + $0x80] sm:$0xff]   ;;  %v5132_v26 = vld [vmem:[#allocation8 + $0x170] sm:$0xff]  }
 0x1b0   : > { %v1415_v27 = vld [vmem:[#allocation2] sm:$0xf]  ;;  %v1416_v28 = vld [vmem:[#allocation2 + $0x4] sm:$0xf]  ;;  %v1473_v56 = vor.u32 %v1471_v51, %v1469_v47  ;;  %v2101_v18 = vrot.slane %v2099_v10, 2  ;;  %v2104_v19 = vrot.slane %v2102_v11, 3 }
 0x1b1   : > { %v1797_v29 = vld [vmem:[#allocation2] sm:$0xe]  ;;  %v3976_v30 = vcombine.low %v1415_v27, %v1416_v28  ;;  %v5767_v32 = vld [vmem:[#allocation2 + $0x4] sm:$0xf]  ;;  %v5772_v54 = vor.u32 %v1841_v44, %v1838_v43  ;;  %v5141_v44 = vld [vmem:[#allocation8 + $0x118] sm:$0xff]  }
 0x1b2   : > { %v1673_v33 = vld [vmem:[#allocation2] sm:$0xe]  ;;  %v4004_v38 = vcombine.low %v1797_v29, %v5767_v32  ;;  %v5788_v22 = vor.u32 %v2104_v19, %v2101_v18  ;;  %v5134_v29 = vld [vmem:[#allocation8 + $0x168] sm:$0xff]   ;;  %v4050_v24 = vcombine.low %v5767_v32, %v5757_v21 }
 0x1b3   : > { %v1462_v39 = vshll.u32 %v3976_v30, 16  ;;  %4597 = vmatprep.mubr.bf16.mxu0 %v3976_v30  ;;  %v3995_v40 = vcombine.low %v1673_v33, %v1416_v28  ;;  %v1460_v45 = vshrl.u32 %v3976_v30, 16  ;;  %v1945_v0 = vld [vmem:[#allocation2] sm:$0xc]  ;;  %v5133_v28 = vld [vmem:[#allocation8 + $0x138] sm:$0xff]   ;;  %v5135_v33 = vld [vmem:[#allocation8 + $0x130] sm:$0xff]  }
 0x1b4   : > { %4598 = vmatmul.mubr.bf16.vlgmr.msra.gmra.mxu0 %v5108_v35  ;;  %v1828_v41 = vshrl.u32 %v4004_v38, 16  ;;  %v1831_v42 = vshll.u32 %v4004_v38, 16  ;;  %v4014_v3 = vcombine.low %v1945_v0, %v5767_v32  ;;  %v5136_v35 = vld [vmem:[#allocation8 + $0x160] sm:$0xff]   ;;  %v5137_v38 = vld [vmem:[#allocation8 + $0x128] sm:$0xff]   ;;  %v2612_v11 = vshll.u32 %v4050_v24, 16 }
 0x1b5   : > { %4622 = vmatpush3.bf16.msra.mxu0 %v5746_v34  ;;  %v1464_v46 = vrot.slane %v1462_v39, 1  ;;  %v1693_v52 = vrot.slane %v3995_v40, 1  ;;  %v1694_v34 = vrot.slane %v5759_v23, 1  ;;  %v5138_v39 = vld [vmem:[#allocation8 + $0x158] sm:$0xff]   ;;  %v5139_v40 = vld [vmem:[#allocation8 + $0x120] sm:$0xff]   ;;  %v5160_v10 = vld [vmem:[#allocation8 + $0x1c8] sm:$0xff]  }
 0x1b6   : > { %4623 = vmatprep.subr.bf16.mxu0 %v5110_v37  ;;  %v1830_v48 = vrot.slane %v1828_v41, 1  ;;  %v1833_v14 = vrot.slane %v1831_v42, 2  ;;  %v2091_v6 = vshrl.u32 %v4014_v3, 16  ;;  %v2094_v7 = vshll.u32 %v4014_v3, 16  ;;  %v2208_v41 = vld [vmem:[#allocation2] sm:$0x8] }
 0x1b7   : > { %v1465_v50 = vor.u32 %v1464_v46, %v1460_v45  ;;  %v1695_v60 = vsel %vm1090_vm3, %v1693_v52, %v1694_v34  ;;  %v1966_v30 = vrot.slane %v4014_v3, 2  ;;  %v5140_v42 = vld [vmem:[#allocation8 + $0x150] sm:$0xff]   ;;  %v5799_v23 = vld [vmem:[#allocation2 + $0xc] sm:$0x7]  ;;  %v4032_v43 = vcombine.low %v2208_v41, %v5767_v32  ;;  %v5154_v3 = vld [vmem:[#allocation8 + $0x1e0] sm:$0xff]  }
 0x1b8   : > { %v1834_v53 = vor.u32 %v1833_v14, %v1830_v48  ;;  %v2093_v12 = vrot.slane %v2091_v6, 2  ;;  %v2096_v13 = vrot.slane %v2094_v7, 3  ;;  %v5142_v45 = vld [vmem:[#allocation8 + $0x148] sm:$0xff]   ;;  %v4041_v46 = vcombine.low %v5757_v21, %v5799_v23  ;;  %v5143_v14 = vld [vmem:[#allocation8 + $0x110] sm:$0xff]   ;;  %v5156_v6 = vld [vmem:[#allocation8 + $0x1d8] sm:$0xff]  }
 0x1b9   : > { %4624 = vmatpush3.bf16.msra.mxu0 %v5110_v37  ;;  %v1470_v55 = vsel %vm946_vm4, %v1465_v50, %v1469_v47  ;;  %v1968_v37 = vsel %vm1965_vm6, %v1966_v30, %v1967_v31  ;;  %v2353_v47 = vshrl.u32 %v4032_v43, 16  ;;  %v2356_v48 = vshll.u32 %v4032_v43, 16  ;;  %v5157_v7 = vld [vmem:[#allocation8 + $0x1a0] sm:$0xff]   ;;  %v5163_v18 = vld [vmem:[#allocation8 + $0x188] sm:$0xff]   ;;  %v5164_v32 = vld [vmem:[#allocation8 + $0x278] sm:$0xff]  }
 0x1ba   : > { %4577 = vmatprep.mubr.bf16.mxu1 %v1470_v55  ;;  %v1843_v58 = vsel %vm1219_vm5, %v1834_v53, %v5772_v54  ;;  %4625 = vmatprep.subr.bf16.mxu0 %v5115_v49  ;;  %v2097_v20 = vor.u32 %v2096_v13, %v2093_v12  ;;  %v2361_v50 = vshrl.u32 %v4041_v46, 16  ;;  %v2364_v51 = vshll.u32 %v4041_v46, 16  ;;  %v5146_v55 = vld [vmem:[#allocation8 + $0x1f8] sm:$0xff]   ;;  %v5161_v12 = vld [vmem:[#allocation8 + $0x190] sm:$0xff]   ;;  %v5162_v13 = vld [vmem:[#allocation8 + $0x1c0] sm:$0xff]  }
 0x1bb   : > { %4637 = vmatprep.mubr.bf16.mxu0 %v1843_v58  ;;  %4578 = vmatmul.mubr.bf16.vlgmr.msra.gmra.mxu1 %v1473_v56  ;;  %v2355_v52 = vrot.slane %v2353_v47, 3  ;;  %v2358_v53 = vrot.slane %v2356_v48, 4  ;;  %v2228_v0 = vrot.slane %v4032_v43, 3  ;;  %v2610_v19 = vshrl.u32 %v4050_v24, 16  ;;  %v5170_v30 = vld [vmem:[#allocation8 + $0x268] sm:$0xff]   ;;  %v5179_v41 = vld [vmem:[#allocation8 + $0x210] sm:$0xff]  }
 0x1bc   : > { %4602 = vmatpush3.bf16.msra.mxu1 %v5749_v36  ;;  %4617 = vmatprep.mubr.bf16.mxu1 %v1695_v60  ;;  %v5123_v36 = vld [vmem:[#allocation8 + $0x98] sm:$0xff]   ;;  %v2106_v27 = vsel %vm520_vm0, %v2097_v20, %v5788_v22  ;;  %v2363_v56 = vrot.slane %v2361_v50, 3  ;;  %v5150_v60 = vld [vmem:[#allocation8 + $0x1f0] sm:$0xff]   ;;  %v5181_v43 = vld [vmem:[#allocation8 + $0x208] sm:$0xff]   ;;  %v4051_v50 = vcombine.low %v5799_v23, %v5799_v23 }
 0x1bd   : > { %4626 = vmatpush3.bf16.msra.mxu0 %v5115_v49  ;;  %4603 = vmatprep.subr.bf16.mxu1 %v5117_v57  ;;  %v5144_v49 = vld [vmem:[#allocation8 + $0x140] sm:$0xff]   ;;  %v5190_v23 = vld [vmem:[#allocation8 + $0x290] sm:$0xff]  }
 0x1be   : > { %4627 = vmatprep.subr.bf16.mxu0 %v5118_v59  ;;  %v5182_v46 = vld [vmem:[#allocation8 + $0x200] sm:$0xff]  }
 0x1c0   : > { %4604 = vmatpush3.bf16.msra.mxu1 %v5117_v57  ;;  %v2359_v57 = vor.u32 %v2358_v53, %v2355_v52  ;;  %v5186_v52 = vld [vmem:[#allocation8 + $0x2b0] sm:$0xff]  }
 0x1c1   : > { %4628 = vmatpush3.bf16.msra.mxu0 %v5118_v59  ;;  %4605 = vmatprep.subr.bf16.mxu1 %v5119_v61  ;;  %v5149_v59 = vld [vmem:[#allocation8 + $0x100] sm:$0xff]  }
 0x1c2   : > { %4629 = vmatprep.subr.bf16.mxu0 %v5120_v62 }
 0x1c4   : > { %4606 = vmatpush3.bf16.msra.mxu1 %v5119_v61 }
 0x1c5   : > { %4630 = vmatpush3.bf16.msra.mxu0 %v5120_v62  ;;  %4607 = vmatprep.subr.bf16.mxu1 %v5121_v63  ;;  %v5151_v62 = vld [vmem:[#allocation8 + $0x1b8] sm:$0xff]  }
 0x1c6   : > { %4631 = vmatprep.subr.bf16.mxu0 %v5122_v1 }
 0x1c8   : > { %4608 = vmatpush3.bf16.msra.mxu1 %v5121_v63  ;;  %v5152_v63 = vld [vmem:[#allocation8 + $0x1e8] sm:$0xff]  }
 0x1c9   : > { %4632 = vmatpush3.bf16.msra.mxu0 %v5122_v1  ;;  %4609 = vmatprep.subr.bf16.mxu1 %v5123_v36  ;;  %v2229_v1 = vrot.slane %v5784_v5, 3  ;;  %v5178_v5 = vld [vmem:[#allocation8 + $0x248] sm:$0xff]  }
 0x1ca   : > { %4633 = vmatprep.subr.bf16.mxu0 %v5124_v4 }
 0x1cc   : > { %4610 = vmatpush3.bf16.msra.mxu1 %v5123_v36  ;;  %v2230_v36 = vsel %vm412_vm1, %v2228_v0, %v2229_v1 }
 0x1cd   : > { %4634 = vmatpush3.bf16.msra.mxu0 %v5124_v4  ;;  %4611 = vmatprep.subr.bf16.mxu1 %v5125_v8  ;;  %v5155_v4 = vld [vmem:[#allocation8 + $0x1a8] sm:$0xff]  }
 0x1ce   : > { %4635 = vmatprep.subr.bf16.mxu0 %v5126_v9 }
 0x1d0   : > { %4612 = vmatpush3.bf16.msra.mxu1 %v5125_v8  ;;  %v5158_v8 = vld [vmem:[#allocation8 + $0x1d0] sm:$0xff]  }
 0x1d1   : > { %4636 = vmatpush3.bf16.msra.mxu0 %v5126_v9  ;;  %4613 = vmatprep.subr.bf16.mxu1 %v5127_v16  ;;  %v5159_v9 = vld [vmem:[#allocation8 + $0x198] sm:$0xff]  }
 0x1d2   : > { %4661 = vmatprep.subr.bf16.mxu0 %v5128_v17 }
 0x1d4   : > { %4614 = vmatpush3.bf16.msra.mxu1 %v5127_v16  ;;  %4638 = vmatmul.mubr.bf16.vlgmr.msra.gmra.mxu0 %v5772_v54  ;;  %v5145_v54 = vld [vmem:[#allocation8 + $0x108] sm:$0xff]  }
 0x1d5   : > { %4662 = vmatpush3.bf16.msra.mxu0 %v5128_v17  ;;  %4677 = vmatprep.mubr.bf16.mxu0 %v2106_v27  ;;  %v5817_v16 = vld [vmem:[#allocation2 + $0xc] ss:$0 sps:$4 sm:$0xff]   ;;  %v2614_v17 = vrot.slane %v2612_v11, 1  ;;  %v5168_v27 = vld [vmem:[#allocation8 + $0x270] sm:$0xff]  }
 0x1d6   : > { %4615 = vmatprep.subr.bf16.mxu1 %v5131_v25  ;;  %4663 = vmatprep.subr.bf16.mxu0 %v5132_v26  ;;  %v2617_v20 = vshll.u32 %v5817_v16, 16 }
 0x1d8   : > { %4616 = vmatpush3.bf16.msra.mxu1 %v5131_v25  ;;  %v2619_v25 = vrot.slane %v2617_v20, 1  ;;  %v5195_v20 = vld [vmem:[#allocation9 + $0x78] sm:$0xff]  }
 0x1d9   : > { %4664 = vmatpush3.bf16.msra.mxu0 %v5132_v26  ;;  %4641 = vmatprep.subr.bf16.mxu1 %v5133_v28  ;;  %v5167_v26 = vld [vmem:[#allocation8 + $0x180] sm:$0xff]  }
 0x1da   : > { %4665 = vmatprep.subr.bf16.mxu0 %v5134_v29 }
 0x1db   : > { %4618 = vmatmul.mubr.bf16.vlgmr.msra.gmra.mxu1 %v1694_v34  ;;  %v2366_v34 = vrot.slane %v2364_v51, 4  ;;  %v2746_v51 = vrot.slane %v5817_v16, 1 }
 0x1dc   : > { %4642 = vmatpush3.bf16.msra.mxu1 %v5133_v28  ;;  %4657 = vmatprep.mubr.bf16.mxu1 %v1968_v37  ;;  %v5174_v37 = vld [vmem:[#allocation8 + $0x258] sm:$0xff]  }
 0x1dd   : > { %4666 = vmatpush3.bf16.msra.mxu0 %v5134_v29  ;;  %4643 = vmatprep.subr.bf16.mxu1 %v5135_v33  ;;  %v5804_v58 = vor.u32 %v2366_v34, %v2363_v56  ;;  %v5169_v29 = vld [vmem:[#allocation8 + $0x238] sm:$0xff]   ;;  %v5191_v56 = vld [vmem:[#allocation8 + $0x288] sm:$0xff]   ;;  %v5192_v34 = vld [vmem:[#allocation8 + $0x280] sm:$0xff]  }
 0x1de   : > { %4667 = vmatprep.subr.bf16.mxu0 %v5136_v35 }
 0x1df   : > { %v2368_v61 = vsel %vm666_vm2, %v2359_v57, %v5804_v58 }
 0x1e0   : > { %4644 = vmatpush3.bf16.msra.mxu1 %v5135_v33  ;;  %v5172_v33 = vld [vmem:[#allocation8 + $0x260] sm:$0xff]  }
 0x1e1   : > { %4668 = vmatpush3.bf16.msra.mxu0 %v5136_v35  ;;  %4645 = vmatprep.subr.bf16.mxu1 %v5137_v38  ;;  %v5173_v35 = vld [vmem:[#allocation8 + $0x228] sm:$0xff]  }
 0x1e2   : > { %4669 = vmatprep.subr.bf16.mxu0 %v5138_v39 }
 0x1e4   : > { %4646 = vmatpush3.bf16.msra.mxu1 %v5137_v38  ;;  %v5175_v38 = vld [vmem:[#allocation8 + $0x220] sm:$0xff]  }
 0x1e5   : > { %4670 = vmatpush3.bf16.msra.mxu0 %v5138_v39  ;;  %4647 = vmatprep.subr.bf16.mxu1 %v5139_v40  ;;  %v5176_v39 = vld [vmem:[#allocation8 + $0x250] sm:$0xff]  }
 0x1e6   : > { %4671 = vmatprep.subr.bf16.mxu0 %v5140_v42 }
 0x1e8   : > { %4648 = vmatpush3.bf16.msra.mxu1 %v5139_v40  ;;  %v5177_v40 = vld [vmem:[#allocation8 + $0x218] sm:$0xff]  }
 0x1e9   : > { %4672 = vmatpush3.bf16.msra.mxu0 %v5140_v42  ;;  %4649 = vmatprep.subr.bf16.mxu1 %v5141_v44  ;;  %v5180_v42 = vld [vmem:[#allocation8 + $0x240] sm:$0xff]  }
 0x1ea   : > { %4673 = vmatprep.subr.bf16.mxu0 %v5142_v45 }
 0x1ec   : > { %4650 = vmatpush3.bf16.msra.mxu1 %v5141_v44  ;;  %v2621_v44 = vshrl.u32 %v5817_v16, 16 }
 0x1ed   : > { %4674 = vmatpush3.bf16.msra.mxu0 %v5142_v45  ;;  %4651 = vmatprep.subr.bf16.mxu1 %v5143_v14  ;;  %v2725_v45 = vld [vmem:[#allocation2 + $0x4] sm:$0xe] }
 0x1ee   : > { %4675 = vmatprep.subr.bf16.mxu0 %v5144_v49  ;;  %v2623_v47 = vor.u32 %v2621_v44, %v2619_v25  ;;  %v4069_v48 = vcombine.low %v2725_v45, %v5757_v21  ;;  %v5187_v21 = vld [vmem:[#allocation8 + $0x2a8] sm:$0xff]  }
 0x1f0   : > { %4652 = vmatpush3.bf16.msra.mxu1 %v5143_v14  ;;  %v5184_v14 = vld [vmem:[#allocation8 + $0x2b8] sm:$0xff]  }
 0x1f1   : > { %4676 = vmatpush3.bf16.msra.mxu0 %v5144_v49  ;;  %4653 = vmatprep.subr.bf16.mxu1 %v5145_v54  ;;  %v2745_v49 = vrot.slane %v4069_v48, 1 }
 0x1f2   : > { %4701 = vmatprep.subr.bf16.mxu0 %v5146_v55 }
 0x1f3   : > { %v2747_v53 = vsel %vm1090_vm3, %v2745_v49, %v2746_v51 }
 0x1f4   : > { %4654 = vmatpush3.bf16.msra.mxu1 %v5145_v54  ;;  %4678 = vmatmul.mubr.bf16.vlgmr.msra.gmra.mxu0 %v5788_v22  ;;  %v2615_v22 = vor.u32 %v2614_v17, %v2610_v19  ;;  %v5188_v54 = vld [vmem:[#allocation8 + $0x2a0] sm:$0xff]  }
 0x1f5   : > { %4702 = vmatpush3.bf16.msra.mxu0 %v5146_v55  ;;  %4717 = vmatprep.mubr.bf16.mxu0 %v2368_v61  ;;  %v5189_v55 = vld [vmem:[#allocation8 + $0x298] sm:$0xff]  }
 0x1f6   : > { %4655 = vmatprep.subr.bf16.mxu1 %v5149_v59  ;;  %4703 = vmatprep.subr.bf16.mxu0 %v5150_v60  ;;  %v2620_v28 = vsel %vm946_vm4, %v2615_v22, %v2619_v25  ;;  %v5196_v22 = vld [vmem:[#allocation9 + $0x28] sm:$0xff]   ;;  %v5197_v25 = vld [vmem:[#allocation9 + $0x70] sm:$0xff]  }
 0x1f8   : > { %4656 = vmatpush3.bf16.msra.mxu1 %v5149_v59 }
 0x1f9   : > { %4704 = vmatpush3.bf16.msra.mxu0 %v5150_v60  ;;  %4681 = vmatprep.subr.bf16.mxu1 %v5151_v62 }
 0x1fa   : > { %4705 = vmatprep.subr.bf16.mxu0 %v5152_v63 }
 0x1fb   : > { %4658 = vmatmul.mubr.bf16.vlgmr.msra.gmra.mxu1 %v1967_v31  ;;  %v5171_v31 = vld [vmem:[#allocation8 + $0x230] sm:$0xff]  }
 0x1fc   : > { %4682 = vmatpush3.bf16.msra.mxu1 %v5151_v62  ;;  %4697 = vmatprep.mubr.bf16.mxu1 %v2230_v36  ;;  %v5193_v36 = vld [vmem:[#allocation9 + $0x38] sm:$0xff]  }
 0x1fd   : > { %4706 = vmatpush3.bf16.msra.mxu0 %v5152_v63  ;;  %4683 = vmatprep.subr.bf16.mxu1 %v5153_v2 }
 0x1fe   : > { %4707 = vmatprep.subr.bf16.mxu0 %v5154_v3 }
 0x200   : > { %4684 = vmatpush3.bf16.msra.mxu1 %v5153_v2 }
 0x201   : > { %4708 = vmatpush3.bf16.msra.mxu0 %v5154_v3  ;;  %4685 = vmatprep.subr.bf16.mxu1 %v5155_v4 }
 0x202   : > { %4709 = vmatprep.subr.bf16.mxu0 %v5156_v6 }
 0x204   : > { %4686 = vmatpush3.bf16.msra.mxu1 %v5155_v4  ;;  %v5194_v4 = vld [vmem:[#allocation9 + $0x30] sm:$0xff]  }
 0x205   : > { %4710 = vmatpush3.bf16.msra.mxu0 %v5156_v6  ;;  %4687 = vmatprep.subr.bf16.mxu1 %v5157_v7 }
 0x206   : > { %4711 = vmatprep.subr.bf16.mxu0 %v5158_v8 }
 0x208   : > { %4688 = vmatpush3.bf16.msra.mxu1 %v5157_v7 }
 0x209   : > { %4712 = vmatpush3.bf16.msra.mxu0 %v5158_v8  ;;  %4689 = vmatprep.subr.bf16.mxu1 %v5159_v9 }
 0x20a   : > { %4713 = vmatprep.subr.bf16.mxu0 %v5160_v10 }
 0x20c   : > { %4690 = vmatpush3.bf16.msra.mxu1 %v5159_v9 }
 0x20d   : > { %4714 = vmatpush3.bf16.msra.mxu0 %v5160_v10  ;;  %4691 = vmatprep.subr.bf16.mxu1 %v5161_v12 }
 0x20e   : > { %4715 = vmatprep.subr.bf16.mxu0 %v5162_v13 }
 0x210   : > { %4692 = vmatpush3.bf16.msra.mxu1 %v5161_v12 }
 0x211   : > { %4716 = vmatpush3.bf16.msra.mxu0 %v5162_v13  ;;  %4693 = vmatprep.subr.bf16.mxu1 %v5163_v18 }
 0x212   : > { %4741 = vmatprep.subr.bf16.mxu0 %v5164_v32 }
 0x214   : > { %4694 = vmatpush3.bf16.msra.mxu1 %v5163_v18  ;;  %4718 = vmatmul.mubr.bf16.vlgmr.msra.gmra.mxu0 %v5804_v58 }
 0x215   : > { %4742 = vmatpush3.bf16.msra.mxu0 %v5164_v32  ;;  %4757 = vmatprep.mubr.bf16.mxu0 %v2620_v28  ;;  %v5200_v28 = vld [vmem:[#allocation9 + $0x18] sm:$0xff]  }
 0x216   : > { %4695 = vmatprep.subr.bf16.mxu1 %v5167_v26  ;;  %4743 = vmatprep.subr.bf16.mxu0 %v5168_v27 }
 0x218   : > { %4696 = vmatpush3.bf16.msra.mxu1 %v5167_v26  ;;  %v5198_v26 = vld [vmem:[#allocation9 + $0x20] sm:$0xff]  }
 0x219   : > { %4744 = vmatpush3.bf16.msra.mxu0 %v5168_v27  ;;  %4721 = vmatprep.subr.bf16.mxu1 %v5169_v29  ;;  %v5199_v27 = vld [vmem:[#allocation9 + $0x68] sm:$0xff]  }
 0x21a   : > { %4745 = vmatprep.subr.bf16.mxu0 %v5170_v30 }
 0x21b   : > { %4698 = vmatmul.mubr.bf16.vlgmr.msra.gmra.mxu1 %v2229_v1 }
 0x21c   : > { %4722 = vmatpush3.bf16.msra.mxu1 %v5169_v29  ;;  %4737 = vmatprep.mubr.bf16.mxu1 %v4050_v24  ;;  %v5201_v29 = vld [vmem:[#allocation9 + $0x60] sm:$0xff]  }
 0x21d   : > { %4746 = vmatpush3.bf16.msra.mxu0 %v5170_v30  ;;  %4723 = vmatprep.subr.bf16.mxu1 %v5171_v31  ;;  %v5202_v30 = vld [vmem:[#allocation9 + $0x10] sm:$0xff]  }
 0x21e   : > { %4747 = vmatprep.subr.bf16.mxu0 %v5172_v33 }
 0x220   : > { %4724 = vmatpush3.bf16.msra.mxu1 %v5171_v31  ;;  %v5203_v31 = vld [vmem:[#allocation9 + $0x58] sm:$0xff]  }
 0x221   : > { %4748 = vmatpush3.bf16.msra.mxu0 %v5172_v33  ;;  %4725 = vmatprep.subr.bf16.mxu1 %v5173_v35  ;;  %v5204_v33 = vld [vmem:[#allocation9 + $0x8] sm:$0xff]  }
 0x222   : > { %4749 = vmatprep.subr.bf16.mxu0 %v5174_v37 }
 0x224   : > { %4726 = vmatpush3.bf16.msra.mxu1 %v5173_v35 }
 0x225   : > { %4750 = vmatpush3.bf16.msra.mxu0 %v5174_v37  ;;  %4727 = vmatprep.subr.bf16.mxu1 %v5175_v38 }
 0x226   : > { %4751 = vmatprep.subr.bf16.mxu0 %v5176_v39 }
 0x228   : > { %4728 = vmatpush3.bf16.msra.mxu1 %v5175_v38  ;;  %v5205_v38 = vld [vmem:[#allocation9 + $0x50] sm:$0xff]  }
 0x229   : > { %4752 = vmatpush3.bf16.msra.mxu0 %v5176_v39  ;;  %4729 = vmatprep.subr.bf16.mxu1 %v5177_v40  ;;  %v5206_v39 = vld [vmem:[#allocation9] sm:$0xff]  }
 0x22a   : > { %4753 = vmatprep.subr.bf16.mxu0 %v5178_v5 }
 0x22c   : > { %4730 = vmatpush3.bf16.msra.mxu1 %v5177_v40 }
 0x22d   : > { %4754 = vmatpush3.bf16.msra.mxu0 %v5178_v5  ;;  %4731 = vmatprep.subr.bf16.mxu1 %v5179_v41 }
 0x22e   : > { %4755 = vmatprep.subr.bf16.mxu0 %v5180_v42 }
 0x230   : > { %4732 = vmatpush3.bf16.msra.mxu1 %v5179_v41  ;;  %v5207_v41 = vld [vmem:[#allocation9 + $0x48] sm:$0xff]  }
 0x231   : > { %4756 = vmatpush3.bf16.msra.mxu0 %v5180_v42  ;;  %4733 = vmatprep.subr.bf16.mxu1 %v5181_v43 }
 0x232   : > { %4781 = vmatprep.subr.bf16.mxu0 %v5458_v15 }
 0x234   : > { %4734 = vmatpush3.bf16.msra.mxu1 %v5181_v43  ;;  %4758 = vmatmul.mubr.bf16.vlgmr.msra.gmra.mxu0 %v2623_v47  ;;  %v5210_v47 = vld [vmem:[#allocation9 + $0x40] sm:$0xff]  }
 0x235   : > { %4735 = vmatprep.subr.bf16.mxu1 %v5182_v46  ;;  %4782 = vmatpush3.bf16.msra.mxu0 %v5195_v20 }
 0x236   : > { %4783 = vmatprep.subr.bf16.mxu0 %v5458_v15  ;;  %4797 = vmatprep.mubr.msk.bf16.mxu0 %vm5459_vm7, %v5458_v15 }
 0x238   : > { %4736 = vmatpush3.bf16.msra.mxu1 %v5182_v46 }
 0x239   : > { %4761 = vmatprep.subr.bf16.mxu1 %v5184_v14  ;;  %4784 = vmatpush3.bf16.msra.mxu0 %v5197_v25 }
 0x23a   : > { %4785 = vmatprep.subr.bf16.mxu0 %v5458_v15 }
 0x23b   : > { %4738 = vmatmul.mubr.bf16.vlgmr.msra.gmra.mxu1 %v4051_v50 }
 0x23c   : > { %4762 = vmatpush3.bf16.msra.mxu1 %v5184_v14  ;;  %4777 = vmatprep.mubr.bf16.mxu1 %v2747_v53 }
 0x23d   : > { %4763 = vmatprep.subr.bf16.mxu1 %v5186_v52  ;;  %4786 = vmatpush3.bf16.msra.mxu0 %v5199_v27 }
 0x23e   : > { %4787 = vmatprep.subr.bf16.mxu0 %v5458_v15 }
 0x240   : > { %4764 = vmatpush3.bf16.msra.mxu1 %v5186_v52 }
 0x241   : > { %4765 = vmatprep.subr.bf16.mxu1 %v5187_v21  ;;  %4788 = vmatpush3.bf16.msra.mxu0 %v5201_v29 }
 0x242   : > { %4789 = vmatprep.subr.bf16.mxu0 %v5458_v15 }
 0x244   : > { %4766 = vmatpush3.bf16.msra.mxu1 %v5187_v21 }
 0x245   : > { %4767 = vmatprep.subr.bf16.mxu1 %v5188_v54  ;;  %4790 = vmatpush3.bf16.msra.mxu0 %v5203_v31 }
 0x246   : > { %4791 = vmatprep.subr.bf16.mxu0 %v5458_v15 }
 0x248   : > { %4768 = vmatpush3.bf16.msra.mxu1 %v5188_v54 }
 0x249   : > { %4769 = vmatprep.subr.bf16.mxu1 %v5189_v55  ;;  %4792 = vmatpush3.bf16.msra.mxu0 %v5205_v38 }
 0x24a   : > { %4793 = vmatprep.subr.bf16.mxu0 %v5458_v15 }
 0x24c   : > { %4770 = vmatpush3.bf16.msra.mxu1 %v5189_v55 }
 0x24d   : > { %4771 = vmatprep.subr.bf16.mxu1 %v5190_v23  ;;  %4794 = vmatpush3.bf16.msra.mxu0 %v5207_v41 }
 0x24e   : > { %4795 = vmatprep.subr.bf16.mxu0 %v5458_v15 }
 0x250   : > { %4772 = vmatpush3.bf16.msra.mxu1 %v5190_v23 }
 0x251   : > { %4773 = vmatprep.subr.bf16.mxu1 %v5191_v56  ;;  %4796 = vmatpush3.bf16.msra.mxu0 %v5210_v47 }
 0x252   : > { %4821 = vmatprep.subr.bf16.mxu0 %v5458_v15 }
 0x254   : > { %4774 = vmatpush3.bf16.msra.mxu1 %v5191_v56 }
 0x255   : > { %4775 = vmatprep.subr.bf16.mxu1 %v5192_v34 }
 0x258   : > { %4776 = vmatpush3.bf16.msra.mxu1 %v5192_v34 }
 0x259   : > { %4801 = vmatprep.subr.bf16.mxu1 %v5458_v15 }
 0x25b   : > { %4778 = vmatmul.mubr.bf16.vlgmr.msra.gmra.mxu1 %v2746_v51 }
 0x25c   : > { %4802 = vmatpush3.bf16.msra.mxu1 %v5193_v36  ;;  %4817 = vmatprep.mubr.msk.bf16.mxu1 %vm5459_vm7, %v5458_v15 }
 0x25d   : > { %4803 = vmatprep.subr.bf16.mxu1 %v5458_v15 }
 0x260   : > { %4804 = vmatpush3.bf16.msra.mxu1 %v5194_v4 }
 0x261   : > { %4805 = vmatprep.subr.bf16.mxu1 %v5458_v15 }
 0x264   : > { %4806 = vmatpush3.bf16.msra.mxu1 %v5196_v22 }
 0x265   : > { %4807 = vmatprep.subr.bf16.mxu1 %v5458_v15 }
 0x268   : > { %4808 = vmatpush3.bf16.msra.mxu1 %v5198_v26 }
 0x269   : > { %4809 = vmatprep.subr.bf16.mxu1 %v5458_v15 }
 0x26c   : > { %4810 = vmatpush3.bf16.msra.mxu1 %v5200_v28 }
 0x26d   : > { %4811 = vmatprep.subr.bf16.mxu1 %v5458_v15 }
 0x270   : > { %4812 = vmatpush3.bf16.msra.mxu1 %v5202_v30 }
 0x271   : > { %4813 = vmatprep.subr.bf16.mxu1 %v5458_v15 }
 0x274   : > { %v4599_v57 = vpop.f32.mrf.mxu0  ;;  %4814 = vmatpush3.bf16.msra.mxu1 %v5204_v33 }
 0x275   : > { %4815 = vmatprep.subr.bf16.mxu1 %v5458_v15 }
 0x276   : > { %v1659_v58 = vpop.f32.mrf.mxu0 }
 0x278   : > { %v4600_v59 = vpop.f32.mrf.mxu0  ;;  %4816 = vmatpush3.bf16.msra.mxu1 %v5206_v39 }
 0x279   : > { %4841 = vmatprep.subr.bf16.mxu1 %v5458_v15 }
 0x27a   : > { %v1662_v1 = vpop.f32.mrf.mxu0 }
 0x27b   : > { %v4579_v60 = vpop.f32.mrf.mxu1 }
 0x27c   : > { %v1668_v61 = vadd.f32 %v4599_v57, %v4579_v60 }
 0x27d   : > { %v1558_v62 = vpop.f32.mrf.mxu1 }
 0x27e   : > { %v1660_v63 = vadd.f32 %v1659_v58, %v1558_v62 }
 0x27f   : > { %v4580_v0 = vpop.f32.mrf.mxu1 }
 0x281   : > { %v1561_v2 = vpop.f32.mrf.mxu1 }
 0x282   : > { %v1663_v3 = vadd.f32 %v1662_v1, %v1561_v2 }
 0x294   : > { %v4639_v6 = vpop.f32.mrf.mxu0 }
 0x296   : > { %v1928_v7 = vpop.f32.mrf.mxu0 }
 0x298   : > { %v4640_v8 = vpop.f32.mrf.mxu0 }
 0x29a   : > { %v1931_v32 = vpop.f32.mrf.mxu0 }
 0x29b   : > { %v4619_v24 = vpop.f32.mrf.mxu1 }
 0x29c   : > { %v1796_v9 = vadd.f32 %v4619_v24, %v1668_v61 }
 0x29d   : > { %v1780_v10 = vpop.f32.mrf.mxu1 }
 0x29e   : > { %v1794_v11 = vadd.f32 %v1780_v10, %v1660_v63  ;;  %v1944_v12 = vadd.f32 %v4639_v6, %v1796_v9 }
 0x29f   : > { %v4620_v13 = vpop.f32.mrf.mxu1 }
 0x2a0   : > { %v1942_v16 = vadd.f32 %v1928_v7, %v1794_v11 }
 0x2a1   : > { %v1783_v17 = vpop.f32.mrf.mxu1 }
 0x2a2   : > { %v1795_v18 = vadd.f32 %v1783_v17, %v1663_v3  ;;  %v1361_v3 = vlaneseq }
 0x2a4   : > { %v1943_v19 = vadd.f32 %v1931_v32, %v1795_v18  ;;  %v1362_v36 = vshrl.u32 %v1361_v3, 7 }
 0x2a6   : > { %v1364_v7 = vadd.s32 16, %v1362_v36  ;;  %v2864_v28 = vadd.s32 4294967293, %v1362_v36 }
 0x2a8   : > { %v2866_v13 = vadd.s32 4294967293, %v1364_v7  ;;  %vm2867_vm9 = vcmp.ge.s32.totalorder %v2864_v28, 0  ;;  %v5236_v28 = vld [vmem:[#allocation9 + $0x158] sm:$0xff]  }
 0x2aa   : > { %vm2872_vm8 = vcmp.lt.s32.totalorder %v2866_v13, 16  ;;  %v5229_v13 = vld [vmem:[#allocation9 + $0x80] sm:$0xff]  }
 0x2b4   : > { %v4679_v35 = vpop.f32.mrf.mxu0 }
 0x2b6   : > { %v2191_v37 = vpop.f32.mrf.mxu0 }
 0x2b8   : > { %v4680_v40 = vpop.f32.mrf.mxu0 }
 0x2ba   : > { %v2194_v50 = vpop.f32.mrf.mxu0 }
 0x2bb   : > { %v4659_v5 = vpop.f32.mrf.mxu1 }
 0x2bc   : > { %v2069_v42 = vadd.f32 %v4659_v5, %v1944_v12  ;;  %v4078_v12 = vld [vmem:[%s5993_s5] ss:$0 sm:$0xff] }
 0x2bd   : > { %v2053_v43 = vpop.f32.mrf.mxu1 }
 0x2be   : > { %v2067_v44 = vadd.f32 %v2053_v43, %v1942_v16  ;;  %v2207_v45 = vadd.f32 %v4679_v35, %v2069_v42 }
 0x2bf   : > { %v4660_v46 = vpop.f32.mrf.mxu1 }
 0x2c0   : > { %v2205_v48 = vadd.f32 %v2191_v37, %v2067_v44  ;;  %v5209_v44 = vld [vmem:[#allocation9 + $0xf8] sm:$0xff]  }
 0x2c1   : > { %v2056_v14 = vpop.f32.mrf.mxu1 }
 0x2c2   : > { %v2068_v49 = vadd.f32 %v2056_v14, %v1943_v19 }
 0x2c4   : > { %v2206_v51 = vadd.f32 %v2194_v50, %v2068_v49 }
 0x2d4   : > { %v4719_v52 = vpop.f32.mrf.mxu0 }
 0x2d6   : > { %v2453_v53 = vpop.f32.mrf.mxu0 }
 0x2d8   : > { %v4720_v21 = vpop.f32.mrf.mxu0 }
 0x2da   : > { %v2456_v59 = vpop.f32.mrf.mxu0 }
 0x2db   : > { %v4699_v54 = vpop.f32.mrf.mxu1 }
 0x2dc   : > { %v2331_v55 = vadd.f32 %v4699_v54, %v2207_v45  ;;  %v5215_v54 = vld [vmem:[#allocation9 + $0xb0] sm:$0xff]  }
 0x2dd   : > { %v2315_v23 = vpop.f32.mrf.mxu1 }
 0x2de   : > { %v2329_v56 = vadd.f32 %v2315_v23, %v2205_v48  ;;  %v2469_v34 = vadd.f32 %v4719_v52, %v2331_v55  ;;  %v5211_v48 = vld [vmem:[#allocation9 + $0xf0] sm:$0xff]   ;;  %v5213_v52 = vld [vmem:[#allocation9 + $0xb8] sm:$0xff]   ;;  %v5216_v55 = vld [vmem:[#allocation9 + $0xe0] sm:$0xff]  }
 0x2df   : > { %v4700_v57 = vpop.f32.mrf.mxu1  ;;  %v5217_v23 = vld [vmem:[#allocation9 + $0xa8] sm:$0xff]  }
 0x2e0   : > { %v2467_v58 = vadd.f32 %v2453_v53, %v2329_v56  ;;  %v5214_v53 = vld [vmem:[#allocation9 + $0xe8] sm:$0xff]  }
 0x2e1   : > { %v2318_v63 = vpop.f32.mrf.mxu1 }
 0x2e2   : > { %v2330_v4 = vadd.f32 %v2318_v63, %v2206_v51  ;;  %v5221_v63 = vld [vmem:[#allocation9 + $0x98] sm:$0xff]  }
 0x2e4   : > { %v2468_v9 = vadd.f32 %v2456_v59, %v2330_v4  ;;  %v5220_v59 = vld [vmem:[#allocation9 + $0xd0] sm:$0xff]  }
 0x2e5   : > { %v5223_v4 = vld [vmem:[#allocation9 + $0x90] sm:$0xff]  }
 0x2f4   : > { %v4759_v60 = vpop.f32.mrf.mxu0 }
 0x2f6   : > { %v2708_v61 = vpop.f32.mrf.mxu0 }
 0x2f8   : > { %v4760_v62 = vpop.f32.mrf.mxu0 }
 0x2fa   : > { %v2711_v22 = vpop.f32.mrf.mxu0 }
 0x2fb   : > { %v4739_v0 = vpop.f32.mrf.mxu1 }
 0x2fc   : > { %v2588_v6 = vadd.f32 %v4739_v0, %v2469_v34  ;;  %v5218_v34 = vld [vmem:[#allocation9 + $0xd8] sm:$0xff]   ;;  %v5222_v0 = vld [vmem:[#allocation9 + $0xc8] sm:$0xff]  }
 0x2fd   : > { %v2572_v1 = vpop.f32.mrf.mxu1 }
 0x2fe   : > { %v2586_v8 = vadd.f32 %v2572_v1, %v2467_v58  ;;  %v2724_v10 = vadd.f32 %v4759_v60, %v2588_v6  ;;  %v5219_v58 = vld [vmem:[#allocation9 + $0xa0] sm:$0xff]  }
 0x2ff   : > { %v4740_v2 = vpop.f32.mrf.mxu1  ;;  %v5224_v6 = vld [vmem:[#allocation9 + $0xc0] sm:$0xff]  }
 0x300   : > { %v2722_v18 = vadd.f32 %v2708_v61, %v2586_v8 }
 0x301   : > { %v2575_v24 = vpop.f32.mrf.mxu1 }
 0x302   : > { %v2587_v16 = vadd.f32 %v2575_v24, %v2468_v9  ;;  %v5225_v9 = vld [vmem:[#allocation9 + $0x88] sm:$0xff]  }
 0x304   : > { %v2723_v29 = vadd.f32 %v2711_v22, %v2587_v16  ;;  %v5230_v16 = vld [vmem:[#allocation9 + $0x170] sm:$0xff]  }
 0x305   : > { %v5233_v22 = vld [vmem:[#allocation9 + $0x130] sm:$0xff]  }
 0x31b   : > { %v4779_v11 = vpop.f32.mrf.mxu1 }
 0x31c   : > { %v2848_v17 = vadd.f32 %v4779_v11, %v2724_v10  ;;  %v5228_v11 = vld [vmem:[#allocation9 + $0x178] sm:$0xff]  }
 0x31d   : > { %v2832_v32 = vpop.f32.mrf.mxu1 }
 0x31e   : > { %v2858_v19 = vadd.f32 %v4078_v12, %v2848_v17  ;;  %v2846_v20 = vadd.f32 %v2832_v32, %v2722_v18  ;;  %v5231_v32 = vld [vmem:[#allocation9 + $0x138] sm:$0xff]  }
 0x31f   : > { %v4780_v25 = vpop.f32.mrf.mxu1 }
 0x320   : > { %v2861_v26 = vmax.f32 %v2858_v19, 0.0  ;;  %v2856_v27 = vadd.f32 %v4078_v12, %v2846_v20  ;;  %v5232_v19 = vld [vmem:[#allocation9 + $0x168] sm:$0xff]   ;;  %v5234_v25 = vld [vmem:[#allocation9 + $0x160] sm:$0xff]  }
 0x321   : > { %v2835_v30 = vpop.f32.mrf.mxu1 }
 0x322   : > { %v2884_v31 = vsel %vm2872_vm8, %v2861_v26, 0.0  ;;  %v2847_v33 = vadd.f32 %v2835_v30, %v2723_v29  ;;  %v2859_v37 = vmax.f32 %v2856_v27, 0.0  ;;  %v5235_v26 = vld [vmem:[#allocation9 + $0x128] sm:$0xff]   ;;  %v5237_v30 = vld [vmem:[#allocation9 + $0x120] sm:$0xff]  }
 0x323   : > { %v4157_v35 = vpack.c.bf16 %v2884_v31, %v2884_v31  ;;  %v5238_v31 = vld [vmem:[#allocation9 + $0x150] sm:$0xff]  }
 0x324   : > { %v2857_v38 = vadd.f32 %v4078_v12, %v2847_v33  ;;  %v2882_v40 = vsel %vm2867_vm9, %v2859_v37, 0.0 }
 0x325   : > { %2900 = vst [vmem:[#allocation2 + $0x8] sm:$0x7] %v4157_v35 }
 0x326   : > { %v2860_v39 = vmax.f32 %v2857_v38, 0.0  ;;  %v5239_v38 = vld [vmem:[#allocation9 + $0x118] sm:$0xff]  }
 0x328   : > { %v4170_v5 = vpack.c.bf16 %v2860_v39, %v2882_v40  ;;  %v5240_v39 = vld [vmem:[#allocation9 + $0x148] sm:$0xff]  }
 0x32a   : > { %4171 = vst [vmem:[#allocation2] sm:$0xff] %v4170_v5  }
 0x32c   : > { %v5855_v41 = vld [vmem:[#allocation2 + $0x8] ss:$0 sps:$4 sm:$0x11]  }
 0x32d   : > { %v2952_v47 = vshll.u32 %v5855_v41, 16  ;;  %v5874_v60 = vld [vmem:[#allocation2 + $0x8] ss:$0 sps:$4 sm:$0x33]   ;;  %v3157_v18 = vrot.slane %v5855_v41, 1 }
 0x32e   : > { %v3280_v1 = vshrl.u32 %v5874_v60, 16  ;;  %v3283_v2 = vshll.u32 %v5874_v60, 16  ;;  %v5902_v33 = vld [vmem:[#allocation2 + $0x8] ss:$0 sps:$4 sm:$0x77]  }
 0x32f   : > { %v2954_v51 = vrot.slane %v2952_v47, 1  ;;  %v3524_v40 = vshrl.u32 %v5902_v33, 16  ;;  %v3527_v5 = vshll.u32 %v5902_v33, 16 }
 0x330   : > { %v3282_v7 = vrot.slane %v3280_v1, 1  ;;  %v3285_v8 = vrot.slane %v3283_v2, 2 }
 0x331   : > { %v2901_v42 = vld [vmem:[#allocation2] sm:$0xf]  ;;  %v5857_v43 = vld [vmem:[#allocation2 + $0x4] sm:$0xf]  ;;  %v3529_v47 = vrot.slane %v3527_v5, 3 }
 0x332   : > { %v4082_v45 = vcombine.low %v2901_v42, %v5857_v43  ;;  %v3136_v56 = vld [vmem:[#allocation2] sm:$0xe]  ;;  %v3286_v10 = vor.u32 %v3285_v8, %v3282_v7 }
 0x333   : > { %v4100_v57 = vcombine.low %v3136_v56, %v5857_v43  ;;  %v3380_v27 = vld [vmem:[#allocation2] sm:$0xc] }
 0x334   : > { %4818 = vmatmul.mubr.bf16.vlgmr.msra.gmra.mxu1 %v4082_v45  ;;  %v2947_v46 = vshll.u32 %v4082_v45, 16  ;;  %v2945_v14 = vshrl.u32 %v4082_v45, 16  ;;  %v4118_v29 = vcombine.low %v3380_v27, %v5857_v43  ;;  %v5242_v45 = vld [vmem:[#allocation9 + $0x140] sm:$0xff]  }
 0x335   : > { %4842 = vmatpush3.bf16.msra.mxu1 %v5209_v44  ;;  %4857 = vmatprep.mubr.msk.bf16.mxu1 %vm5459_vm7, %v5458_v15  ;;  %v3272_v61 = vshrl.u32 %v4100_v57, 16  ;;  %v3275_v62 = vshll.u32 %v4100_v57, 16  ;;  %v3156_v17 = vrot.slane %v4100_v57, 1  ;;  %v5241_v44 = vld [vmem:[#allocation9 + $0x110] sm:$0xff]   ;;  %v5250_v56 = vld [vmem:[#allocation9 + $0x1a0] sm:$0xff]  }
 0x336   : > { %4843 = vmatprep.subr.bf16.mxu1 %v5458_v15  ;;  %v2949_v49 = vrot.slane %v2947_v46, 1  ;;  %v3516_v35 = vshrl.u32 %v4118_v29, 16  ;;  %v3519_v37 = vshll.u32 %v4118_v29, 16  ;;  %v3526_v46 = vrot.slane %v3524_v40, 2  ;;  %v5252_v57 = vld [vmem:[#allocation9 + $0x190] sm:$0xff]  }
 0x337   : > { %v3274_v3 = vrot.slane %v3272_v61, 1  ;;  %v3277_v36 = vrot.slane %v3275_v62, 2  ;;  %v3158_v20 = vsel %vm1090_vm3, %v3156_v17, %v3157_v18  ;;  %v5254_v61 = vld [vmem:[#allocation9 + $0x180] sm:$0xff]  }
 0x338   : > { %v2950_v50 = vor.u32 %v2949_v49, %v2945_v14  ;;  %v3518_v41 = vrot.slane %v3516_v35, 2  ;;  %v3521_v42 = vrot.slane %v3519_v37, 3  ;;  %v5243_v14 = vld [vmem:[#allocation9 + $0x108] sm:$0xff]   ;;  %v3530_v49 = vor.u32 %v3529_v47, %v3526_v46  ;;  %v4177_v35 = vld [vmem:[%s5647_s16 + $0x8] sm:$0xff]   ;;  %v4145_v40 = vld [vmem:[%s5994_s6] ss:$0 sm:$0xff] }
 0x339   : > { %4844 = vmatpush3.bf16.msra.mxu1 %v5211_v48  ;;  %v3278_v24 = vor.u32 %v3277_v36, %v3274_v3  ;;  %s5368_s16 = scalar_lea.vmem %s5367_s28, 512 }
 0x33a   : > { %v2955_v21 = vsel %vm946_vm4, %v2950_v50, %v2954_v51  ;;  %4845 = vmatprep.subr.bf16.mxu1 %v5458_v15  ;;  %v3522_v48 = vor.u32 %v3521_v42, %v3518_v41  ;;  %v5246_v51 = vld [vmem:[#allocation9 + $0x100] sm:$0xff]   ;;  %v4174_v41 = vunpack.c.l.bf16 %v4177_v35  ;;  %p5370_p11 = scmp.lt.s32.totalorder %s5368_s16, %s5362_s3 }
 0x33b   : > { %4798 = vmatmul.mubr.bf16.vlgmr.msra.gmra.mxu0 %v2955_v21  ;;  %v3287_v12 = vsel %vm1219_vm5, %v3278_v24, %v3286_v10  ;;  %v5247_v21 = vld [vmem:[#allocation9 + $0x1b8] sm:$0xff]  }
 0x33c   : > { %4822 = vmatpush3.bf16.msra.mxu0 %v5213_v52  ;;  %4837 = vmatprep.mubr.msk.bf16.mxu0 %vm5459_vm7, %v5458_v15  ;;  %v3531_v50 = vsel %vm520_vm0, %v3522_v48, %v3530_v49  ;;  %v3400_v52 = vrot.slane %v4118_v29, 2  ;;  %p5371_p2 = por %p5370_p11, %p5369_p5 }
 0x33d   : > { %4846 = vmatpush3.bf16.msra.mxu1 %v5214_v53  ;;  %4823 = vmatprep.subr.bf16.mxu0 %v5458_v15  ;;  %v3401_v53 = vrot.slane %v5874_v60, 2 }
 0x33e   : > { %4847 = vmatprep.subr.bf16.mxu1 %v5458_v15  ;;  %p5372_p10 = pnand %p5371_p2, %p5365_p8 }
 0x340   : > { %4824 = vmatpush3.bf16.msra.mxu0 %v5215_v54  ;;  %v3402_v54 = vsel %vm1965_vm6, %v3400_v52, %v3401_v53 }
 0x341   : > { %4848 = vmatpush3.bf16.msra.mxu1 %v5216_v55  ;;  %4825 = vmatprep.subr.bf16.mxu0 %v5458_v15  ;;  %v5248_v55 = vld [vmem:[#allocation9 + $0x1b0] sm:$0xff]  }
 0x342   : > { %4849 = vmatprep.subr.bf16.mxu1 %v5458_v15 }
 0x344   : > { %4826 = vmatpush3.bf16.msra.mxu0 %v5217_v23  ;;  %v5249_v23 = vld [vmem:[#allocation9 + $0x1a8] sm:$0xff]  }
 0x345   : > { %4850 = vmatpush3.bf16.msra.mxu1 %v5218_v34  ;;  %4827 = vmatprep.subr.bf16.mxu0 %v5458_v15  ;;  %v5251_v34 = vld [vmem:[#allocation9 + $0x198] sm:$0xff]  }
 0x346   : > { %4851 = vmatprep.subr.bf16.mxu1 %v5458_v15 }
 0x348   : > { %4828 = vmatpush3.bf16.msra.mxu0 %v5219_v58  ;;  %v3624_v58 = vld [vmem:[#allocation2] sm:$0x8] }
 0x349   : > { %4852 = vmatpush3.bf16.msra.mxu1 %v5220_v59  ;;  %4829 = vmatprep.subr.bf16.mxu0 %v5458_v15  ;;  %v5253_v59 = vld [vmem:[#allocation9 + $0x188] sm:$0xff]   ;;  %v4136_v60 = vcombine.low %v3624_v58, %v5857_v43 }
 0x34a   : > { %4853 = vmatprep.subr.bf16.mxu1 %v5458_v15 }
 0x34b   : > { %v3644_v62 = vrot.slane %v4136_v60, 3 }
 0x34c   : > { %4830 = vmatpush3.bf16.msra.mxu0 %v5221_v63  ;;  %v3645_v63 = vrot.slane %v5902_v33, 3 }
 0x34d   : > { %4854 = vmatpush3.bf16.msra.mxu1 %v5222_v0  ;;  %4831 = vmatprep.subr.bf16.mxu0 %v5458_v15 }
 0x34e   : > { %4855 = vmatprep.subr.bf16.mxu1 %v5458_v15  ;;  %v3646_v0 = vsel %vm412_vm1, %v3644_v62, %v3645_v63 }
 0x350   : > { %4832 = vmatpush3.bf16.msra.mxu0 %v5223_v4 }
 0x351   : > { %4856 = vmatpush3.bf16.msra.mxu1 %v5224_v6  ;;  %4833 = vmatprep.subr.bf16.mxu0 %v5458_v15 }
 0x352   : > { %4881 = vmatprep.subr.bf16.mxu1 %v5458_v15 }
 0x354   : > { %4834 = vmatpush3.bf16.msra.mxu0 %v5225_v9  ;;  %4858 = vmatmul.mubr.bf16.vlgmr.msra.gmra.mxu1 %v3287_v12 }
 0x355   : > { %4882 = vmatpush3.bf16.msra.mxu1 %v5228_v11  ;;  %4835 = vmatprep.subr.bf16.mxu0 %v5458_v15 }
 0x356   : > { %4883 = vmatprep.subr.bf16.mxu1 %v5458_v15  ;;  %4897 = vmatprep.mubr.msk.bf16.mxu1 %vm5459_vm7, %v5458_v15 }
 0x358   : > { %4836 = vmatpush3.bf16.msra.mxu0 %v5229_v13 }
 0x359   : > { %4884 = vmatpush3.bf16.msra.mxu1 %v5230_v16  ;;  %4861 = vmatprep.subr.bf16.mxu0 %v5458_v15 }
 0x35a   : > { %4885 = vmatprep.subr.bf16.mxu1 %v5458_v15 }
 0x35b   : > { %4838 = vmatmul.mubr.bf16.vlgmr.msra.gmra.mxu0 %v3158_v20 }
 0x35c   : > { %4862 = vmatpush3.bf16.msra.mxu0 %v5231_v32  ;;  %4877 = vmatprep.mubr.msk.bf16.mxu0 %vm5459_vm7, %v5458_v15 }
 0x35d   : > { %4886 = vmatpush3.bf16.msra.mxu1 %v5232_v19  ;;  %4863 = vmatprep.subr.bf16.mxu0 %v5458_v15 }
 0x35e   : > { %4887 = vmatprep.subr.bf16.mxu1 %v5458_v15 }
 0x360   : > { %4864 = vmatpush3.bf16.msra.mxu0 %v5233_v22 }
 0x361   : > { %4888 = vmatpush3.bf16.msra.mxu1 %v5234_v25  ;;  %4865 = vmatprep.subr.bf16.mxu0 %v5458_v15 }
 0x362   : > { %4889 = vmatprep.subr.bf16.mxu1 %v5458_v15 }
 0x364   : > { %4866 = vmatpush3.bf16.msra.mxu0 %v5235_v26 }
 0x365   : > { %4890 = vmatpush3.bf16.msra.mxu1 %v5236_v28  ;;  %4867 = vmatprep.subr.bf16.mxu0 %v5458_v15 }
 0x366   : > { %4891 = vmatprep.subr.bf16.mxu1 %v5458_v15 }
 0x368   : > { %4868 = vmatpush3.bf16.msra.mxu0 %v5237_v30 }
 0x369   : > { %4892 = vmatpush3.bf16.msra.mxu1 %v5238_v31  ;;  %4869 = vmatprep.subr.bf16.mxu0 %v5458_v15 }
 0x36a   : > { %4893 = vmatprep.subr.bf16.mxu1 %v5458_v15 }
 0x36c   : > { %4870 = vmatpush3.bf16.msra.mxu0 %v5239_v38 }
 0x36d   : > { %4894 = vmatpush3.bf16.msra.mxu1 %v5240_v39  ;;  %4871 = vmatprep.subr.bf16.mxu0 %v5458_v15 }
 0x36e   : > { %4895 = vmatprep.subr.bf16.mxu1 %v5458_v15 }
 0x370   : > { %4872 = vmatpush3.bf16.msra.mxu0 %v5241_v44 }
 0x371   : > { %4896 = vmatpush3.bf16.msra.mxu1 %v5242_v45  ;;  %4873 = vmatprep.subr.bf16.mxu0 %v5458_v15 }
 0x374   : > { %4874 = vmatpush3.bf16.msra.mxu0 %v5243_v14  ;;  %4898 = vmatmul.mubr.bf16.vlgmr.msra.gmra.mxu1 %v3531_v50  ;;  %v4175_v14 = vunpack.c.h.bf16 %v4177_v35 }
 0x375   : > { %4875 = vmatprep.subr.bf16.mxu0 %v5458_v15 }
 0x378   : > { %4876 = vmatpush3.bf16.msra.mxu0 %v5246_v51 }
 0x379   : > { %4901 = vmatprep.subr.bf16.mxu0 %v5458_v15 }
 0x37b   : > { %4878 = vmatmul.mubr.bf16.vlgmr.msra.gmra.mxu0 %v3402_v54 }
 0x37c   : > { %4902 = vmatpush3.bf16.msra.mxu0 %v5247_v21  ;;  %4917 = vmatprep.mubr.msk.bf16.mxu0 %vm5459_vm7, %v5458_v15 }
 0x37d   : > { %4903 = vmatprep.subr.bf16.mxu0 %v5458_v15 }
 0x380   : > { %4904 = vmatpush3.bf16.msra.mxu0 %v5248_v55 }
 0x381   : > { %4905 = vmatprep.subr.bf16.mxu0 %v5458_v15 }
 0x384   : > { %4906 = vmatpush3.bf16.msra.mxu0 %v5249_v23 }
 0x385   : > { %4907 = vmatprep.subr.bf16.mxu0 %v5458_v15 }
 0x388   : > { %4908 = vmatpush3.bf16.msra.mxu0 %v5250_v56 }
 0x389   : > { %4909 = vmatprep.subr.bf16.mxu0 %v5458_v15 }
 0x38c   : > { %4910 = vmatpush3.bf16.msra.mxu0 %v5251_v34 }
 0x38d   : > { %4911 = vmatprep.subr.bf16.mxu0 %v5458_v15 }
 0x390   : > { %4912 = vmatpush3.bf16.msra.mxu0 %v5252_v57 }
 0x391   : > { %4913 = vmatprep.subr.bf16.mxu0 %v5458_v15 }
 0x394   : > { %4914 = vmatpush3.bf16.msra.mxu0 %v5253_v59 }
 0x395   : > { %4915 = vmatprep.subr.bf16.mxu0 %v5458_v15 }
 0x398   : > { %4916 = vmatpush3.bf16.msra.mxu0 %v5254_v61 }
 0x39b   : > { %4918 = vmatmul.mubr.bf16.vlgmr.msra.gmra.mxu0 %v3646_v0 }
 0x3f4   : > { %v3129_v1 = vpop.f32.mrf.mxu1 }
 0x3f6   : > { %v4819_v2 = vpop.f32.mrf.mxu1 }
 0x3f8   : > { %v3132_v3 = vpop.f32.mrf.mxu1 }
 0x3fa   : > { %v4820_v36 = vpop.f32.mrf.mxu1 }
 0x3fb   : > { %v3039_v4 = vpop.f32.mrf.mxu0 }
 0x3fc   : > { %v3130_v6 = vadd.f32 %v3129_v1, %v3039_v4 }
 0x3fd   : > { %v4799_v7 = vpop.f32.mrf.mxu0 }
 0x3ff   : > { %v3042_v8 = vpop.f32.mrf.mxu0 }
 0x400   : > { %v3133_v43 = vadd.f32 %v3132_v3, %v3042_v8 }
 0x401   : > { %v4800_v24 = vpop.f32.mrf.mxu0 }
 0x414   : > { %v3371_v9 = vpop.f32.mrf.mxu1 }
 0x416   : > { %v4859_v10 = vpop.f32.mrf.mxu1 }
 0x418   : > { %v3374_v15 = vpop.f32.mrf.mxu1 }
 0x41a   : > { %v4860_v11 = vpop.f32.mrf.mxu1 }
 0x41b   : > { %v3242_v12 = vpop.f32.mrf.mxu0 }
 0x41c   : > { %v3249_v13 = vadd.f32 %v3242_v12, %v3130_v6 }
 0x41d   : > { %v4839_v16 = vpop.f32.mrf.mxu0 }
 0x41e   : > { %v3378_v17 = vadd.f32 %v3371_v9, %v3249_v13 }
 0x41f   : > { %v3245_v18 = vpop.f32.mrf.mxu0 }
 0x420   : > { %v3250_v32 = vadd.f32 %v3245_v18, %v3133_v43 }
 0x421   : > { %v4840_v19 = vpop.f32.mrf.mxu0 }
 0x422   : > { %v3379_v20 = vadd.f32 %v3374_v15, %v3250_v32 }
 0x434   : > { %v3615_v22 = vpop.f32.mrf.mxu1 }
 0x436   : > { %v4899_v25 = vpop.f32.mrf.mxu1 }
 0x438   : > { %v3618_v26 = vpop.f32.mrf.mxu1 }
 0x43a   : > { %v4900_v27 = vpop.f32.mrf.mxu1 }
 0x43b   : > { %v3486_v28 = vpop.f32.mrf.mxu0 }
 0x43c   : > { %v3493_v33 = vadd.f32 %v3486_v28, %v3378_v17 }
 0x43d   : > { %v4879_v29 = vpop.f32.mrf.mxu0 }
 0x43e   : > { %v3622_v38 = vadd.f32 %v3615_v22, %v3493_v33 }
 0x43f   : > { %v3489_v30 = vpop.f32.mrf.mxu0 }
 0x440   : > { %v3494_v37 = vadd.f32 %v3489_v30, %v3379_v20 }
 0x441   : > { %v4880_v31 = vpop.f32.mrf.mxu0 }
 0x442   : > { %v3623_v45 = vadd.f32 %v3618_v26, %v3494_v37 }
 0x45b   : > { %v3730_v39 = vpop.f32.mrf.mxu0 }
 0x45c   : > { %v3737_v5 = vadd.f32 %v3730_v39, %v3622_v38 }
 0x45d   : > { %v4919_v42 = vpop.f32.mrf.mxu0 }
 0x45e   : > { %v3746_v44 = vadd.f32 %v4145_v40, %v3737_v5 }
 0x45f   : > { %v3733_v46 = vpop.f32.mrf.mxu0 }
 0x460   : > { %v3752_v47 = vadd.f32 %v4174_v41, %v3746_v44  ;;  %v3738_v48 = vadd.f32 %v3733_v46, %v3623_v45 }
 0x461   : > { %v4920_v49 = vpop.f32.mrf.mxu0 }
 0x462   : > { %v3754_v50 = vmax.f32 %v3752_v47, 0.0  ;;  %v3747_v51 = vadd.f32 %v4145_v40, %v3738_v48 }
 0x464   : > { %3756 = vst [vmem:[%s358_s19] sm:$0xff] %v3754_v50  ;;  %v3753_v52 = vadd.f32 %v4175_v14, %v3747_v51 }
 0x466   : > { %v3755_v53 = vmax.f32 %v3753_v52, 0.0 }
 0x468   : > { %3757 = vst [vmem:[%s358_s19 + $0x8] sm:$0xff] %v3755_v53 }
 0x469   : > { %5375 = shalt.err (!%p5372_p10)
}
 0x46a   : > { %s5376_s1 = scalar_lea.hbm %s5940_s23, 256  ;;  %s5380_s11 = scalar_lea.hbm %s5995_s7, 512 }
 0x46b   : > { %p5377_p7 = scmp.ne.s32.totalorder %s5940_s23, %s5376_s1  ;;  %p5381_p9 = scmp.lt.s32.totalorder %s5940_s23, %s5995_s7 }
 0x46c   : > { %p5382_p0 = scmp.lt.s32.totalorder %s5380_s11, %s5376_s1 }
 0x46d   : > { %p5378_p6 = pnand %p5377_p7, %p5612_p13 }
 0x46e   : > { %p5383_p3 = por %p5382_p0, %p5381_p9 }
 0x46f   : > { %p5379_p12 = pneg %p5378_p6 }
 0x471   : > { %p5384_p1 = pnand %p5383_p3, %p5379_p12 }
 0x473   : > { %5387 = shalt.err (!%p5384_p1)
}
 0x474   : > { %s5461_s20 = smov 128   ;;  %s5462_s19 = smov 8  }
 0x475   : > { %4938 = dma.vmem_to_hbm [thread:$0]  (%p5612_p13), %s5935_s15, 256, %s5940_s23, %s3759_s18, %s5461_s20, %s5461_s20, %s5462_s19  }
 0x476 PF: > { %s3789_s21 = sand.u32 1, %s5430_s24   ;;  %p6018_p4 = scmp.ne.s32.totalorder %s6007_s12, 0 }
 0x477   : > { %p6019_p8 = scmp.ge.s32.totalorder %s5450_s29, 2  ;;  %s3790_s30 = scalar_lea.sflag [#allocation5], %s3789_s21 }
 0x479   : > { %p4955_p5 = pnand %p6019_p8, %p6018_p4 }
 0x47b   : > { %p4956_p11 = pneg %p4955_p5 }
 0x47d   : > { %5425 = dma.done.wait (%p4956_p11), %s3790_s30, 256  }
 0x47e   : > { %5427 = vsyncadd (%p4956_p11), %s3790_s30, 4294967040  ;;  %s25_s29 = sadd.s32 1, %s5450_s29   ;;  %s6020_s27 = sld [smem:[#allocation16_spill]] }
 0x47f   : > { %p22_p2 = scmp.ge.s32.totalorder %s25_s29, 4   ;;  %s6021_s28 = sld [smem:[#allocation17_spill]] }
 0x480   : > { %s6022_s24 = smov %s5434_s25  ;;  %s6023_s25 = smov %s5438_s26 }
 0x481   : > { %s6024_s26 = smov %s5628_s10  ;;  %24 = sbr.rel (!%p22_p2) target bundleno = 12 (0xc), region = 105 }
 0x486   :  { %3795 = vsyncpa [#allocation4], 1 }
 0x487   :  { %3797 = vsyncpa [#allocation4 + $0x1], 1 }
 0x488   :  { %3798 = vsyncpa [#allocation7], 1 }
 0x489   :  { %3799 = vsyncpa [#allocation10], 1 }
 0x48a   :  { %3800 = vsyncpa [#allocation5], 1 }
 0x48b   :  { %3802 = vsyncpa [#allocation5 + $0x1], 1 }

</bundles_post_ra>
